<compile_context>
chip_gen: v7x
topology: tpu7x:2x2x1
jax: 0.10.0
libtpu: 0.0.40
codegen_flags: <defaults>
</compile_context>

<pallas_src>
import functools

import jax
import jax.numpy as jnp
from jax.experimental import pallas as pl
from jax.experimental.pallas import tpu as pltpu

voc_labels = ("label1", "label2", "label3")
label_map = {k: v + 1 for v, k in enumerate(voc_labels)}
N_FG_CLASSES = len(label_map)       # 3 foreground labels
N_CLASSES = N_FG_CLASSES + 1        # + background class -> 4 score classes

LANES = 128
N_BISECT = 32                       # bisection steps for the exact top-k sum


# ----------------------------- Pallas kernel ------------------------------- #
def _multibox_kernel(n_obj_ref, labels_ref, boxes_ref,        # SMEM scalars
                     priors_ref, data_ref,                    # VMEM slabs
                     out_ref,                                 # VMEM (1,1,128) per-image out
                     *, S, P_real, C, threshold, neg_pos_ratio):
    i = pl.program_id(0)
    M = labels_ref.shape[1]
    P_pad = S * LANES
    padded = (P_pad != P_real)

    n_obj = n_obj_ref[i]

    # ---- priors in sublane-dense (S,128) layout ----
    pcx = priors_ref[0 * S:1 * S, :]
    pcy = priors_ref[1 * S:2 * S, :]
    pw = priors_ref[2 * S:3 * S, :]
    ph = priors_ref[3 * S:4 * S, :]
    px1 = pcx - pw * 0.5
    py1 = pcy - ph * 0.5
    px2 = pcx + pw * 0.5
    py2 = pcy + ph * 0.5
    prior_area = pw * ph

    sub = jax.lax.broadcasted_iota(jnp.int32, (S, LANES), 0)
    ln = jax.lax.broadcasted_iota(jnp.int32, (S, LANES), 1)
    gidx = sub * LANES + ln                                    # global prior index
    valid = gidx < P_real if padded else None                  # padded-prior mask

    # ---- per-prior best object (IoU matching) + fused force-match ----
    # Fusing is equivalent to torch's "regular max then force" ordering because a
    # forced prior has overlap 1.0 and no later IoU can exceed 1.0, while a later
    # force on the same prior still wins (torch applies forces in object order).
    best_overlap = jnp.full((S, LANES), -1.0, dtype=jnp.float32)
    best_obj = jnp.zeros((S, LANES), dtype=jnp.int32)
    box_scalars = []
    for o in range(M):
        bx1 = boxes_ref[i, 4 * o + 0]
        by1 = boxes_ref[i, 4 * o + 1]
        bx2 = boxes_ref[i, 4 * o + 2]
        by2 = boxes_ref[i, 4 * o + 3]
        box_scalars.append((bx1, by1, bx2, by2))               # hoisted for the gather pass
        ix1 = jnp.maximum(px1, bx1)
        iy1 = jnp.maximum(py1, by1)
        ix2 = jnp.minimum(px2, bx2)
        iy2 = jnp.minimum(py2, by2)
        inter = jnp.maximum(ix2 - ix1, 0.0) * jnp.maximum(iy2 - iy1, 0.0)
        b_area = (bx2 - bx1) * (by2 - by1)
        # exact division: IoU feeds discrete argmax / threshold decisions
        iou = inter / (b_area + prior_area - inter)            # (S,128)
        if padded:
            iou = jnp.where(valid, iou, -1.0)
        obj_ok = o < n_obj
        upd = jnp.logical_and(obj_ok, iou > best_overlap)      # first-max wins on ties
        best_obj = jnp.where(upd, o, best_obj)
        best_overlap = jnp.where(upd, iou, best_overlap)
        # per-object best prior (first argmax over priors) -> force-match
        row_max = jnp.max(iou, keepdims=True)                  # (1,1)
        p_star = jnp.min(jnp.where(iou >= row_max, gidx, P_pad), keepdims=True)
        force = jnp.logical_and(obj_ok, gidx == p_star)
        best_obj = jnp.where(force, o, best_obj)
        best_overlap = jnp.where(force, 1.0, best_overlap)

    # ---- gather label + box of matched object (reuses hoisted box scalars) ----
    label_fp = jnp.zeros((S, LANES), dtype=jnp.int32)
    gx1 = jnp.zeros((S, LANES), dtype=jnp.float32)
    gy1 = jnp.zeros((S, LANES), dtype=jnp.float32)
    gx2 = jnp.zeros((S, LANES), dtype=jnp.float32)
    gy2 = jnp.zeros((S, LANES), dtype=jnp.float32)
    for o in range(M):
        bx1, by1, bx2, by2 = box_scalars[o]
        sel = best_obj == o
        label_fp = jnp.where(sel, labels_ref[i, o], label_fp)
        gx1 = jnp.where(sel, bx1, gx1)
        gy1 = jnp.where(sel, by1, gy1)
        gx2 = jnp.where(sel, bx2, gx2)
        gy2 = jnp.where(sel, by2, gy2)
    label_fp = jnp.where(best_overlap < threshold, 0, label_fp)
    positive = label_fp != 0
    pos_f = positive.astype(jnp.float32)
    n_pos = jnp.sum(pos_f, keepdims=True)                      # (1,1)

    # ---- encode matched boxes: xy -> cxcy -> gcxgcy ----
    cx = 0.5 * (gx1 + gx2)
    cy = 0.5 * (gy1 + gy2)
    w = gx2 - gx1
    h = gy2 - gy1
    # NaN guard for degenerate / padded matches (they are masked by pos_f anyway)
    w = jnp.where(w > 0.0, w, pw)
    h = jnp.where(h > 0.0, h, ph)
    inv_pw = pl.reciprocal(pw, approx=True)                    # EUP slot, ~free
    inv_ph = pl.reciprocal(ph, approx=True)
    g_cx = (cx - pcx) * (inv_pw * 10.0)
    g_cy = (cy - pcy) * (inv_ph * 10.0)
    g_w = jnp.log(w * inv_pw) * 5.0
    g_h = jnp.log(h * inv_ph) * 5.0

    # ---- localisation L1 over positives ----
    d_cx = data_ref[0 * S:1 * S, :]
    d_cy = data_ref[1 * S:2 * S, :]
    d_w = data_ref[2 * S:3 * S, :]
    d_h = data_ref[3 * S:4 * S, :]
    loc_abs = (jnp.abs(d_cx - g_cx) + jnp.abs(d_cy - g_cy)
               + jnp.abs(d_w - g_w) + jnp.abs(d_h - g_h))
    loc_abs_sum = jnp.sum(loc_abs * pos_f, keepdims=True)      # (1,1)

    # ---- per-prior cross entropy (classes are separate (S,128) slabs) ----
    sc = [data_ref[(4 + c) * S:(4 + c + 1) * S, :] for c in range(C)]
    mx = sc[0]
    for c in range(1, C):
        mx = jnp.maximum(mx, sc[c])
    sumexp = jnp.zeros((S, LANES), dtype=jnp.float32)
    score_true = jnp.zeros((S, LANES), dtype=jnp.float32)
    for c in range(C):
        sumexp = sumexp + jnp.exp(sc[c] - mx)
        score_true = jnp.where(label_fp == c, sc[c], score_true)
    ce = mx + jnp.log(sumexp) - score_true                     # (S,128), >= 0
    if padded:
        ce = jnp.where(valid, ce, 0.0)
    conf_pos_sum = jnp.sum(ce * pos_f, keepdims=True)          # (1,1)

    # ---- hard negative mining: exact top-k sum via threshold bisection ----
    # top-k sum = sum(ce_neg > t*) + (k - count(ce_neg > t*)) * t*, where t* is
    # the k-th largest value; this matches torch's sort-then-top-k even on ties,
    # using O(P log P) work and no (P,P) temporaries.
    ce_neg = jnp.where(positive, 0.0, ce)                      # (S,128)
    k = jnp.minimum(float(neg_pos_ratio) * n_pos, float(P_real))  # (1,1)
    lo = jnp.zeros((1, 1), dtype=jnp.float32)
    hi = jnp.max(ce_neg, keepdims=True)                        # (1,1)

    def _bisect(_, carry):
        lo_c, hi_c = carry
        mid = 0.5 * (lo_c + hi_c)
        cnt = jnp.sum((ce_neg > mid).astype(jnp.float32), keepdims=True)
        take = cnt >= k                                        # mid still below k-th value
        return jnp.where(take, mid, lo_c), jnp.where(take, hi_c, mid)

    lo, hi = jax.lax.fori_loop(0, N_BISECT, _bisect, (lo, hi), unroll=True)
    t = lo                                                     # ~ k-th largest value (from below)
    gt = (ce_neg > t).astype(jnp.float32)
    cnt_gt = jnp.sum(gt, keepdims=True)
    sum_gt = jnp.sum(ce_neg * gt, keepdims=True)
    conf_hard_sum = sum_gt + (k - cnt_gt) * t                  # (1,1)

    # ---- per-image partial sums on lanes 0..3 ----
    lane128 = jax.lax.broadcasted_iota(jnp.int32, (1, LANES), 1)
    contrib = (jnp.where(lane128 == 0, loc_abs_sum, 0.0)
               + jnp.where(lane128 == 1, n_pos, 0.0)
               + jnp.where(lane128 == 2, conf_pos_sum, 0.0)
               + jnp.where(lane128 == 3, conf_hard_sum, 0.0))
    out_ref[...] = contrib[None, :, :]


# ----------------------------- wrapper (glue) ------------------------------ #
def multibox_loss_pallas(predicted_locs, predicted_scores, boxes, labels, n_objects,
                         priors_cxcy, threshold=0.5, neg_pos_ratio=3, alpha=1.0):
    N, P, _ = predicted_locs.shape
    C = predicted_scores.shape[2]
    M = boxes.shape[1]
    P_pad = ((P + LANES - 1) // LANES) * LANES
    S = P_pad // LANES

    # fused per-image slab: rows [0:4S] = locs coords, rows [4S:(4+C)S] = scores
    locs_t = jnp.transpose(predicted_locs, (0, 2, 1)).astype(jnp.float32)      # (N,4,P)
    scores_t = jnp.transpose(predicted_scores, (0, 2, 1)).astype(jnp.float32)  # (N,C,P)
    fused = jnp.concatenate([locs_t, scores_t], axis=1)                        # (N,4+C,P)
    if P_pad != P:
        fused = jnp.pad(fused, ((0, 0), (0, 0), (0, P_pad - P)))
    fused = fused.reshape(N, (4 + C) * S, LANES)

    priors_t = jnp.transpose(priors_cxcy, (1, 0)).astype(jnp.float32)          # (4,P)
    if P_pad != P:
        pad_block = jnp.tile(jnp.array([[0.5], [0.5], [1.0], [1.0]], jnp.float32),
                             (1, P_pad - P))
        priors_t = jnp.concatenate([priors_t, pad_block], axis=1)
    priors_slab = priors_t.reshape(4 * S, LANES)

    boxes_flat = boxes.reshape(N, M * 4).astype(jnp.float32)                   # (N,4M)

    kernel = functools.partial(_multibox_kernel, S=S, P_real=P, C=C,
                               threshold=threshold, neg_pos_ratio=neg_pos_ratio)
    # TODO(synk): could additionally tile several images per grid step to fill the
    # sublanes at very small P; per-image steps already shard across v7x's 2 TCs.
    acc = pl.pallas_call(
        kernel,
        out_shape=jax.ShapeDtypeStruct((N, 1, LANES), jnp.float32),
        grid=(N,),
        in_specs=[
            pl.BlockSpec(memory_space=pltpu.MemorySpace.SMEM),      # n_objects (N,)
            pl.BlockSpec(memory_space=pltpu.MemorySpace.SMEM),      # labels    (N, M)
            pl.BlockSpec(memory_space=pltpu.MemorySpace.SMEM),      # boxes     (N, 4M)
            pl.BlockSpec((4 * S, LANES), lambda i: (0, 0)),         # priors slab
            pl.BlockSpec((None, (4 + C) * S, LANES), lambda i: (i, 0, 0)),  # fused slab
        ],
        out_specs=pl.BlockSpec((1, 1, LANES), lambda i: (i, 0, 0)),
        compiler_params=pltpu.CompilerParams(dimension_semantics=("parallel",)),
    )(n_objects.astype(jnp.int32), labels.astype(jnp.int32), boxes_flat,
      priors_slab, fused)

    sums = jnp.sum(acc[:, 0, :4], axis=0)
    loc_sum, n_pos, conf_pos, conf_hard = sums[0], sums[1], sums[2], sums[3]
    # Matches torch semantics: divides by total positives (inf/nan if there are none).
    conf_loss = (conf_hard + conf_pos) / n_pos
    loc_loss = loc_sum / (4.0 * n_pos)     # nn.L1Loss mean over (n_pos, 4) gathered elems
    return conf_loss + alpha * loc_loss


# -------------------------- pure-JAX reference ----------------------------- #
def ref_multibox_loss(pred_locs, pred_scores, boxes, labels, n_objects, priors_cxcy,
                      threshold=0.5, neg_pos_ratio=3, alpha=1.0):
    N, P, _ = pred_locs.shape
    M = boxes.shape[1]
    pcx, pcy, pw, ph = (priors_cxcy[:, c] for c in range(4))
    px1, py1 = pcx - pw * 0.5, pcy - ph * 0.5
    px2, py2 = pcx + pw * 0.5, pcy + ph * 0.5
    prior_area = (px2 - px1) * (py2 - py1)

    total_loc = 0.0
    total_pos = 0.0
    total_cpos = 0.0
    total_chard = 0.0
    for i in range(N):
        n_obj = int(n_objects[i])
        b = boxes[i]
        lab = labels[i]
        bx1, by1, bx2, by2 = b[:, 0:1], b[:, 1:2], b[:, 2:3], b[:, 3:4]
        ix1 = jnp.maximum(bx1, px1[None, :])
        iy1 = jnp.maximum(by1, py1[None, :])
        ix2 = jnp.minimum(bx2, px2[None, :])
        iy2 = jnp.minimum(by2, py2[None, :])
        inter = jnp.maximum(ix2 - ix1, 0.0) * jnp.maximum(iy2 - iy1, 0.0)
        b_area = (bx2 - bx1) * (by2 - by1)
        iou = inter / (b_area + prior_area[None, :] - inter)    # (M, P)
        valid = (jnp.arange(M) < n_obj)[:, None]
        iou_m = jnp.where(valid, iou, -1.0)
        best_overlap = jnp.max(iou_m, axis=0)
        best_obj = jnp.argmax(iou_m, axis=0)
        prior_for_obj = jnp.argmax(iou, axis=1)
        for o in range(n_obj):
            p = prior_for_obj[o]
            best_obj = best_obj.at[p].set(o)
            best_overlap = best_overlap.at[p].set(1.0)
        label_for_prior = lab[best_obj]
        label_for_prior = jnp.where(best_overlap < threshold, 0, label_for_prior)
        gb = b[best_obj]
        cx = 0.5 * (gb[:, 0] + gb[:, 2])
        cy = 0.5 * (gb[:, 1] + gb[:, 3])
        w = gb[:, 2] - gb[:, 0]
        h = gb[:, 3] - gb[:, 1]
        t = jnp.stack([(cx - pcx) / (pw * 0.1), (cy - pcy) / (ph * 0.1),
                       jnp.log(w / pw) * 5.0, jnp.log(h / ph) * 5.0], axis=1)
        pos = label_for_prior != 0
        pos_f = pos.astype(jnp.float32)
        total_pos = total_pos + jnp.sum(pos_f)
        total_loc = total_loc + jnp.sum(jnp.abs(pred_locs[i] - t) * pos_f[:, None])
        logits = pred_scores[i]
        lse = jax.nn.logsumexp(logits, axis=1)
        ce = lse - logits[jnp.arange(P), label_for_prior]
        total_cpos = total_cpos + jnp.sum(ce * pos_f)
        ce_neg = jnp.where(pos, 0.0, ce)
        sorted_desc = jnp.sort(ce_neg)[::-1]
        k = neg_pos_ratio * jnp.sum(pos_f)
        total_chard = total_chard + jnp.sum(jnp.where(jnp.arange(P) < k, sorted_desc, 0.0))
    conf_loss = (total_chard + total_cpos) / total_pos
    loc_loss = total_loc / (4.0 * total_pos)
    return conf_loss + alpha * loc_loss


# ---------------------------------- main ----------------------------------- #
if __name__ == "__main__":
    key = jax.random.PRNGKey(0)
    N, P, M, C = 2, 256, 8, N_CLASSES
    k_pr, k_bx, k_lb, k_pl, k_ps = jax.random.split(key, 5)

    # irregular random priors in centre-size form (avoids exact-IoU ties)
    pc = jax.random.uniform(k_pr, (P, 2), minval=0.05, maxval=0.95)
    psz = jax.random.uniform(jax.random.fold_in(k_pr, 1), (P, 2), minval=0.05, maxval=0.35)
    priors_cxcy = jnp.concatenate([pc, psz], axis=1).astype(jnp.float32)

    # ground-truth boxes (boundary coords), padded to M per image; first n_objects[i] valid
    bc = jax.random.uniform(k_bx, (N, M, 2), minval=0.2, maxval=0.8)
    bsz = jax.random.uniform(jax.random.fold_in(k_bx, 1), (N, M, 2), minval=0.1, maxval=0.4)
    boxes = jnp.concatenate([bc - bsz * 0.5, bc + bsz * 0.5], axis=2).astype(jnp.float32)
    labels = jax.random.randint(k_lb, (N, M), 1, N_CLASSES).astype(jnp.int32)   # labels 1..3
    n_objects = jnp.array([3, 5], dtype=jnp.int32)

    predicted_locs = jax.random.normal(k_pl, (N, P, 4), dtype=jnp.float32)
    predicted_scores = jax.random.normal(k_ps, (N, P, C), dtype=jnp.float32)

    loss = multibox_loss_pallas(predicted_locs, predicted_scores, boxes, labels,
                                n_objects, priors_cxcy)
    loss = jax.block_until_ready(loss)

    ref = ref_multibox_loss(predicted_locs, predicted_scores, boxes, labels,
                            n_objects, priors_cxcy)
    ref = jax.block_until_ready(ref)

    assert bool(jnp.isfinite(loss)), "non-finite loss"
    assert abs(float(loss) - float(ref)) <= 2e-3 * max(1.0, abs(float(ref))), \
        f"mismatch: pallas={float(loss)} ref={float(ref)}"
    print("KERNEL_OK")
</pallas_src>

<mosaic_0001>
module attributes {stable_mosaic.version = 11 : i64} {
  func.func @_multibox_kernel(%arg0: i32, %arg1: memref<2xi32, #tpu.memory_space<smem>>, %arg2: memref<2x8xi32, #tpu.memory_space<smem>>, %arg3: memref<2x32xf32, #tpu.memory_space<smem>>, %arg4: memref<8x128xf32, #tpu.memory_space<vmem>>, %arg5: memref<1x16x128xf32, #tpu.memory_space<vmem>>, %arg6: memref<1x1x128xf32, #tpu.memory_space<vmem>>) attributes {dimension_semantics = [#tpu.dimension_semantics<parallel>], iteration_bounds = array<i64: 2>, scalar_prefetch = 0 : i64, scratch_operands = 0 : i64, tpu.core_type = #tpu.core_type<tc>, window_params = [{transform_indices = @transform_0, window_bounds = array<i64: 2>}, {transform_indices = @transform_1, window_bounds = array<i64: 2, 8>}, {transform_indices = @transform_2, window_bounds = array<i64: 2, 32>}, {pipeline_mode = #tpu.pipeline_mode<synchronous>, transform_indices = @transform_3, window_bounds = array<i64: 8, 128>}, {transform_indices = @transform_4, window_bounds = array<i64: 1, 16, 128>}, {transform_indices = @transform_5, window_bounds = array<i64: 1, 1, 128>}]} {
    %0 = arith.index_cast %arg0 : i32 to index
    %1 = memref.load %arg1[%0] : memref<2xi32, #tpu.memory_space<smem>>
    %c0 = arith.constant 0 : index
    %c0_0 = arith.constant 0 : index
    %2 = vector.load %arg4[%c0, %c0_0] : memref<8x128xf32, #tpu.memory_space<vmem>>, vector<2x128xf32>
    %c2 = arith.constant 2 : index
    %c0_1 = arith.constant 0 : index
    %3 = vector.load %arg4[%c2, %c0_1] : memref<8x128xf32, #tpu.memory_space<vmem>>, vector<2x128xf32>
    %c4 = arith.constant 4 : index
    %c0_2 = arith.constant 0 : index
    %4 = vector.load %arg4[%c4, %c0_2] : memref<8x128xf32, #tpu.memory_space<vmem>>, vector<2x128xf32>
    %c6 = arith.constant 6 : index
    %c0_3 = arith.constant 0 : index
    %5 = vector.load %arg4[%c6, %c0_3] : memref<8x128xf32, #tpu.memory_space<vmem>>, vector<2x128xf32>
    %cst = arith.constant 5.000000e-01 : f32
    %6 = vector.broadcast %cst : f32 to vector<2x128xf32>
    %7 = arith.mulf %4, %6 : vector<2x128xf32>
    %8 = arith.subf %2, %7 : vector<2x128xf32>
    %cst_4 = arith.constant 5.000000e-01 : f32
    %9 = vector.broadcast %cst_4 : f32 to vector<2x128xf32>
    %10 = arith.mulf %5, %9 : vector<2x128xf32>
    %11 = arith.subf %3, %10 : vector<2x128xf32>
    %cst_5 = arith.constant 5.000000e-01 : f32
    %12 = vector.broadcast %cst_5 : f32 to vector<2x128xf32>
    %13 = arith.mulf %4, %12 : vector<2x128xf32>
    %14 = arith.addf %2, %13 : vector<2x128xf32>
    %cst_6 = arith.constant 5.000000e-01 : f32
    %15 = vector.broadcast %cst_6 : f32 to vector<2x128xf32>
    %16 = arith.mulf %5, %15 : vector<2x128xf32>
    %17 = arith.addf %3, %16 : vector<2x128xf32>
    %18 = arith.mulf %4, %5 : vector<2x128xf32>
    %19 = tpu.iota {dimensions = array<i32: 0>} : vector<2x128xi32>
    %20 = tpu.iota {dimensions = array<i32: 1>} : vector<2x128xi32>
    %c128_i32 = arith.constant 128 : i32
    %21 = vector.broadcast %c128_i32 : i32 to vector<2x128xi32>
    %22 = arith.muli %19, %21 : vector<2x128xi32>
    %23 = arith.addi %22, %20 : vector<2x128xi32>
    %cst_7 = arith.constant -1.000000e+00 : f32
    %24 = vector.broadcast %cst_7 : f32 to vector<2x128xf32>
    %c0_i32 = arith.constant 0 : i32
    %25 = vector.broadcast %c0_i32 : i32 to vector<2x128xi32>
    %26 = arith.index_cast %arg0 : i32 to index
    %c0_8 = arith.constant 0 : index
    %27 = memref.load %arg3[%26, %c0_8] : memref<2x32xf32, #tpu.memory_space<smem>>
    %28 = arith.index_cast %arg0 : i32 to index
    %c1 = arith.constant 1 : index
    %29 = memref.load %arg3[%28, %c1] : memref<2x32xf32, #tpu.memory_space<smem>>
    %30 = arith.index_cast %arg0 : i32 to index
    %c2_9 = arith.constant 2 : index
    %31 = memref.load %arg3[%30, %c2_9] : memref<2x32xf32, #tpu.memory_space<smem>>
    %32 = arith.index_cast %arg0 : i32 to index
    %c3 = arith.constant 3 : index
    %33 = memref.load %arg3[%32, %c3] : memref<2x32xf32, #tpu.memory_space<smem>>
    %34 = vector.broadcast %27 : f32 to vector<2x128xf32>
    %35 = arith.maximumf %8, %34 : vector<2x128xf32>
    %36 = vector.broadcast %29 : f32 to vector<2x128xf32>
    %37 = arith.maximumf %11, %36 : vector<2x128xf32>
    %38 = vector.broadcast %31 : f32 to vector<2x128xf32>
    %39 = arith.minimumf %14, %38 : vector<2x128xf32>
    %40 = vector.broadcast %33 : f32 to vector<2x128xf32>
    %41 = arith.minimumf %17, %40 : vector<2x128xf32>
    %42 = arith.subf %39, %35 : vector<2x128xf32>
    %cst_10 = arith.constant 0.000000e+00 : f32
    %43 = vector.broadcast %cst_10 : f32 to vector<2x128xf32>
    %44 = arith.maximumf %42, %43 : vector<2x128xf32>
    %45 = arith.subf %41, %37 : vector<2x128xf32>
    %cst_11 = arith.constant 0.000000e+00 : f32
    %46 = vector.broadcast %cst_11 : f32 to vector<2x128xf32>
    %47 = arith.maximumf %45, %46 : vector<2x128xf32>
    %48 = arith.mulf %44, %47 : vector<2x128xf32>
    %49 = arith.subf %31, %27 : f32
    %50 = arith.subf %33, %29 : f32
    %51 = arith.mulf %49, %50 : f32
    %52 = vector.broadcast %51 : f32 to vector<2x128xf32>
    %53 = arith.addf %52, %18 : vector<2x128xf32>
    %54 = arith.subf %53, %48 : vector<2x128xf32>
    %55 = arith.divf %48, %54 : vector<2x128xf32>
    %c0_i32_12 = arith.constant 0 : i32
    %56 = arith.cmpi sgt, %1, %c0_i32_12 : i32
    %57 = arith.cmpf ogt, %55, %24 : vector<2x128xf32>
    %58 = vector.broadcast %56 : i1 to vector<2x128xi1>
    %59 = arith.andi %58, %57 : vector<2x128xi1>
    %c0_i32_13 = arith.constant 0 : i32
    %60 = vector.broadcast %c0_i32_13 : i32 to vector<2x128xi32>
    %61 = arith.select %59, %60, %25 : vector<2x128xi1>, vector<2x128xi32>
    %62 = arith.select %59, %55, %24 : vector<2x128xi1>, vector<2x128xf32>
    %63 = vector.shape_cast %55 : vector<2x128xf32> to vector<1x2x128xf32>
    %cst_14 = arith.constant dense<0xFF800000> : vector<1xf32>
    %64 = vector.multi_reduction <maximumf>, %63, %cst_14 [1, 2] : vector<1x2x128xf32> to vector<1xf32>
    %65 = vector.shape_cast %64 : vector<1xf32> to vector<1x1x1xf32>
    %66 = vector.extract %65[0, 0, 0] : f32 from vector<1x1x1xf32>
    %67 = vector.broadcast %66 : f32 to vector<1x1xf32>
    %68 = vector.broadcast %67 : vector<1x1xf32> to vector<2x128xf32>
    %69 = arith.cmpf oge, %55, %68 : vector<2x128xf32>
    %c256_i32 = arith.constant 256 : i32
    %70 = vector.broadcast %c256_i32 : i32 to vector<2x128xi32>
    %71 = arith.select %69, %23, %70 : vector<2x128xi1>, vector<2x128xi32>
    %72 = vector.shape_cast %71 : vector<2x128xi32> to vector<1x2x128xi32>
    %cst_15 = arith.constant dense<2147483647> : vector<1xi32>
    %73 = vector.multi_reduction <minsi>, %72, %cst_15 [1, 2] : vector<1x2x128xi32> to vector<1xi32>
    %74 = vector.shape_cast %73 : vector<1xi32> to vector<1x1x1xi32>
    %75 = vector.extract %74[0, 0, 0] : i32 from vector<1x1x1xi32>
    %76 = vector.broadcast %75 : i32 to vector<1x1xi32>
    %77 = vector.broadcast %76 : vector<1x1xi32> to vector<2x128xi32>
    %78 = arith.cmpi eq, %23, %77 : vector<2x128xi32>
    %79 = vector.broadcast %56 : i1 to vector<2x128xi1>
    %80 = arith.andi %79, %78 : vector<2x128xi1>
    %c0_i32_16 = arith.constant 0 : i32
    %81 = vector.broadcast %c0_i32_16 : i32 to vector<2x128xi32>
    %82 = arith.select %80, %81, %61 : vector<2x128xi1>, vector<2x128xi32>
    %cst_17 = arith.constant 1.000000e+00 : f32
    %83 = vector.broadcast %cst_17 : f32 to vector<2x128xf32>
    %84 = arith.select %80, %83, %62 : vector<2x128xi1>, vector<2x128xf32>
    %85 = arith.index_cast %arg0 : i32 to index
    %c4_18 = arith.constant 4 : index
    %86 = memref.load %arg3[%85, %c4_18] : memref<2x32xf32, #tpu.memory_space<smem>>
    %87 = arith.index_cast %arg0 : i32 to index
    %c5 = arith.constant 5 : index
    %88 = memref.load %arg3[%87, %c5] : memref<2x32xf32, #tpu.memory_space<smem>>
    %89 = arith.index_cast %arg0 : i32 to index
    %c6_19 = arith.constant 6 : index
    %90 = memref.load %arg3[%89, %c6_19] : memref<2x32xf32, #tpu.memory_space<smem>>
    %91 = arith.index_cast %arg0 : i32 to index
    %c7 = arith.constant 7 : index
    %92 = memref.load %arg3[%91, %c7] : memref<2x32xf32, #tpu.memory_space<smem>>
    %93 = vector.broadcast %86 : f32 to vector<2x128xf32>
    %94 = arith.maximumf %8, %93 : vector<2x128xf32>
    %95 = vector.broadcast %88 : f32 to vector<2x128xf32>
    %96 = arith.maximumf %11, %95 : vector<2x128xf32>
    %97 = vector.broadcast %90 : f32 to vector<2x128xf32>
    %98 = arith.minimumf %14, %97 : vector<2x128xf32>
    %99 = vector.broadcast %92 : f32 to vector<2x128xf32>
    %100 = arith.minimumf %17, %99 : vector<2x128xf32>
    %101 = arith.subf %98, %94 : vector<2x128xf32>
    %cst_20 = arith.constant 0.000000e+00 : f32
    %102 = vector.broadcast %cst_20 : f32 to vector<2x128xf32>
    %103 = arith.maximumf %101, %102 : vector<2x128xf32>
    %104 = arith.subf %100, %96 : vector<2x128xf32>
    %cst_21 = arith.constant 0.000000e+00 : f32
    %105 = vector.broadcast %cst_21 : f32 to vector<2x128xf32>
    %106 = arith.maximumf %104, %105 : vector<2x128xf32>
    %107 = arith.mulf %103, %106 : vector<2x128xf32>
    %108 = arith.subf %90, %86 : f32
    %109 = arith.subf %92, %88 : f32
    %110 = arith.mulf %108, %109 : f32
    %111 = vector.broadcast %110 : f32 to vector<2x128xf32>
    %112 = arith.addf %111, %18 : vector<2x128xf32>
    %113 = arith.subf %112, %107 : vector<2x128xf32>
    %114 = arith.divf %107, %113 : vector<2x128xf32>
    %c1_i32 = arith.constant 1 : i32
    %115 = arith.cmpi sgt, %1, %c1_i32 : i32
    %116 = arith.cmpf ogt, %114, %84 : vector<2x128xf32>
    %117 = vector.broadcast %115 : i1 to vector<2x128xi1>
    %118 = arith.andi %117, %116 : vector<2x128xi1>
    %c1_i32_22 = arith.constant 1 : i32
    %119 = vector.broadcast %c1_i32_22 : i32 to vector<2x128xi32>
    %120 = arith.select %118, %119, %82 : vector<2x128xi1>, vector<2x128xi32>
    %121 = arith.select %118, %114, %84 : vector<2x128xi1>, vector<2x128xf32>
    %122 = vector.shape_cast %114 : vector<2x128xf32> to vector<1x2x128xf32>
    %cst_23 = arith.constant dense<0xFF800000> : vector<1xf32>
    %123 = vector.multi_reduction <maximumf>, %122, %cst_23 [1, 2] : vector<1x2x128xf32> to vector<1xf32>
    %124 = vector.shape_cast %123 : vector<1xf32> to vector<1x1x1xf32>
    %125 = vector.extract %124[0, 0, 0] : f32 from vector<1x1x1xf32>
    %126 = vector.broadcast %125 : f32 to vector<1x1xf32>
    %127 = vector.broadcast %126 : vector<1x1xf32> to vector<2x128xf32>
    %128 = arith.cmpf oge, %114, %127 : vector<2x128xf32>
    %c256_i32_24 = arith.constant 256 : i32
    %129 = vector.broadcast %c256_i32_24 : i32 to vector<2x128xi32>
    %130 = arith.select %128, %23, %129 : vector<2x128xi1>, vector<2x128xi32>
    %131 = vector.shape_cast %130 : vector<2x128xi32> to vector<1x2x128xi32>
    %cst_25 = arith.constant dense<2147483647> : vector<1xi32>
    %132 = vector.multi_reduction <minsi>, %131, %cst_25 [1, 2] : vector<1x2x128xi32> to vector<1xi32>
    %133 = vector.shape_cast %132 : vector<1xi32> to vector<1x1x1xi32>
    %134 = vector.extract %133[0, 0, 0] : i32 from vector<1x1x1xi32>
    %135 = vector.broadcast %134 : i32 to vector<1x1xi32>
    %136 = vector.broadcast %135 : vector<1x1xi32> to vector<2x128xi32>
    %137 = arith.cmpi eq, %23, %136 : vector<2x128xi32>
    %138 = vector.broadcast %115 : i1 to vector<2x128xi1>
    %139 = arith.andi %138, %137 : vector<2x128xi1>
    %c1_i32_26 = arith.constant 1 : i32
    %140 = vector.broadcast %c1_i32_26 : i32 to vector<2x128xi32>
    %141 = arith.select %139, %140, %120 : vector<2x128xi1>, vector<2x128xi32>
    %cst_27 = arith.constant 1.000000e+00 : f32
    %142 = vector.broadcast %cst_27 : f32 to vector<2x128xf32>
    %143 = arith.select %139, %142, %121 : vector<2x128xi1>, vector<2x128xf32>
    %144 = arith.index_cast %arg0 : i32 to index
    %c8 = arith.constant 8 : index
    %145 = memref.load %arg3[%144, %c8] : memref<2x32xf32, #tpu.memory_space<smem>>
    %146 = arith.index_cast %arg0 : i32 to index
    %c9 = arith.constant 9 : index
    %147 = memref.load %arg3[%146, %c9] : memref<2x32xf32, #tpu.memory_space<smem>>
    %148 = arith.index_cast %arg0 : i32 to index
    %c10 = arith.constant 10 : index
    %149 = memref.load %arg3[%148, %c10] : memref<2x32xf32, #tpu.memory_space<smem>>
    %150 = arith.index_cast %arg0 : i32 to index
    %c11 = arith.constant 11 : index
    %151 = memref.load %arg3[%150, %c11] : memref<2x32xf32, #tpu.memory_space<smem>>
    %152 = vector.broadcast %145 : f32 to vector<2x128xf32>
    %153 = arith.maximumf %8, %152 : vector<2x128xf32>
    %154 = vector.broadcast %147 : f32 to vector<2x128xf32>
    %155 = arith.maximumf %11, %154 : vector<2x128xf32>
    %156 = vector.broadcast %149 : f32 to vector<2x128xf32>
    %157 = arith.minimumf %14, %156 : vector<2x128xf32>
    %158 = vector.broadcast %151 : f32 to vector<2x128xf32>
    %159 = arith.minimumf %17, %158 : vector<2x128xf32>
    %160 = arith.subf %157, %153 : vector<2x128xf32>
    %cst_28 = arith.constant 0.000000e+00 : f32
    %161 = vector.broadcast %cst_28 : f32 to vector<2x128xf32>
    %162 = arith.maximumf %160, %161 : vector<2x128xf32>
    %163 = arith.subf %159, %155 : vector<2x128xf32>
    %cst_29 = arith.constant 0.000000e+00 : f32
    %164 = vector.broadcast %cst_29 : f32 to vector<2x128xf32>
    %165 = arith.maximumf %163, %164 : vector<2x128xf32>
    %166 = arith.mulf %162, %165 : vector<2x128xf32>
    %167 = arith.subf %149, %145 : f32
    %168 = arith.subf %151, %147 : f32
    %169 = arith.mulf %167, %168 : f32
    %170 = vector.broadcast %169 : f32 to vector<2x128xf32>
    %171 = arith.addf %170, %18 : vector<2x128xf32>
    %172 = arith.subf %171, %166 : vector<2x128xf32>
    %173 = arith.divf %166, %172 : vector<2x128xf32>
    %c2_i32 = arith.constant 2 : i32
    %174 = arith.cmpi sgt, %1, %c2_i32 : i32
    %175 = arith.cmpf ogt, %173, %143 : vector<2x128xf32>
    %176 = vector.broadcast %174 : i1 to vector<2x128xi1>
    %177 = arith.andi %176, %175 : vector<2x128xi1>
    %c2_i32_30 = arith.constant 2 : i32
    %178 = vector.broadcast %c2_i32_30 : i32 to vector<2x128xi32>
    %179 = arith.select %177, %178, %141 : vector<2x128xi1>, vector<2x128xi32>
    %180 = arith.select %177, %173, %143 : vector<2x128xi1>, vector<2x128xf32>
    %181 = vector.shape_cast %173 : vector<2x128xf32> to vector<1x2x128xf32>
    %cst_31 = arith.constant dense<0xFF800000> : vector<1xf32>
    %182 = vector.multi_reduction <maximumf>, %181, %cst_31 [1, 2] : vector<1x2x128xf32> to vector<1xf32>
    %183 = vector.shape_cast %182 : vector<1xf32> to vector<1x1x1xf32>
    %184 = vector.extract %183[0, 0, 0] : f32 from vector<1x1x1xf32>
    %185 = vector.broadcast %184 : f32 to vector<1x1xf32>
    %186 = vector.broadcast %185 : vector<1x1xf32> to vector<2x128xf32>
    %187 = arith.cmpf oge, %173, %186 : vector<2x128xf32>
    %c256_i32_32 = arith.constant 256 : i32
    %188 = vector.broadcast %c256_i32_32 : i32 to vector<2x128xi32>
    %189 = arith.select %187, %23, %188 : vector<2x128xi1>, vector<2x128xi32>
    %190 = vector.shape_cast %189 : vector<2x128xi32> to vector<1x2x128xi32>
    %cst_33 = arith.constant dense<2147483647> : vector<1xi32>
    %191 = vector.multi_reduction <minsi>, %190, %cst_33 [1, 2] : vector<1x2x128xi32> to vector<1xi32>
    %192 = vector.shape_cast %191 : vector<1xi32> to vector<1x1x1xi32>
    %193 = vector.extract %192[0, 0, 0] : i32 from vector<1x1x1xi32>
    %194 = vector.broadcast %193 : i32 to vector<1x1xi32>
    %195 = vector.broadcast %194 : vector<1x1xi32> to vector<2x128xi32>
    %196 = arith.cmpi eq, %23, %195 : vector<2x128xi32>
    %197 = vector.broadcast %174 : i1 to vector<2x128xi1>
    %198 = arith.andi %197, %196 : vector<2x128xi1>
    %c2_i32_34 = arith.constant 2 : i32
    %199 = vector.broadcast %c2_i32_34 : i32 to vector<2x128xi32>
    %200 = arith.select %198, %199, %179 : vector<2x128xi1>, vector<2x128xi32>
    %cst_35 = arith.constant 1.000000e+00 : f32
    %201 = vector.broadcast %cst_35 : f32 to vector<2x128xf32>
    %202 = arith.select %198, %201, %180 : vector<2x128xi1>, vector<2x128xf32>
    %203 = arith.index_cast %arg0 : i32 to index
    %c12 = arith.constant 12 : index
    %204 = memref.load %arg3[%203, %c12] : memref<2x32xf32, #tpu.memory_space<smem>>
    %205 = arith.index_cast %arg0 : i32 to index
    %c13 = arith.constant 13 : index
    %206 = memref.load %arg3[%205, %c13] : memref<2x32xf32, #tpu.memory_space<smem>>
    %207 = arith.index_cast %arg0 : i32 to index
    %c14 = arith.constant 14 : index
    %208 = memref.load %arg3[%207, %c14] : memref<2x32xf32, #tpu.memory_space<smem>>
    %209 = arith.index_cast %arg0 : i32 to index
    %c15 = arith.constant 15 : index
    %210 = memref.load %arg3[%209, %c15] : memref<2x32xf32, #tpu.memory_space<smem>>
    %211 = vector.broadcast %204 : f32 to vector<2x128xf32>
    %212 = arith.maximumf %8, %211 : vector<2x128xf32>
    %213 = vector.broadcast %206 : f32 to vector<2x128xf32>
    %214 = arith.maximumf %11, %213 : vector<2x128xf32>
    %215 = vector.broadcast %208 : f32 to vector<2x128xf32>
    %216 = arith.minimumf %14, %215 : vector<2x128xf32>
    %217 = vector.broadcast %210 : f32 to vector<2x128xf32>
    %218 = arith.minimumf %17, %217 : vector<2x128xf32>
    %219 = arith.subf %216, %212 : vector<2x128xf32>
    %cst_36 = arith.constant 0.000000e+00 : f32
    %220 = vector.broadcast %cst_36 : f32 to vector<2x128xf32>
    %221 = arith.maximumf %219, %220 : vector<2x128xf32>
    %222 = arith.subf %218, %214 : vector<2x128xf32>
    %cst_37 = arith.constant 0.000000e+00 : f32
    %223 = vector.broadcast %cst_37 : f32 to vector<2x128xf32>
    %224 = arith.maximumf %222, %223 : vector<2x128xf32>
    %225 = arith.mulf %221, %224 : vector<2x128xf32>
    %226 = arith.subf %208, %204 : f32
    %227 = arith.subf %210, %206 : f32
    %228 = arith.mulf %226, %227 : f32
    %229 = vector.broadcast %228 : f32 to vector<2x128xf32>
    %230 = arith.addf %229, %18 : vector<2x128xf32>
    %231 = arith.subf %230, %225 : vector<2x128xf32>
    %232 = arith.divf %225, %231 : vector<2x128xf32>
    %c3_i32 = arith.constant 3 : i32
    %233 = arith.cmpi sgt, %1, %c3_i32 : i32
    %234 = arith.cmpf ogt, %232, %202 : vector<2x128xf32>
    %235 = vector.broadcast %233 : i1 to vector<2x128xi1>
    %236 = arith.andi %235, %234 : vector<2x128xi1>
    %c3_i32_38 = arith.constant 3 : i32
    %237 = vector.broadcast %c3_i32_38 : i32 to vector<2x128xi32>
    %238 = arith.select %236, %237, %200 : vector<2x128xi1>, vector<2x128xi32>
    %239 = arith.select %236, %232, %202 : vector<2x128xi1>, vector<2x128xf32>
    %240 = vector.shape_cast %232 : vector<2x128xf32> to vector<1x2x128xf32>
    %cst_39 = arith.constant dense<0xFF800000> : vector<1xf32>
    %241 = vector.multi_reduction <maximumf>, %240, %cst_39 [1, 2] : vector<1x2x128xf32> to vector<1xf32>
    %242 = vector.shape_cast %241 : vector<1xf32> to vector<1x1x1xf32>
    %243 = vector.extract %242[0, 0, 0] : f32 from vector<1x1x1xf32>
    %244 = vector.broadcast %243 : f32 to vector<1x1xf32>
    %245 = vector.broadcast %244 : vector<1x1xf32> to vector<2x128xf32>
    %246 = arith.cmpf oge, %232, %245 : vector<2x128xf32>
    %c256_i32_40 = arith.constant 256 : i32
    %247 = vector.broadcast %c256_i32_40 : i32 to vector<2x128xi32>
    %248 = arith.select %246, %23, %247 : vector<2x128xi1>, vector<2x128xi32>
    %249 = vector.shape_cast %248 : vector<2x128xi32> to vector<1x2x128xi32>
    %cst_41 = arith.constant dense<2147483647> : vector<1xi32>
    %250 = vector.multi_reduction <minsi>, %249, %cst_41 [1, 2] : vector<1x2x128xi32> to vector<1xi32>
    %251 = vector.shape_cast %250 : vector<1xi32> to vector<1x1x1xi32>
    %252 = vector.extract %251[0, 0, 0] : i32 from vector<1x1x1xi32>
    %253 = vector.broadcast %252 : i32 to vector<1x1xi32>
    %254 = vector.broadcast %253 : vector<1x1xi32> to vector<2x128xi32>
    %255 = arith.cmpi eq, %23, %254 : vector<2x128xi32>
    %256 = vector.broadcast %233 : i1 to vector<2x128xi1>
    %257 = arith.andi %256, %255 : vector<2x128xi1>
    %c3_i32_42 = arith.constant 3 : i32
    %258 = vector.broadcast %c3_i32_42 : i32 to vector<2x128xi32>
    %259 = arith.select %257, %258, %238 : vector<2x128xi1>, vector<2x128xi32>
    %cst_43 = arith.constant 1.000000e+00 : f32
    %260 = vector.broadcast %cst_43 : f32 to vector<2x128xf32>
    %261 = arith.select %257, %260, %239 : vector<2x128xi1>, vector<2x128xf32>
    %262 = arith.index_cast %arg0 : i32 to index
    %c16 = arith.constant 16 : index
    %263 = memref.load %arg3[%262, %c16] : memref<2x32xf32, #tpu.memory_space<smem>>
    %264 = arith.index_cast %arg0 : i32 to index
    %c17 = arith.constant 17 : index
    %265 = memref.load %arg3[%264, %c17] : memref<2x32xf32, #tpu.memory_space<smem>>
    %266 = arith.index_cast %arg0 : i32 to index
    %c18 = arith.constant 18 : index
    %267 = memref.load %arg3[%266, %c18] : memref<2x32xf32, #tpu.memory_space<smem>>
    %268 = arith.index_cast %arg0 : i32 to index
    %c19 = arith.constant 19 : index
    %269 = memref.load %arg3[%268, %c19] : memref<2x32xf32, #tpu.memory_space<smem>>
    %270 = vector.broadcast %263 : f32 to vector<2x128xf32>
    %271 = arith.maximumf %8, %270 : vector<2x128xf32>
    %272 = vector.broadcast %265 : f32 to vector<2x128xf32>
    %273 = arith.maximumf %11, %272 : vector<2x128xf32>
    %274 = vector.broadcast %267 : f32 to vector<2x128xf32>
    %275 = arith.minimumf %14, %274 : vector<2x128xf32>
    %276 = vector.broadcast %269 : f32 to vector<2x128xf32>
    %277 = arith.minimumf %17, %276 : vector<2x128xf32>
    %278 = arith.subf %275, %271 : vector<2x128xf32>
    %cst_44 = arith.constant 0.000000e+00 : f32
    %279 = vector.broadcast %cst_44 : f32 to vector<2x128xf32>
    %280 = arith.maximumf %278, %279 : vector<2x128xf32>
    %281 = arith.subf %277, %273 : vector<2x128xf32>
    %cst_45 = arith.constant 0.000000e+00 : f32
    %282 = vector.broadcast %cst_45 : f32 to vector<2x128xf32>
    %283 = arith.maximumf %281, %282 : vector<2x128xf32>
    %284 = arith.mulf %280, %283 : vector<2x128xf32>
    %285 = arith.subf %267, %263 : f32
    %286 = arith.subf %269, %265 : f32
    %287 = arith.mulf %285, %286 : f32
    %288 = vector.broadcast %287 : f32 to vector<2x128xf32>
    %289 = arith.addf %288, %18 : vector<2x128xf32>
    %290 = arith.subf %289, %284 : vector<2x128xf32>
    %291 = arith.divf %284, %290 : vector<2x128xf32>
    %c4_i32 = arith.constant 4 : i32
    %292 = arith.cmpi sgt, %1, %c4_i32 : i32
    %293 = arith.cmpf ogt, %291, %261 : vector<2x128xf32>
    %294 = vector.broadcast %292 : i1 to vector<2x128xi1>
    %295 = arith.andi %294, %293 : vector<2x128xi1>
    %c4_i32_46 = arith.constant 4 : i32
    %296 = vector.broadcast %c4_i32_46 : i32 to vector<2x128xi32>
    %297 = arith.select %295, %296, %259 : vector<2x128xi1>, vector<2x128xi32>
    %298 = arith.select %295, %291, %261 : vector<2x128xi1>, vector<2x128xf32>
    %299 = vector.shape_cast %291 : vector<2x128xf32> to vector<1x2x128xf32>
    %cst_47 = arith.constant dense<0xFF800000> : vector<1xf32>
    %300 = vector.multi_reduction <maximumf>, %299, %cst_47 [1, 2] : vector<1x2x128xf32> to vector<1xf32>
    %301 = vector.shape_cast %300 : vector<1xf32> to vector<1x1x1xf32>
    %302 = vector.extract %301[0, 0, 0] : f32 from vector<1x1x1xf32>
    %303 = vector.broadcast %302 : f32 to vector<1x1xf32>
    %304 = vector.broadcast %303 : vector<1x1xf32> to vector<2x128xf32>
    %305 = arith.cmpf oge, %291, %304 : vector<2x128xf32>
    %c256_i32_48 = arith.constant 256 : i32
    %306 = vector.broadcast %c256_i32_48 : i32 to vector<2x128xi32>
    %307 = arith.select %305, %23, %306 : vector<2x128xi1>, vector<2x128xi32>
    %308 = vector.shape_cast %307 : vector<2x128xi32> to vector<1x2x128xi32>
    %cst_49 = arith.constant dense<2147483647> : vector<1xi32>
    %309 = vector.multi_reduction <minsi>, %308, %cst_49 [1, 2] : vector<1x2x128xi32> to vector<1xi32>
    %310 = vector.shape_cast %309 : vector<1xi32> to vector<1x1x1xi32>
    %311 = vector.extract %310[0, 0, 0] : i32 from vector<1x1x1xi32>
    %312 = vector.broadcast %311 : i32 to vector<1x1xi32>
    %313 = vector.broadcast %312 : vector<1x1xi32> to vector<2x128xi32>
    %314 = arith.cmpi eq, %23, %313 : vector<2x128xi32>
    %315 = vector.broadcast %292 : i1 to vector<2x128xi1>
    %316 = arith.andi %315, %314 : vector<2x128xi1>
    %c4_i32_50 = arith.constant 4 : i32
    %317 = vector.broadcast %c4_i32_50 : i32 to vector<2x128xi32>
    %318 = arith.select %316, %317, %297 : vector<2x128xi1>, vector<2x128xi32>
    %cst_51 = arith.constant 1.000000e+00 : f32
    %319 = vector.broadcast %cst_51 : f32 to vector<2x128xf32>
    %320 = arith.select %316, %319, %298 : vector<2x128xi1>, vector<2x128xf32>
    %321 = arith.index_cast %arg0 : i32 to index
    %c20 = arith.constant 20 : index
    %322 = memref.load %arg3[%321, %c20] : memref<2x32xf32, #tpu.memory_space<smem>>
    %323 = arith.index_cast %arg0 : i32 to index
    %c21 = arith.constant 21 : index
    %324 = memref.load %arg3[%323, %c21] : memref<2x32xf32, #tpu.memory_space<smem>>
    %325 = arith.index_cast %arg0 : i32 to index
    %c22 = arith.constant 22 : index
    %326 = memref.load %arg3[%325, %c22] : memref<2x32xf32, #tpu.memory_space<smem>>
    %327 = arith.index_cast %arg0 : i32 to index
    %c23 = arith.constant 23 : index
    %328 = memref.load %arg3[%327, %c23] : memref<2x32xf32, #tpu.memory_space<smem>>
    %329 = vector.broadcast %322 : f32 to vector<2x128xf32>
    %330 = arith.maximumf %8, %329 : vector<2x128xf32>
    %331 = vector.broadcast %324 : f32 to vector<2x128xf32>
    %332 = arith.maximumf %11, %331 : vector<2x128xf32>
    %333 = vector.broadcast %326 : f32 to vector<2x128xf32>
    %334 = arith.minimumf %14, %333 : vector<2x128xf32>
    %335 = vector.broadcast %328 : f32 to vector<2x128xf32>
    %336 = arith.minimumf %17, %335 : vector<2x128xf32>
    %337 = arith.subf %334, %330 : vector<2x128xf32>
    %cst_52 = arith.constant 0.000000e+00 : f32
    %338 = vector.broadcast %cst_52 : f32 to vector<2x128xf32>
    %339 = arith.maximumf %337, %338 : vector<2x128xf32>
    %340 = arith.subf %336, %332 : vector<2x128xf32>
    %cst_53 = arith.constant 0.000000e+00 : f32
    %341 = vector.broadcast %cst_53 : f32 to vector<2x128xf32>
    %342 = arith.maximumf %340, %341 : vector<2x128xf32>
    %343 = arith.mulf %339, %342 : vector<2x128xf32>
    %344 = arith.subf %326, %322 : f32
    %345 = arith.subf %328, %324 : f32
    %346 = arith.mulf %344, %345 : f32
    %347 = vector.broadcast %346 : f32 to vector<2x128xf32>
    %348 = arith.addf %347, %18 : vector<2x128xf32>
    %349 = arith.subf %348, %343 : vector<2x128xf32>
    %350 = arith.divf %343, %349 : vector<2x128xf32>
    %c5_i32 = arith.constant 5 : i32
    %351 = arith.cmpi sgt, %1, %c5_i32 : i32
    %352 = arith.cmpf ogt, %350, %320 : vector<2x128xf32>
    %353 = vector.broadcast %351 : i1 to vector<2x128xi1>
    %354 = arith.andi %353, %352 : vector<2x128xi1>
    %c5_i32_54 = arith.constant 5 : i32
    %355 = vector.broadcast %c5_i32_54 : i32 to vector<2x128xi32>
    %356 = arith.select %354, %355, %318 : vector<2x128xi1>, vector<2x128xi32>
    %357 = arith.select %354, %350, %320 : vector<2x128xi1>, vector<2x128xf32>
    %358 = vector.shape_cast %350 : vector<2x128xf32> to vector<1x2x128xf32>
    %cst_55 = arith.constant dense<0xFF800000> : vector<1xf32>
    %359 = vector.multi_reduction <maximumf>, %358, %cst_55 [1, 2] : vector<1x2x128xf32> to vector<1xf32>
    %360 = vector.shape_cast %359 : vector<1xf32> to vector<1x1x1xf32>
    %361 = vector.extract %360[0, 0, 0] : f32 from vector<1x1x1xf32>
    %362 = vector.broadcast %361 : f32 to vector<1x1xf32>
    %363 = vector.broadcast %362 : vector<1x1xf32> to vector<2x128xf32>
    %364 = arith.cmpf oge, %350, %363 : vector<2x128xf32>
    %c256_i32_56 = arith.constant 256 : i32
    %365 = vector.broadcast %c256_i32_56 : i32 to vector<2x128xi32>
    %366 = arith.select %364, %23, %365 : vector<2x128xi1>, vector<2x128xi32>
    %367 = vector.shape_cast %366 : vector<2x128xi32> to vector<1x2x128xi32>
    %cst_57 = arith.constant dense<2147483647> : vector<1xi32>
    %368 = vector.multi_reduction <minsi>, %367, %cst_57 [1, 2] : vector<1x2x128xi32> to vector<1xi32>
    %369 = vector.shape_cast %368 : vector<1xi32> to vector<1x1x1xi32>
    %370 = vector.extract %369[0, 0, 0] : i32 from vector<1x1x1xi32>
    %371 = vector.broadcast %370 : i32 to vector<1x1xi32>
    %372 = vector.broadcast %371 : vector<1x1xi32> to vector<2x128xi32>
    %373 = arith.cmpi eq, %23, %372 : vector<2x128xi32>
    %374 = vector.broadcast %351 : i1 to vector<2x128xi1>
    %375 = arith.andi %374, %373 : vector<2x128xi1>
    %c5_i32_58 = arith.constant 5 : i32
    %376 = vector.broadcast %c5_i32_58 : i32 to vector<2x128xi32>
    %377 = arith.select %375, %376, %356 : vector<2x128xi1>, vector<2x128xi32>
    %cst_59 = arith.constant 1.000000e+00 : f32
    %378 = vector.broadcast %cst_59 : f32 to vector<2x128xf32>
    %379 = arith.select %375, %378, %357 : vector<2x128xi1>, vector<2x128xf32>
    %380 = arith.index_cast %arg0 : i32 to index
    %c24 = arith.constant 24 : index
    %381 = memref.load %arg3[%380, %c24] : memref<2x32xf32, #tpu.memory_space<smem>>
    %382 = arith.index_cast %arg0 : i32 to index
    %c25 = arith.constant 25 : index
    %383 = memref.load %arg3[%382, %c25] : memref<2x32xf32, #tpu.memory_space<smem>>
    %384 = arith.index_cast %arg0 : i32 to index
    %c26 = arith.constant 26 : index
    %385 = memref.load %arg3[%384, %c26] : memref<2x32xf32, #tpu.memory_space<smem>>
    %386 = arith.index_cast %arg0 : i32 to index
    %c27 = arith.constant 27 : index
    %387 = memref.load %arg3[%386, %c27] : memref<2x32xf32, #tpu.memory_space<smem>>
    %388 = vector.broadcast %381 : f32 to vector<2x128xf32>
    %389 = arith.maximumf %8, %388 : vector<2x128xf32>
    %390 = vector.broadcast %383 : f32 to vector<2x128xf32>
    %391 = arith.maximumf %11, %390 : vector<2x128xf32>
    %392 = vector.broadcast %385 : f32 to vector<2x128xf32>
    %393 = arith.minimumf %14, %392 : vector<2x128xf32>
    %394 = vector.broadcast %387 : f32 to vector<2x128xf32>
    %395 = arith.minimumf %17, %394 : vector<2x128xf32>
    %396 = arith.subf %393, %389 : vector<2x128xf32>
    %cst_60 = arith.constant 0.000000e+00 : f32
    %397 = vector.broadcast %cst_60 : f32 to vector<2x128xf32>
    %398 = arith.maximumf %396, %397 : vector<2x128xf32>
    %399 = arith.subf %395, %391 : vector<2x128xf32>
    %cst_61 = arith.constant 0.000000e+00 : f32
    %400 = vector.broadcast %cst_61 : f32 to vector<2x128xf32>
    %401 = arith.maximumf %399, %400 : vector<2x128xf32>
    %402 = arith.mulf %398, %401 : vector<2x128xf32>
    %403 = arith.subf %385, %381 : f32
    %404 = arith.subf %387, %383 : f32
    %405 = arith.mulf %403, %404 : f32
    %406 = vector.broadcast %405 : f32 to vector<2x128xf32>
    %407 = arith.addf %406, %18 : vector<2x128xf32>
    %408 = arith.subf %407, %402 : vector<2x128xf32>
    %409 = arith.divf %402, %408 : vector<2x128xf32>
    %c6_i32 = arith.constant 6 : i32
    %410 = arith.cmpi sgt, %1, %c6_i32 : i32
    %411 = arith.cmpf ogt, %409, %379 : vector<2x128xf32>
    %412 = vector.broadcast %410 : i1 to vector<2x128xi1>
    %413 = arith.andi %412, %411 : vector<2x128xi1>
    %c6_i32_62 = arith.constant 6 : i32
    %414 = vector.broadcast %c6_i32_62 : i32 to vector<2x128xi32>
    %415 = arith.select %413, %414, %377 : vector<2x128xi1>, vector<2x128xi32>
    %416 = arith.select %413, %409, %379 : vector<2x128xi1>, vector<2x128xf32>
    %417 = vector.shape_cast %409 : vector<2x128xf32> to vector<1x2x128xf32>
    %cst_63 = arith.constant dense<0xFF800000> : vector<1xf32>
    %418 = vector.multi_reduction <maximumf>, %417, %cst_63 [1, 2] : vector<1x2x128xf32> to vector<1xf32>
    %419 = vector.shape_cast %418 : vector<1xf32> to vector<1x1x1xf32>
    %420 = vector.extract %419[0, 0, 0] : f32 from vector<1x1x1xf32>
    %421 = vector.broadcast %420 : f32 to vector<1x1xf32>
    %422 = vector.broadcast %421 : vector<1x1xf32> to vector<2x128xf32>
    %423 = arith.cmpf oge, %409, %422 : vector<2x128xf32>
    %c256_i32_64 = arith.constant 256 : i32
    %424 = vector.broadcast %c256_i32_64 : i32 to vector<2x128xi32>
    %425 = arith.select %423, %23, %424 : vector<2x128xi1>, vector<2x128xi32>
    %426 = vector.shape_cast %425 : vector<2x128xi32> to vector<1x2x128xi32>
    %cst_65 = arith.constant dense<2147483647> : vector<1xi32>
    %427 = vector.multi_reduction <minsi>, %426, %cst_65 [1, 2] : vector<1x2x128xi32> to vector<1xi32>
    %428 = vector.shape_cast %427 : vector<1xi32> to vector<1x1x1xi32>
    %429 = vector.extract %428[0, 0, 0] : i32 from vector<1x1x1xi32>
    %430 = vector.broadcast %429 : i32 to vector<1x1xi32>
    %431 = vector.broadcast %430 : vector<1x1xi32> to vector<2x128xi32>
    %432 = arith.cmpi eq, %23, %431 : vector<2x128xi32>
    %433 = vector.broadcast %410 : i1 to vector<2x128xi1>
    %434 = arith.andi %433, %432 : vector<2x128xi1>
    %c6_i32_66 = arith.constant 6 : i32
    %435 = vector.broadcast %c6_i32_66 : i32 to vector<2x128xi32>
    %436 = arith.select %434, %435, %415 : vector<2x128xi1>, vector<2x128xi32>
    %cst_67 = arith.constant 1.000000e+00 : f32
    %437 = vector.broadcast %cst_67 : f32 to vector<2x128xf32>
    %438 = arith.select %434, %437, %416 : vector<2x128xi1>, vector<2x128xf32>
    %439 = arith.index_cast %arg0 : i32 to index
    %c28 = arith.constant 28 : index
    %440 = memref.load %arg3[%439, %c28] : memref<2x32xf32, #tpu.memory_space<smem>>
    %441 = arith.index_cast %arg0 : i32 to index
    %c29 = arith.constant 29 : index
    %442 = memref.load %arg3[%441, %c29] : memref<2x32xf32, #tpu.memory_space<smem>>
    %443 = arith.index_cast %arg0 : i32 to index
    %c30 = arith.constant 30 : index
    %444 = memref.load %arg3[%443, %c30] : memref<2x32xf32, #tpu.memory_space<smem>>
    %445 = arith.index_cast %arg0 : i32 to index
    %c31 = arith.constant 31 : index
    %446 = memref.load %arg3[%445, %c31] : memref<2x32xf32, #tpu.memory_space<smem>>
    %447 = vector.broadcast %440 : f32 to vector<2x128xf32>
    %448 = arith.maximumf %8, %447 : vector<2x128xf32>
    %449 = vector.broadcast %442 : f32 to vector<2x128xf32>
    %450 = arith.maximumf %11, %449 : vector<2x128xf32>
    %451 = vector.broadcast %444 : f32 to vector<2x128xf32>
    %452 = arith.minimumf %14, %451 : vector<2x128xf32>
    %453 = vector.broadcast %446 : f32 to vector<2x128xf32>
    %454 = arith.minimumf %17, %453 : vector<2x128xf32>
    %455 = arith.subf %452, %448 : vector<2x128xf32>
    %cst_68 = arith.constant 0.000000e+00 : f32
    %456 = vector.broadcast %cst_68 : f32 to vector<2x128xf32>
    %457 = arith.maximumf %455, %456 : vector<2x128xf32>
    %458 = arith.subf %454, %450 : vector<2x128xf32>
    %cst_69 = arith.constant 0.000000e+00 : f32
    %459 = vector.broadcast %cst_69 : f32 to vector<2x128xf32>
    %460 = arith.maximumf %458, %459 : vector<2x128xf32>
    %461 = arith.mulf %457, %460 : vector<2x128xf32>
    %462 = arith.subf %444, %440 : f32
    %463 = arith.subf %446, %442 : f32
    %464 = arith.mulf %462, %463 : f32
    %465 = vector.broadcast %464 : f32 to vector<2x128xf32>
    %466 = arith.addf %465, %18 : vector<2x128xf32>
    %467 = arith.subf %466, %461 : vector<2x128xf32>
    %468 = arith.divf %461, %467 : vector<2x128xf32>
    %c7_i32 = arith.constant 7 : i32
    %469 = arith.cmpi sgt, %1, %c7_i32 : i32
    %470 = arith.cmpf ogt, %468, %438 : vector<2x128xf32>
    %471 = vector.broadcast %469 : i1 to vector<2x128xi1>
    %472 = arith.andi %471, %470 : vector<2x128xi1>
    %c7_i32_70 = arith.constant 7 : i32
    %473 = vector.broadcast %c7_i32_70 : i32 to vector<2x128xi32>
    %474 = arith.select %472, %473, %436 : vector<2x128xi1>, vector<2x128xi32>
    %475 = arith.select %472, %468, %438 : vector<2x128xi1>, vector<2x128xf32>
    %476 = vector.shape_cast %468 : vector<2x128xf32> to vector<1x2x128xf32>
    %cst_71 = arith.constant dense<0xFF800000> : vector<1xf32>
    %477 = vector.multi_reduction <maximumf>, %476, %cst_71 [1, 2] : vector<1x2x128xf32> to vector<1xf32>
    %478 = vector.shape_cast %477 : vector<1xf32> to vector<1x1x1xf32>
    %479 = vector.extract %478[0, 0, 0] : f32 from vector<1x1x1xf32>
    %480 = vector.broadcast %479 : f32 to vector<1x1xf32>
    %481 = vector.broadcast %480 : vector<1x1xf32> to vector<2x128xf32>
    %482 = arith.cmpf oge, %468, %481 : vector<2x128xf32>
    %c256_i32_72 = arith.constant 256 : i32
    %483 = vector.broadcast %c256_i32_72 : i32 to vector<2x128xi32>
    %484 = arith.select %482, %23, %483 : vector<2x128xi1>, vector<2x128xi32>
    %485 = vector.shape_cast %484 : vector<2x128xi32> to vector<1x2x128xi32>
    %cst_73 = arith.constant dense<2147483647> : vector<1xi32>
    %486 = vector.multi_reduction <minsi>, %485, %cst_73 [1, 2] : vector<1x2x128xi32> to vector<1xi32>
    %487 = vector.shape_cast %486 : vector<1xi32> to vector<1x1x1xi32>
    %488 = vector.extract %487[0, 0, 0] : i32 from vector<1x1x1xi32>
    %489 = vector.broadcast %488 : i32 to vector<1x1xi32>
    %490 = vector.broadcast %489 : vector<1x1xi32> to vector<2x128xi32>
    %491 = arith.cmpi eq, %23, %490 : vector<2x128xi32>
    %492 = vector.broadcast %469 : i1 to vector<2x128xi1>
    %493 = arith.andi %492, %491 : vector<2x128xi1>
    %c7_i32_74 = arith.constant 7 : i32
    %494 = vector.broadcast %c7_i32_74 : i32 to vector<2x128xi32>
    %495 = arith.select %493, %494, %474 : vector<2x128xi1>, vector<2x128xi32>
    %cst_75 = arith.constant 1.000000e+00 : f32
    %496 = vector.broadcast %cst_75 : f32 to vector<2x128xf32>
    %497 = arith.select %493, %496, %475 : vector<2x128xi1>, vector<2x128xf32>
    %c0_i32_76 = arith.constant 0 : i32
    %498 = vector.broadcast %c0_i32_76 : i32 to vector<2x128xi32>
    %cst_77 = arith.constant 0.000000e+00 : f32
    %499 = vector.broadcast %cst_77 : f32 to vector<2x128xf32>
    %cst_78 = arith.constant 0.000000e+00 : f32
    %500 = vector.broadcast %cst_78 : f32 to vector<2x128xf32>
    %cst_79 = arith.constant 0.000000e+00 : f32
    %501 = vector.broadcast %cst_79 : f32 to vector<2x128xf32>
    %cst_80 = arith.constant 0.000000e+00 : f32
    %502 = vector.broadcast %cst_80 : f32 to vector<2x128xf32>
    %c0_i32_81 = arith.constant 0 : i32
    %503 = vector.broadcast %c0_i32_81 : i32 to vector<2x128xi32>
    %504 = arith.cmpi eq, %495, %503 : vector<2x128xi32>
    %505 = arith.index_cast %arg0 : i32 to index
    %c0_82 = arith.constant 0 : index
    %506 = memref.load %arg2[%505, %c0_82] : memref<2x8xi32, #tpu.memory_space<smem>>
    %507 = vector.broadcast %506 : i32 to vector<2x128xi32>
    %508 = arith.select %504, %507, %498 : vector<2x128xi1>, vector<2x128xi32>
    %509 = vector.broadcast %27 : f32 to vector<2x128xf32>
    %510 = arith.select %504, %509, %499 : vector<2x128xi1>, vector<2x128xf32>
    %511 = vector.broadcast %29 : f32 to vector<2x128xf32>
    %512 = arith.select %504, %511, %500 : vector<2x128xi1>, vector<2x128xf32>
    %513 = vector.broadcast %31 : f32 to vector<2x128xf32>
    %514 = arith.select %504, %513, %501 : vector<2x128xi1>, vector<2x128xf32>
    %515 = vector.broadcast %33 : f32 to vector<2x128xf32>
    %516 = arith.select %504, %515, %502 : vector<2x128xi1>, vector<2x128xf32>
    %c1_i32_83 = arith.constant 1 : i32
    %517 = vector.broadcast %c1_i32_83 : i32 to vector<2x128xi32>
    %518 = arith.cmpi eq, %495, %517 : vector<2x128xi32>
    %519 = arith.index_cast %arg0 : i32 to index
    %c1_84 = arith.constant 1 : index
    %520 = memref.load %arg2[%519, %c1_84] : memref<2x8xi32, #tpu.memory_space<smem>>
    %521 = vector.broadcast %520 : i32 to vector<2x128xi32>
    %522 = arith.select %518, %521, %508 : vector<2x128xi1>, vector<2x128xi32>
    %523 = vector.broadcast %86 : f32 to vector<2x128xf32>
    %524 = arith.select %518, %523, %510 : vector<2x128xi1>, vector<2x128xf32>
    %525 = vector.broadcast %88 : f32 to vector<2x128xf32>
    %526 = arith.select %518, %525, %512 : vector<2x128xi1>, vector<2x128xf32>
    %527 = vector.broadcast %90 : f32 to vector<2x128xf32>
    %528 = arith.select %518, %527, %514 : vector<2x128xi1>, vector<2x128xf32>
    %529 = vector.broadcast %92 : f32 to vector<2x128xf32>
    %530 = arith.select %518, %529, %516 : vector<2x128xi1>, vector<2x128xf32>
    %c2_i32_85 = arith.constant 2 : i32
    %531 = vector.broadcast %c2_i32_85 : i32 to vector<2x128xi32>
    %532 = arith.cmpi eq, %495, %531 : vector<2x128xi32>
    %533 = arith.index_cast %arg0 : i32 to index
    %c2_86 = arith.constant 2 : index
    %534 = memref.load %arg2[%533, %c2_86] : memref<2x8xi32, #tpu.memory_space<smem>>
    %535 = vector.broadcast %534 : i32 to vector<2x128xi32>
    %536 = arith.select %532, %535, %522 : vector<2x128xi1>, vector<2x128xi32>
    %537 = vector.broadcast %145 : f32 to vector<2x128xf32>
    %538 = arith.select %532, %537, %524 : vector<2x128xi1>, vector<2x128xf32>
    %539 = vector.broadcast %147 : f32 to vector<2x128xf32>
    %540 = arith.select %532, %539, %526 : vector<2x128xi1>, vector<2x128xf32>
    %541 = vector.broadcast %149 : f32 to vector<2x128xf32>
    %542 = arith.select %532, %541, %528 : vector<2x128xi1>, vector<2x128xf32>
    %543 = vector.broadcast %151 : f32 to vector<2x128xf32>
    %544 = arith.select %532, %543, %530 : vector<2x128xi1>, vector<2x128xf32>
    %c3_i32_87 = arith.constant 3 : i32
    %545 = vector.broadcast %c3_i32_87 : i32 to vector<2x128xi32>
    %546 = arith.cmpi eq, %495, %545 : vector<2x128xi32>
    %547 = arith.index_cast %arg0 : i32 to index
    %c3_88 = arith.constant 3 : index
    %548 = memref.load %arg2[%547, %c3_88] : memref<2x8xi32, #tpu.memory_space<smem>>
    %549 = vector.broadcast %548 : i32 to vector<2x128xi32>
    %550 = arith.select %546, %549, %536 : vector<2x128xi1>, vector<2x128xi32>
    %551 = vector.broadcast %204 : f32 to vector<2x128xf32>
    %552 = arith.select %546, %551, %538 : vector<2x128xi1>, vector<2x128xf32>
    %553 = vector.broadcast %206 : f32 to vector<2x128xf32>
    %554 = arith.select %546, %553, %540 : vector<2x128xi1>, vector<2x128xf32>
    %555 = vector.broadcast %208 : f32 to vector<2x128xf32>
    %556 = arith.select %546, %555, %542 : vector<2x128xi1>, vector<2x128xf32>
    %557 = vector.broadcast %210 : f32 to vector<2x128xf32>
    %558 = arith.select %546, %557, %544 : vector<2x128xi1>, vector<2x128xf32>
    %c4_i32_89 = arith.constant 4 : i32
    %559 = vector.broadcast %c4_i32_89 : i32 to vector<2x128xi32>
    %560 = arith.cmpi eq, %495, %559 : vector<2x128xi32>
    %561 = arith.index_cast %arg0 : i32 to index
    %c4_90 = arith.constant 4 : index
    %562 = memref.load %arg2[%561, %c4_90] : memref<2x8xi32, #tpu.memory_space<smem>>
    %563 = vector.broadcast %562 : i32 to vector<2x128xi32>
    %564 = arith.select %560, %563, %550 : vector<2x128xi1>, vector<2x128xi32>
    %565 = vector.broadcast %263 : f32 to vector<2x128xf32>
    %566 = arith.select %560, %565, %552 : vector<2x128xi1>, vector<2x128xf32>
    %567 = vector.broadcast %265 : f32 to vector<2x128xf32>
    %568 = arith.select %560, %567, %554 : vector<2x128xi1>, vector<2x128xf32>
    %569 = vector.broadcast %267 : f32 to vector<2x128xf32>
    %570 = arith.select %560, %569, %556 : vector<2x128xi1>, vector<2x128xf32>
    %571 = vector.broadcast %269 : f32 to vector<2x128xf32>
    %572 = arith.select %560, %571, %558 : vector<2x128xi1>, vector<2x128xf32>
    %c5_i32_91 = arith.constant 5 : i32
    %573 = vector.broadcast %c5_i32_91 : i32 to vector<2x128xi32>
    %574 = arith.cmpi eq, %495, %573 : vector<2x128xi32>
    %575 = arith.index_cast %arg0 : i32 to index
    %c5_92 = arith.constant 5 : index
    %576 = memref.load %arg2[%575, %c5_92] : memref<2x8xi32, #tpu.memory_space<smem>>
    %577 = vector.broadcast %576 : i32 to vector<2x128xi32>
    %578 = arith.select %574, %577, %564 : vector<2x128xi1>, vector<2x128xi32>
    %579 = vector.broadcast %322 : f32 to vector<2x128xf32>
    %580 = arith.select %574, %579, %566 : vector<2x128xi1>, vector<2x128xf32>
    %581 = vector.broadcast %324 : f32 to vector<2x128xf32>
    %582 = arith.select %574, %581, %568 : vector<2x128xi1>, vector<2x128xf32>
    %583 = vector.broadcast %326 : f32 to vector<2x128xf32>
    %584 = arith.select %574, %583, %570 : vector<2x128xi1>, vector<2x128xf32>
    %585 = vector.broadcast %328 : f32 to vector<2x128xf32>
    %586 = arith.select %574, %585, %572 : vector<2x128xi1>, vector<2x128xf32>
    %c6_i32_93 = arith.constant 6 : i32
    %587 = vector.broadcast %c6_i32_93 : i32 to vector<2x128xi32>
    %588 = arith.cmpi eq, %495, %587 : vector<2x128xi32>
    %589 = arith.index_cast %arg0 : i32 to index
    %c6_94 = arith.constant 6 : index
    %590 = memref.load %arg2[%589, %c6_94] : memref<2x8xi32, #tpu.memory_space<smem>>
    %591 = vector.broadcast %590 : i32 to vector<2x128xi32>
    %592 = arith.select %588, %591, %578 : vector<2x128xi1>, vector<2x128xi32>
    %593 = vector.broadcast %381 : f32 to vector<2x128xf32>
    %594 = arith.select %588, %593, %580 : vector<2x128xi1>, vector<2x128xf32>
    %595 = vector.broadcast %383 : f32 to vector<2x128xf32>
    %596 = arith.select %588, %595, %582 : vector<2x128xi1>, vector<2x128xf32>
    %597 = vector.broadcast %385 : f32 to vector<2x128xf32>
    %598 = arith.select %588, %597, %584 : vector<2x128xi1>, vector<2x128xf32>
    %599 = vector.broadcast %387 : f32 to vector<2x128xf32>
    %600 = arith.select %588, %599, %586 : vector<2x128xi1>, vector<2x128xf32>
    %c7_i32_95 = arith.constant 7 : i32
    %601 = vector.broadcast %c7_i32_95 : i32 to vector<2x128xi32>
    %602 = arith.cmpi eq, %495, %601 : vector<2x128xi32>
    %603 = arith.index_cast %arg0 : i32 to index
    %c7_96 = arith.constant 7 : index
    %604 = memref.load %arg2[%603, %c7_96] : memref<2x8xi32, #tpu.memory_space<smem>>
    %605 = vector.broadcast %604 : i32 to vector<2x128xi32>
    %606 = arith.select %602, %605, %592 : vector<2x128xi1>, vector<2x128xi32>
    %607 = vector.broadcast %440 : f32 to vector<2x128xf32>
    %608 = arith.select %602, %607, %594 : vector<2x128xi1>, vector<2x128xf32>
    %609 = vector.broadcast %442 : f32 to vector<2x128xf32>
    %610 = arith.select %602, %609, %596 : vector<2x128xi1>, vector<2x128xf32>
    %611 = vector.broadcast %444 : f32 to vector<2x128xf32>
    %612 = arith.select %602, %611, %598 : vector<2x128xi1>, vector<2x128xf32>
    %613 = vector.broadcast %446 : f32 to vector<2x128xf32>
    %614 = arith.select %602, %613, %600 : vector<2x128xi1>, vector<2x128xf32>
    %cst_97 = arith.constant 5.000000e-01 : f32
    %615 = vector.broadcast %cst_97 : f32 to vector<2x128xf32>
    %616 = arith.cmpf olt, %497, %615 : vector<2x128xf32>
    %c0_i32_98 = arith.constant 0 : i32
    %617 = vector.broadcast %c0_i32_98 : i32 to vector<2x128xi32>
    %618 = arith.select %616, %617, %606 : vector<2x128xi1>, vector<2x128xi32>
    %c0_i32_99 = arith.constant 0 : i32
    %619 = vector.broadcast %c0_i32_99 : i32 to vector<2x128xi32>
    %620 = arith.cmpi ne, %618, %619 : vector<2x128xi32>
    %621 = arith.extui %620 : vector<2x128xi1> to vector<2x128xi32>
    %622 = arith.sitofp %621 : vector<2x128xi32> to vector<2x128xf32>
    %623 = vector.shape_cast %622 : vector<2x128xf32> to vector<1x2x128xf32>
    %cst_100 = arith.constant dense<0.000000e+00> : vector<1xf32>
    %624 = vector.multi_reduction <add>, %623, %cst_100 [1, 2] : vector<1x2x128xf32> to vector<1xf32>
    %625 = vector.shape_cast %624 : vector<1xf32> to vector<1x1x1xf32>
    %626 = vector.extract %625[0, 0, 0] : f32 from vector<1x1x1xf32>
    %627 = vector.broadcast %626 : f32 to vector<1x1xf32>
    %628 = arith.addf %608, %612 : vector<2x128xf32>
    %cst_101 = arith.constant 5.000000e-01 : f32
    %629 = vector.broadcast %cst_101 : f32 to vector<2x128xf32>
    %630 = arith.mulf %629, %628 : vector<2x128xf32>
    %631 = arith.addf %610, %614 : vector<2x128xf32>
    %cst_102 = arith.constant 5.000000e-01 : f32
    %632 = vector.broadcast %cst_102 : f32 to vector<2x128xf32>
    %633 = arith.mulf %632, %631 : vector<2x128xf32>
    %634 = arith.subf %612, %608 : vector<2x128xf32>
    %635 = arith.subf %614, %610 : vector<2x128xf32>
    %cst_103 = arith.constant 0.000000e+00 : f32
    %636 = vector.broadcast %cst_103 : f32 to vector<2x128xf32>
    %637 = arith.cmpf ogt, %634, %636 : vector<2x128xf32>
    %638 = arith.select %637, %634, %4 : vector<2x128xi1>, vector<2x128xf32>
    %cst_104 = arith.constant 0.000000e+00 : f32
    %639 = vector.broadcast %cst_104 : f32 to vector<2x128xf32>
    %640 = arith.cmpf ogt, %635, %639 : vector<2x128xf32>
    %641 = arith.select %640, %635, %5 : vector<2x128xi1>, vector<2x128xf32>
    %642 = tpu.reciprocal %4 {approx = true} : vector<2x128xf32> -> vector<2x128xf32>
    %643 = tpu.reciprocal %5 {approx = true} : vector<2x128xf32> -> vector<2x128xf32>
    %644 = arith.subf %630, %2 : vector<2x128xf32>
    %cst_105 = arith.constant 1.000000e+01 : f32
    %645 = vector.broadcast %cst_105 : f32 to vector<2x128xf32>
    %646 = arith.mulf %642, %645 : vector<2x128xf32>
    %647 = arith.mulf %644, %646 : vector<2x128xf32>
    %648 = arith.subf %633, %3 : vector<2x128xf32>
    %cst_106 = arith.constant 1.000000e+01 : f32
    %649 = vector.broadcast %cst_106 : f32 to vector<2x128xf32>
    %650 = arith.mulf %643, %649 : vector<2x128xf32>
    %651 = arith.mulf %648, %650 : vector<2x128xf32>
    %652 = arith.mulf %638, %642 : vector<2x128xf32>
    %653 = math.log %652 : vector<2x128xf32>
    %cst_107 = arith.constant 5.000000e+00 : f32
    %654 = vector.broadcast %cst_107 : f32 to vector<2x128xf32>
    %655 = arith.mulf %653, %654 : vector<2x128xf32>
    %656 = arith.mulf %641, %643 : vector<2x128xf32>
    %657 = math.log %656 : vector<2x128xf32>
    %cst_108 = arith.constant 5.000000e+00 : f32
    %658 = vector.broadcast %cst_108 : f32 to vector<2x128xf32>
    %659 = arith.mulf %657, %658 : vector<2x128xf32>
    %c0_109 = arith.constant 0 : index
    %c0_110 = arith.constant 0 : index
    %c0_111 = arith.constant 0 : index
    %660 = vector.load %arg5[%c0_109, %c0_110, %c0_111] : memref<1x16x128xf32, #tpu.memory_space<vmem>>, vector<1x2x128xf32>
    %661 = vector.shape_cast %660 : vector<1x2x128xf32> to vector<2x128xf32>
    %c0_112 = arith.constant 0 : index
    %c2_113 = arith.constant 2 : index
    %c0_114 = arith.constant 0 : index
    %662 = vector.load %arg5[%c0_112, %c2_113, %c0_114] : memref<1x16x128xf32, #tpu.memory_space<vmem>>, vector<1x2x128xf32>
    %663 = vector.shape_cast %662 : vector<1x2x128xf32> to vector<2x128xf32>
    %c0_115 = arith.constant 0 : index
    %c4_116 = arith.constant 4 : index
    %c0_117 = arith.constant 0 : index
    %664 = vector.load %arg5[%c0_115, %c4_116, %c0_117] : memref<1x16x128xf32, #tpu.memory_space<vmem>>, vector<1x2x128xf32>
    %665 = vector.shape_cast %664 : vector<1x2x128xf32> to vector<2x128xf32>
    %c0_118 = arith.constant 0 : index
    %c6_119 = arith.constant 6 : index
    %c0_120 = arith.constant 0 : index
    %666 = vector.load %arg5[%c0_118, %c6_119, %c0_120] : memref<1x16x128xf32, #tpu.memory_space<vmem>>, vector<1x2x128xf32>
    %667 = vector.shape_cast %666 : vector<1x2x128xf32> to vector<2x128xf32>
    %668 = arith.subf %661, %647 : vector<2x128xf32>
    %669 = math.absf %668 : vector<2x128xf32>
    %670 = arith.subf %663, %651 : vector<2x128xf32>
    %671 = math.absf %670 : vector<2x128xf32>
    %672 = arith.addf %669, %671 : vector<2x128xf32>
    %673 = arith.subf %665, %655 : vector<2x128xf32>
    %674 = math.absf %673 : vector<2x128xf32>
    %675 = arith.addf %672, %674 : vector<2x128xf32>
    %676 = arith.subf %667, %659 : vector<2x128xf32>
    %677 = math.absf %676 : vector<2x128xf32>
    %678 = arith.addf %675, %677 : vector<2x128xf32>
    %679 = arith.mulf %678, %622 : vector<2x128xf32>
    %680 = vector.shape_cast %679 : vector<2x128xf32> to vector<1x2x128xf32>
    %cst_121 = arith.constant dense<0.000000e+00> : vector<1xf32>
    %681 = vector.multi_reduction <add>, %680, %cst_121 [1, 2] : vector<1x2x128xf32> to vector<1xf32>
    %682 = vector.shape_cast %681 : vector<1xf32> to vector<1x1x1xf32>
    %683 = vector.extract %682[0, 0, 0] : f32 from vector<1x1x1xf32>
    %684 = vector.broadcast %683 : f32 to vector<1x1xf32>
    %c0_122 = arith.constant 0 : index
    %c8_123 = arith.constant 8 : index
    %c0_124 = arith.constant 0 : index
    %685 = vector.load %arg5[%c0_122, %c8_123, %c0_124] : memref<1x16x128xf32, #tpu.memory_space<vmem>>, vector<1x2x128xf32>
    %686 = vector.shape_cast %685 : vector<1x2x128xf32> to vector<2x128xf32>
    %c0_125 = arith.constant 0 : index
    %c10_126 = arith.constant 10 : index
    %c0_127 = arith.constant 0 : index
    %687 = vector.load %arg5[%c0_125, %c10_126, %c0_127] : memref<1x16x128xf32, #tpu.memory_space<vmem>>, vector<1x2x128xf32>
    %688 = vector.shape_cast %687 : vector<1x2x128xf32> to vector<2x128xf32>
    %c0_128 = arith.constant 0 : index
    %c12_129 = arith.constant 12 : index
    %c0_130 = arith.constant 0 : index
    %689 = vector.load %arg5[%c0_128, %c12_129, %c0_130] : memref<1x16x128xf32, #tpu.memory_space<vmem>>, vector<1x2x128xf32>
    %690 = vector.shape_cast %689 : vector<1x2x128xf32> to vector<2x128xf32>
    %c0_131 = arith.constant 0 : index
    %c14_132 = arith.constant 14 : index
    %c0_133 = arith.constant 0 : index
    %691 = vector.load %arg5[%c0_131, %c14_132, %c0_133] : memref<1x16x128xf32, #tpu.memory_space<vmem>>, vector<1x2x128xf32>
    %692 = vector.shape_cast %691 : vector<1x2x128xf32> to vector<2x128xf32>
    %693 = arith.maximumf %686, %688 : vector<2x128xf32>
    %694 = arith.maximumf %693, %690 : vector<2x128xf32>
    %695 = arith.maximumf %694, %692 : vector<2x128xf32>
    %cst_134 = arith.constant 0.000000e+00 : f32
    %696 = vector.broadcast %cst_134 : f32 to vector<2x128xf32>
    %cst_135 = arith.constant 0.000000e+00 : f32
    %697 = vector.broadcast %cst_135 : f32 to vector<2x128xf32>
    %698 = arith.subf %686, %695 : vector<2x128xf32>
    %699 = math.exp %698 : vector<2x128xf32>
    %700 = arith.addf %696, %699 : vector<2x128xf32>
    %c0_i32_136 = arith.constant 0 : i32
    %701 = vector.broadcast %c0_i32_136 : i32 to vector<2x128xi32>
    %702 = arith.cmpi eq, %618, %701 : vector<2x128xi32>
    %703 = arith.select %702, %686, %697 : vector<2x128xi1>, vector<2x128xf32>
    %704 = arith.subf %688, %695 : vector<2x128xf32>
    %705 = math.exp %704 : vector<2x128xf32>
    %706 = arith.addf %700, %705 : vector<2x128xf32>
    %c1_i32_137 = arith.constant 1 : i32
    %707 = vector.broadcast %c1_i32_137 : i32 to vector<2x128xi32>
    %708 = arith.cmpi eq, %618, %707 : vector<2x128xi32>
    %709 = arith.select %708, %688, %703 : vector<2x128xi1>, vector<2x128xf32>
    %710 = arith.subf %690, %695 : vector<2x128xf32>
    %711 = math.exp %710 : vector<2x128xf32>
    %712 = arith.addf %706, %711 : vector<2x128xf32>
    %c2_i32_138 = arith.constant 2 : i32
    %713 = vector.broadcast %c2_i32_138 : i32 to vector<2x128xi32>
    %714 = arith.cmpi eq, %618, %713 : vector<2x128xi32>
    %715 = arith.select %714, %690, %709 : vector<2x128xi1>, vector<2x128xf32>
    %716 = arith.subf %692, %695 : vector<2x128xf32>
    %717 = math.exp %716 : vector<2x128xf32>
    %718 = arith.addf %712, %717 : vector<2x128xf32>
    %c3_i32_139 = arith.constant 3 : i32
    %719 = vector.broadcast %c3_i32_139 : i32 to vector<2x128xi32>
    %720 = arith.cmpi eq, %618, %719 : vector<2x128xi32>
    %721 = arith.select %720, %692, %715 : vector<2x128xi1>, vector<2x128xf32>
    %722 = math.log %718 : vector<2x128xf32>
    %723 = arith.addf %695, %722 : vector<2x128xf32>
    %724 = arith.subf %723, %721 : vector<2x128xf32>
    %725 = arith.mulf %724, %622 : vector<2x128xf32>
    %726 = vector.shape_cast %725 : vector<2x128xf32> to vector<1x2x128xf32>
    %cst_140 = arith.constant dense<0.000000e+00> : vector<1xf32>
    %727 = vector.multi_reduction <add>, %726, %cst_140 [1, 2] : vector<1x2x128xf32> to vector<1xf32>
    %728 = vector.shape_cast %727 : vector<1xf32> to vector<1x1x1xf32>
    %729 = vector.extract %728[0, 0, 0] : f32 from vector<1x1x1xf32>
    %730 = vector.broadcast %729 : f32 to vector<1x1xf32>
    %cst_141 = arith.constant 0.000000e+00 : f32
    %731 = vector.broadcast %cst_141 : f32 to vector<2x128xf32>
    %732 = arith.select %620, %731, %724 : vector<2x128xi1>, vector<2x128xf32>
    %cst_142 = arith.constant 3.000000e+00 : f32
    %733 = vector.broadcast %cst_142 : f32 to vector<1x1xf32>
    %734 = arith.mulf %733, %627 : vector<1x1xf32>
    %cst_143 = arith.constant 2.560000e+02 : f32
    %735 = vector.broadcast %cst_143 : f32 to vector<1x1xf32>
    %736 = arith.minimumf %734, %735 : vector<1x1xf32>
    %cst_144 = arith.constant 0.000000e+00 : f32
    %737 = vector.broadcast %cst_144 : f32 to vector<1x1xf32>
    %738 = vector.shape_cast %732 : vector<2x128xf32> to vector<1x2x128xf32>
    %cst_145 = arith.constant dense<0xFF800000> : vector<1xf32>
    %739 = vector.multi_reduction <maximumf>, %738, %cst_145 [1, 2] : vector<1x2x128xf32> to vector<1xf32>
    %740 = vector.shape_cast %739 : vector<1xf32> to vector<1x1x1xf32>
    %741 = vector.extract %740[0, 0, 0] : f32 from vector<1x1x1xf32>
    %742 = vector.broadcast %741 : f32 to vector<1x1xf32>
    %c0_i32_146 = arith.constant 0 : i32
    %743 = arith.addf %737, %742 : vector<1x1xf32>
    %cst_147 = arith.constant 5.000000e-01 : f32
    %744 = vector.broadcast %cst_147 : f32 to vector<1x1xf32>
    %745 = arith.mulf %744, %743 : vector<1x1xf32>
    %746 = vector.broadcast %745 : vector<1x1xf32> to vector<2x128xf32>
    %747 = arith.cmpf ogt, %732, %746 : vector<2x128xf32>
    %748 = arith.extui %747 : vector<2x128xi1> to vector<2x128xi32>
    %749 = arith.sitofp %748 : vector<2x128xi32> to vector<2x128xf32>
    %750 = vector.shape_cast %749 : vector<2x128xf32> to vector<1x2x128xf32>
    %cst_148 = arith.constant dense<0.000000e+00> : vector<1xf32>
    %751 = vector.multi_reduction <add>, %750, %cst_148 [1, 2] : vector<1x2x128xf32> to vector<1xf32>
    %752 = vector.shape_cast %751 : vector<1xf32> to vector<1x1x1xf32>
    %753 = vector.extract %752[0, 0, 0] : f32 from vector<1x1x1xf32>
    %754 = vector.broadcast %753 : f32 to vector<1x1xf32>
    %755 = arith.cmpf oge, %754, %736 : vector<1x1xf32>
    %756 = arith.select %755, %745, %737 : vector<1x1xi1>, vector<1x1xf32>
    %757 = arith.select %755, %742, %745 : vector<1x1xi1>, vector<1x1xf32>
    %c1_i32_149 = arith.constant 1 : i32
    %758 = arith.addf %756, %757 : vector<1x1xf32>
    %cst_150 = arith.constant 5.000000e-01 : f32
    %759 = vector.broadcast %cst_150 : f32 to vector<1x1xf32>
    %760 = arith.mulf %759, %758 : vector<1x1xf32>
    %761 = vector.broadcast %760 : vector<1x1xf32> to vector<2x128xf32>
    %762 = arith.cmpf ogt, %732, %761 : vector<2x128xf32>
    %763 = arith.extui %762 : vector<2x128xi1> to vector<2x128xi32>
    %764 = arith.sitofp %763 : vector<2x128xi32> to vector<2x128xf32>
    %765 = vector.shape_cast %764 : vector<2x128xf32> to vector<1x2x128xf32>
    %cst_151 = arith.constant dense<0.000000e+00> : vector<1xf32>
    %766 = vector.multi_reduction <add>, %765, %cst_151 [1, 2] : vector<1x2x128xf32> to vector<1xf32>
    %767 = vector.shape_cast %766 : vector<1xf32> to vector<1x1x1xf32>
    %768 = vector.extract %767[0, 0, 0] : f32 from vector<1x1x1xf32>
    %769 = vector.broadcast %768 : f32 to vector<1x1xf32>
    %770 = arith.cmpf oge, %769, %736 : vector<1x1xf32>
    %771 = arith.select %770, %760, %756 : vector<1x1xi1>, vector<1x1xf32>
    %772 = arith.select %770, %757, %760 : vector<1x1xi1>, vector<1x1xf32>
    %c2_i32_152 = arith.constant 2 : i32
    %773 = arith.addf %771, %772 : vector<1x1xf32>
    %cst_153 = arith.constant 5.000000e-01 : f32
    %774 = vector.broadcast %cst_153 : f32 to vector<1x1xf32>
    %775 = arith.mulf %774, %773 : vector<1x1xf32>
    %776 = vector.broadcast %775 : vector<1x1xf32> to vector<2x128xf32>
    %777 = arith.cmpf ogt, %732, %776 : vector<2x128xf32>
    %778 = arith.extui %777 : vector<2x128xi1> to vector<2x128xi32>
    %779 = arith.sitofp %778 : vector<2x128xi32> to vector<2x128xf32>
    %780 = vector.shape_cast %779 : vector<2x128xf32> to vector<1x2x128xf32>
    %cst_154 = arith.constant dense<0.000000e+00> : vector<1xf32>
    %781 = vector.multi_reduction <add>, %780, %cst_154 [1, 2] : vector<1x2x128xf32> to vector<1xf32>
    %782 = vector.shape_cast %781 : vector<1xf32> to vector<1x1x1xf32>
    %783 = vector.extract %782[0, 0, 0] : f32 from vector<1x1x1xf32>
    %784 = vector.broadcast %783 : f32 to vector<1x1xf32>
    %785 = arith.cmpf oge, %784, %736 : vector<1x1xf32>
    %786 = arith.select %785, %775, %771 : vector<1x1xi1>, vector<1x1xf32>
    %787 = arith.select %785, %772, %775 : vector<1x1xi1>, vector<1x1xf32>
    %c3_i32_155 = arith.constant 3 : i32
    %788 = arith.addf %786, %787 : vector<1x1xf32>
    %cst_156 = arith.constant 5.000000e-01 : f32
    %789 = vector.broadcast %cst_156 : f32 to vector<1x1xf32>
    %790 = arith.mulf %789, %788 : vector<1x1xf32>
    %791 = vector.broadcast %790 : vector<1x1xf32> to vector<2x128xf32>
    %792 = arith.cmpf ogt, %732, %791 : vector<2x128xf32>
    %793 = arith.extui %792 : vector<2x128xi1> to vector<2x128xi32>
    %794 = arith.sitofp %793 : vector<2x128xi32> to vector<2x128xf32>
    %795 = vector.shape_cast %794 : vector<2x128xf32> to vector<1x2x128xf32>
    %cst_157 = arith.constant dense<0.000000e+00> : vector<1xf32>
    %796 = vector.multi_reduction <add>, %795, %cst_157 [1, 2] : vector<1x2x128xf32> to vector<1xf32>
    %797 = vector.shape_cast %796 : vector<1xf32> to vector<1x1x1xf32>
    %798 = vector.extract %797[0, 0, 0] : f32 from vector<1x1x1xf32>
    %799 = vector.broadcast %798 : f32 to vector<1x1xf32>
    %800 = arith.cmpf oge, %799, %736 : vector<1x1xf32>
    %801 = arith.select %800, %790, %786 : vector<1x1xi1>, vector<1x1xf32>
    %802 = arith.select %800, %787, %790 : vector<1x1xi1>, vector<1x1xf32>
    %c4_i32_158 = arith.constant 4 : i32
    %803 = arith.addf %801, %802 : vector<1x1xf32>
    %cst_159 = arith.constant 5.000000e-01 : f32
    %804 = vector.broadcast %cst_159 : f32 to vector<1x1xf32>
    %805 = arith.mulf %804, %803 : vector<1x1xf32>
    %806 = vector.broadcast %805 : vector<1x1xf32> to vector<2x128xf32>
    %807 = arith.cmpf ogt, %732, %806 : vector<2x128xf32>
    %808 = arith.extui %807 : vector<2x128xi1> to vector<2x128xi32>
    %809 = arith.sitofp %808 : vector<2x128xi32> to vector<2x128xf32>
    %810 = vector.shape_cast %809 : vector<2x128xf32> to vector<1x2x128xf32>
    %cst_160 = arith.constant dense<0.000000e+00> : vector<1xf32>
    %811 = vector.multi_reduction <add>, %810, %cst_160 [1, 2] : vector<1x2x128xf32> to vector<1xf32>
    %812 = vector.shape_cast %811 : vector<1xf32> to vector<1x1x1xf32>
    %813 = vector.extract %812[0, 0, 0] : f32 from vector<1x1x1xf32>
    %814 = vector.broadcast %813 : f32 to vector<1x1xf32>
    %815 = arith.cmpf oge, %814, %736 : vector<1x1xf32>
    %816 = arith.select %815, %805, %801 : vector<1x1xi1>, vector<1x1xf32>
    %817 = arith.select %815, %802, %805 : vector<1x1xi1>, vector<1x1xf32>
    %c5_i32_161 = arith.constant 5 : i32
    %818 = arith.addf %816, %817 : vector<1x1xf32>
    %cst_162 = arith.constant 5.000000e-01 : f32
    %819 = vector.broadcast %cst_162 : f32 to vector<1x1xf32>
    %820 = arith.mulf %819, %818 : vector<1x1xf32>
    %821 = vector.broadcast %820 : vector<1x1xf32> to vector<2x128xf32>
    %822 = arith.cmpf ogt, %732, %821 : vector<2x128xf32>
    %823 = arith.extui %822 : vector<2x128xi1> to vector<2x128xi32>
    %824 = arith.sitofp %823 : vector<2x128xi32> to vector<2x128xf32>
    %825 = vector.shape_cast %824 : vector<2x128xf32> to vector<1x2x128xf32>
    %cst_163 = arith.constant dense<0.000000e+00> : vector<1xf32>
    %826 = vector.multi_reduction <add>, %825, %cst_163 [1, 2] : vector<1x2x128xf32> to vector<1xf32>
    %827 = vector.shape_cast %826 : vector<1xf32> to vector<1x1x1xf32>
    %828 = vector.extract %827[0, 0, 0] : f32 from vector<1x1x1xf32>
    %829 = vector.broadcast %828 : f32 to vector<1x1xf32>
    %830 = arith.cmpf oge, %829, %736 : vector<1x1xf32>
    %831 = arith.select %830, %820, %816 : vector<1x1xi1>, vector<1x1xf32>
    %832 = arith.select %830, %817, %820 : vector<1x1xi1>, vector<1x1xf32>
    %c6_i32_164 = arith.constant 6 : i32
    %833 = arith.addf %831, %832 : vector<1x1xf32>
    %cst_165 = arith.constant 5.000000e-01 : f32
    %834 = vector.broadcast %cst_165 : f32 to vector<1x1xf32>
    %835 = arith.mulf %834, %833 : vector<1x1xf32>
    %836 = vector.broadcast %835 : vector<1x1xf32> to vector<2x128xf32>
    %837 = arith.cmpf ogt, %732, %836 : vector<2x128xf32>
    %838 = arith.extui %837 : vector<2x128xi1> to vector<2x128xi32>
    %839 = arith.sitofp %838 : vector<2x128xi32> to vector<2x128xf32>
    %840 = vector.shape_cast %839 : vector<2x128xf32> to vector<1x2x128xf32>
    %cst_166 = arith.constant dense<0.000000e+00> : vector<1xf32>
    %841 = vector.multi_reduction <add>, %840, %cst_166 [1, 2] : vector<1x2x128xf32> to vector<1xf32>
    %842 = vector.shape_cast %841 : vector<1xf32> to vector<1x1x1xf32>
    %843 = vector.extract %842[0, 0, 0] : f32 from vector<1x1x1xf32>
    %844 = vector.broadcast %843 : f32 to vector<1x1xf32>
    %845 = arith.cmpf oge, %844, %736 : vector<1x1xf32>
    %846 = arith.select %845, %835, %831 : vector<1x1xi1>, vector<1x1xf32>
    %847 = arith.select %845, %832, %835 : vector<1x1xi1>, vector<1x1xf32>
    %c7_i32_167 = arith.constant 7 : i32
    %848 = arith.addf %846, %847 : vector<1x1xf32>
    %cst_168 = arith.constant 5.000000e-01 : f32
    %849 = vector.broadcast %cst_168 : f32 to vector<1x1xf32>
    %850 = arith.mulf %849, %848 : vector<1x1xf32>
    %851 = vector.broadcast %850 : vector<1x1xf32> to vector<2x128xf32>
    %852 = arith.cmpf ogt, %732, %851 : vector<2x128xf32>
    %853 = arith.extui %852 : vector<2x128xi1> to vector<2x128xi32>
    %854 = arith.sitofp %853 : vector<2x128xi32> to vector<2x128xf32>
    %855 = vector.shape_cast %854 : vector<2x128xf32> to vector<1x2x128xf32>
    %cst_169 = arith.constant dense<0.000000e+00> : vector<1xf32>
    %856 = vector.multi_reduction <add>, %855, %cst_169 [1, 2] : vector<1x2x128xf32> to vector<1xf32>
    %857 = vector.shape_cast %856 : vector<1xf32> to vector<1x1x1xf32>
    %858 = vector.extract %857[0, 0, 0] : f32 from vector<1x1x1xf32>
    %859 = vector.broadcast %858 : f32 to vector<1x1xf32>
    %860 = arith.cmpf oge, %859, %736 : vector<1x1xf32>
    %861 = arith.select %860, %850, %846 : vector<1x1xi1>, vector<1x1xf32>
    %862 = arith.select %860, %847, %850 : vector<1x1xi1>, vector<1x1xf32>
    %c8_i32 = arith.constant 8 : i32
    %863 = arith.addf %861, %862 : vector<1x1xf32>
    %cst_170 = arith.constant 5.000000e-01 : f32
    %864 = vector.broadcast %cst_170 : f32 to vector<1x1xf32>
    %865 = arith.mulf %864, %863 : vector<1x1xf32>
    %866 = vector.broadcast %865 : vector<1x1xf32> to vector<2x128xf32>
    %867 = arith.cmpf ogt, %732, %866 : vector<2x128xf32>
    %868 = arith.extui %867 : vector<2x128xi1> to vector<2x128xi32>
    %869 = arith.sitofp %868 : vector<2x128xi32> to vector<2x128xf32>
    %870 = vector.shape_cast %869 : vector<2x128xf32> to vector<1x2x128xf32>
    %cst_171 = arith.constant dense<0.000000e+00> : vector<1xf32>
    %871 = vector.multi_reduction <add>, %870, %cst_171 [1, 2] : vector<1x2x128xf32> to vector<1xf32>
    %872 = vector.shape_cast %871 : vector<1xf32> to vector<1x1x1xf32>
    %873 = vector.extract %872[0, 0, 0] : f32 from vector<1x1x1xf32>
    %874 = vector.broadcast %873 : f32 to vector<1x1xf32>
    %875 = arith.cmpf oge, %874, %736 : vector<1x1xf32>
    %876 = arith.select %875, %865, %861 : vector<1x1xi1>, vector<1x1xf32>
    %877 = arith.select %875, %862, %865 : vector<1x1xi1>, vector<1x1xf32>
    %c9_i32 = arith.constant 9 : i32
    %878 = arith.addf %876, %877 : vector<1x1xf32>
    %cst_172 = arith.constant 5.000000e-01 : f32
    %879 = vector.broadcast %cst_172 : f32 to vector<1x1xf32>
    %880 = arith.mulf %879, %878 : vector<1x1xf32>
    %881 = vector.broadcast %880 : vector<1x1xf32> to vector<2x128xf32>
    %882 = arith.cmpf ogt, %732, %881 : vector<2x128xf32>
    %883 = arith.extui %882 : vector<2x128xi1> to vector<2x128xi32>
    %884 = arith.sitofp %883 : vector<2x128xi32> to vector<2x128xf32>
    %885 = vector.shape_cast %884 : vector<2x128xf32> to vector<1x2x128xf32>
    %cst_173 = arith.constant dense<0.000000e+00> : vector<1xf32>
    %886 = vector.multi_reduction <add>, %885, %cst_173 [1, 2] : vector<1x2x128xf32> to vector<1xf32>
    %887 = vector.shape_cast %886 : vector<1xf32> to vector<1x1x1xf32>
    %888 = vector.extract %887[0, 0, 0] : f32 from vector<1x1x1xf32>
    %889 = vector.broadcast %888 : f32 to vector<1x1xf32>
    %890 = arith.cmpf oge, %889, %736 : vector<1x1xf32>
    %891 = arith.select %890, %880, %876 : vector<1x1xi1>, vector<1x1xf32>
    %892 = arith.select %890, %877, %880 : vector<1x1xi1>, vector<1x1xf32>
    %c10_i32 = arith.constant 10 : i32
    %893 = arith.addf %891, %892 : vector<1x1xf32>
    %cst_174 = arith.constant 5.000000e-01 : f32
    %894 = vector.broadcast %cst_174 : f32 to vector<1x1xf32>
    %895 = arith.mulf %894, %893 : vector<1x1xf32>
    %896 = vector.broadcast %895 : vector<1x1xf32> to vector<2x128xf32>
    %897 = arith.cmpf ogt, %732, %896 : vector<2x128xf32>
    %898 = arith.extui %897 : vector<2x128xi1> to vector<2x128xi32>
    %899 = arith.sitofp %898 : vector<2x128xi32> to vector<2x128xf32>
    %900 = vector.shape_cast %899 : vector<2x128xf32> to vector<1x2x128xf32>
    %cst_175 = arith.constant dense<0.000000e+00> : vector<1xf32>
    %901 = vector.multi_reduction <add>, %900, %cst_175 [1, 2] : vector<1x2x128xf32> to vector<1xf32>
    %902 = vector.shape_cast %901 : vector<1xf32> to vector<1x1x1xf32>
    %903 = vector.extract %902[0, 0, 0] : f32 from vector<1x1x1xf32>
    %904 = vector.broadcast %903 : f32 to vector<1x1xf32>
    %905 = arith.cmpf oge, %904, %736 : vector<1x1xf32>
    %906 = arith.select %905, %895, %891 : vector<1x1xi1>, vector<1x1xf32>
    %907 = arith.select %905, %892, %895 : vector<1x1xi1>, vector<1x1xf32>
    %c11_i32 = arith.constant 11 : i32
    %908 = arith.addf %906, %907 : vector<1x1xf32>
    %cst_176 = arith.constant 5.000000e-01 : f32
    %909 = vector.broadcast %cst_176 : f32 to vector<1x1xf32>
    %910 = arith.mulf %909, %908 : vector<1x1xf32>
    %911 = vector.broadcast %910 : vector<1x1xf32> to vector<2x128xf32>
    %912 = arith.cmpf ogt, %732, %911 : vector<2x128xf32>
    %913 = arith.extui %912 : vector<2x128xi1> to vector<2x128xi32>
    %914 = arith.sitofp %913 : vector<2x128xi32> to vector<2x128xf32>
    %915 = vector.shape_cast %914 : vector<2x128xf32> to vector<1x2x128xf32>
    %cst_177 = arith.constant dense<0.000000e+00> : vector<1xf32>
    %916 = vector.multi_reduction <add>, %915, %cst_177 [1, 2] : vector<1x2x128xf32> to vector<1xf32>
    %917 = vector.shape_cast %916 : vector<1xf32> to vector<1x1x1xf32>
    %918 = vector.extract %917[0, 0, 0] : f32 from vector<1x1x1xf32>
    %919 = vector.broadcast %918 : f32 to vector<1x1xf32>
    %920 = arith.cmpf oge, %919, %736 : vector<1x1xf32>
    %921 = arith.select %920, %910, %906 : vector<1x1xi1>, vector<1x1xf32>
    %922 = arith.select %920, %907, %910 : vector<1x1xi1>, vector<1x1xf32>
    %c12_i32 = arith.constant 12 : i32
    %923 = arith.addf %921, %922 : vector<1x1xf32>
    %cst_178 = arith.constant 5.000000e-01 : f32
    %924 = vector.broadcast %cst_178 : f32 to vector<1x1xf32>
    %925 = arith.mulf %924, %923 : vector<1x1xf32>
    %926 = vector.broadcast %925 : vector<1x1xf32> to vector<2x128xf32>
    %927 = arith.cmpf ogt, %732, %926 : vector<2x128xf32>
    %928 = arith.extui %927 : vector<2x128xi1> to vector<2x128xi32>
    %929 = arith.sitofp %928 : vector<2x128xi32> to vector<2x128xf32>
    %930 = vector.shape_cast %929 : vector<2x128xf32> to vector<1x2x128xf32>
    %cst_179 = arith.constant dense<0.000000e+00> : vector<1xf32>
    %931 = vector.multi_reduction <add>, %930, %cst_179 [1, 2] : vector<1x2x128xf32> to vector<1xf32>
    %932 = vector.shape_cast %931 : vector<1xf32> to vector<1x1x1xf32>
    %933 = vector.extract %932[0, 0, 0] : f32 from vector<1x1x1xf32>
    %934 = vector.broadcast %933 : f32 to vector<1x1xf32>
    %935 = arith.cmpf oge, %934, %736 : vector<1x1xf32>
    %936 = arith.select %935, %925, %921 : vector<1x1xi1>, vector<1x1xf32>
    %937 = arith.select %935, %922, %925 : vector<1x1xi1>, vector<1x1xf32>
    %c13_i32 = arith.constant 13 : i32
    %938 = arith.addf %936, %937 : vector<1x1xf32>
    %cst_180 = arith.constant 5.000000e-01 : f32
    %939 = vector.broadcast %cst_180 : f32 to vector<1x1xf32>
    %940 = arith.mulf %939, %938 : vector<1x1xf32>
    %941 = vector.broadcast %940 : vector<1x1xf32> to vector<2x128xf32>
    %942 = arith.cmpf ogt, %732, %941 : vector<2x128xf32>
    %943 = arith.extui %942 : vector<2x128xi1> to vector<2x128xi32>
    %944 = arith.sitofp %943 : vector<2x128xi32> to vector<2x128xf32>
    %945 = vector.shape_cast %944 : vector<2x128xf32> to vector<1x2x128xf32>
    %cst_181 = arith.constant dense<0.000000e+00> : vector<1xf32>
    %946 = vector.multi_reduction <add>, %945, %cst_181 [1, 2] : vector<1x2x128xf32> to vector<1xf32>
    %947 = vector.shape_cast %946 : vector<1xf32> to vector<1x1x1xf32>
    %948 = vector.extract %947[0, 0, 0] : f32 from vector<1x1x1xf32>
    %949 = vector.broadcast %948 : f32 to vector<1x1xf32>
    %950 = arith.cmpf oge, %949, %736 : vector<1x1xf32>
    %951 = arith.select %950, %940, %936 : vector<1x1xi1>, vector<1x1xf32>
    %952 = arith.select %950, %937, %940 : vector<1x1xi1>, vector<1x1xf32>
    %c14_i32 = arith.constant 14 : i32
    %953 = arith.addf %951, %952 : vector<1x1xf32>
    %cst_182 = arith.constant 5.000000e-01 : f32
    %954 = vector.broadcast %cst_182 : f32 to vector<1x1xf32>
    %955 = arith.mulf %954, %953 : vector<1x1xf32>
    %956 = vector.broadcast %955 : vector<1x1xf32> to vector<2x128xf32>
    %957 = arith.cmpf ogt, %732, %956 : vector<2x128xf32>
    %958 = arith.extui %957 : vector<2x128xi1> to vector<2x128xi32>
    %959 = arith.sitofp %958 : vector<2x128xi32> to vector<2x128xf32>
    %960 = vector.shape_cast %959 : vector<2x128xf32> to vector<1x2x128xf32>
    %cst_183 = arith.constant dense<0.000000e+00> : vector<1xf32>
    %961 = vector.multi_reduction <add>, %960, %cst_183 [1, 2] : vector<1x2x128xf32> to vector<1xf32>
    %962 = vector.shape_cast %961 : vector<1xf32> to vector<1x1x1xf32>
    %963 = vector.extract %962[0, 0, 0] : f32 from vector<1x1x1xf32>
    %964 = vector.broadcast %963 : f32 to vector<1x1xf32>
    %965 = arith.cmpf oge, %964, %736 : vector<1x1xf32>
    %966 = arith.select %965, %955, %951 : vector<1x1xi1>, vector<1x1xf32>
    %967 = arith.select %965, %952, %955 : vector<1x1xi1>, vector<1x1xf32>
    %c15_i32 = arith.constant 15 : i32
    %968 = arith.addf %966, %967 : vector<1x1xf32>
    %cst_184 = arith.constant 5.000000e-01 : f32
    %969 = vector.broadcast %cst_184 : f32 to vector<1x1xf32>
    %970 = arith.mulf %969, %968 : vector<1x1xf32>
    %971 = vector.broadcast %970 : vector<1x1xf32> to vector<2x128xf32>
    %972 = arith.cmpf ogt, %732, %971 : vector<2x128xf32>
    %973 = arith.extui %972 : vector<2x128xi1> to vector<2x128xi32>
    %974 = arith.sitofp %973 : vector<2x128xi32> to vector<2x128xf32>
    %975 = vector.shape_cast %974 : vector<2x128xf32> to vector<1x2x128xf32>
    %cst_185 = arith.constant dense<0.000000e+00> : vector<1xf32>
    %976 = vector.multi_reduction <add>, %975, %cst_185 [1, 2] : vector<1x2x128xf32> to vector<1xf32>
    %977 = vector.shape_cast %976 : vector<1xf32> to vector<1x1x1xf32>
    %978 = vector.extract %977[0, 0, 0] : f32 from vector<1x1x1xf32>
    %979 = vector.broadcast %978 : f32 to vector<1x1xf32>
    %980 = arith.cmpf oge, %979, %736 : vector<1x1xf32>
    %981 = arith.select %980, %970, %966 : vector<1x1xi1>, vector<1x1xf32>
    %982 = arith.select %980, %967, %970 : vector<1x1xi1>, vector<1x1xf32>
    %c16_i32 = arith.constant 16 : i32
    %983 = arith.addf %981, %982 : vector<1x1xf32>
    %cst_186 = arith.constant 5.000000e-01 : f32
    %984 = vector.broadcast %cst_186 : f32 to vector<1x1xf32>
    %985 = arith.mulf %984, %983 : vector<1x1xf32>
    %986 = vector.broadcast %985 : vector<1x1xf32> to vector<2x128xf32>
    %987 = arith.cmpf ogt, %732, %986 : vector<2x128xf32>
    %988 = arith.extui %987 : vector<2x128xi1> to vector<2x128xi32>
    %989 = arith.sitofp %988 : vector<2x128xi32> to vector<2x128xf32>
    %990 = vector.shape_cast %989 : vector<2x128xf32> to vector<1x2x128xf32>
    %cst_187 = arith.constant dense<0.000000e+00> : vector<1xf32>
    %991 = vector.multi_reduction <add>, %990, %cst_187 [1, 2] : vector<1x2x128xf32> to vector<1xf32>
    %992 = vector.shape_cast %991 : vector<1xf32> to vector<1x1x1xf32>
    %993 = vector.extract %992[0, 0, 0] : f32 from vector<1x1x1xf32>
    %994 = vector.broadcast %993 : f32 to vector<1x1xf32>
    %995 = arith.cmpf oge, %994, %736 : vector<1x1xf32>
    %996 = arith.select %995, %985, %981 : vector<1x1xi1>, vector<1x1xf32>
    %997 = arith.select %995, %982, %985 : vector<1x1xi1>, vector<1x1xf32>
    %c17_i32 = arith.constant 17 : i32
    %998 = arith.addf %996, %997 : vector<1x1xf32>
    %cst_188 = arith.constant 5.000000e-01 : f32
    %999 = vector.broadcast %cst_188 : f32 to vector<1x1xf32>
    %1000 = arith.mulf %999, %998 : vector<1x1xf32>
    %1001 = vector.broadcast %1000 : vector<1x1xf32> to vector<2x128xf32>
    %1002 = arith.cmpf ogt, %732, %1001 : vector<2x128xf32>
    %1003 = arith.extui %1002 : vector<2x128xi1> to vector<2x128xi32>
    %1004 = arith.sitofp %1003 : vector<2x128xi32> to vector<2x128xf32>
    %1005 = vector.shape_cast %1004 : vector<2x128xf32> to vector<1x2x128xf32>
    %cst_189 = arith.constant dense<0.000000e+00> : vector<1xf32>
    %1006 = vector.multi_reduction <add>, %1005, %cst_189 [1, 2] : vector<1x2x128xf32> to vector<1xf32>
    %1007 = vector.shape_cast %1006 : vector<1xf32> to vector<1x1x1xf32>
    %1008 = vector.extract %1007[0, 0, 0] : f32 from vector<1x1x1xf32>
    %1009 = vector.broadcast %1008 : f32 to vector<1x1xf32>
    %1010 = arith.cmpf oge, %1009, %736 : vector<1x1xf32>
    %1011 = arith.select %1010, %1000, %996 : vector<1x1xi1>, vector<1x1xf32>
    %1012 = arith.select %1010, %997, %1000 : vector<1x1xi1>, vector<1x1xf32>
    %c18_i32 = arith.constant 18 : i32
    %1013 = arith.addf %1011, %1012 : vector<1x1xf32>
    %cst_190 = arith.constant 5.000000e-01 : f32
    %1014 = vector.broadcast %cst_190 : f32 to vector<1x1xf32>
    %1015 = arith.mulf %1014, %1013 : vector<1x1xf32>
    %1016 = vector.broadcast %1015 : vector<1x1xf32> to vector<2x128xf32>
    %1017 = arith.cmpf ogt, %732, %1016 : vector<2x128xf32>
    %1018 = arith.extui %1017 : vector<2x128xi1> to vector<2x128xi32>
    %1019 = arith.sitofp %1018 : vector<2x128xi32> to vector<2x128xf32>
    %1020 = vector.shape_cast %1019 : vector<2x128xf32> to vector<1x2x128xf32>
    %cst_191 = arith.constant dense<0.000000e+00> : vector<1xf32>
    %1021 = vector.multi_reduction <add>, %1020, %cst_191 [1, 2] : vector<1x2x128xf32> to vector<1xf32>
    %1022 = vector.shape_cast %1021 : vector<1xf32> to vector<1x1x1xf32>
    %1023 = vector.extract %1022[0, 0, 0] : f32 from vector<1x1x1xf32>
    %1024 = vector.broadcast %1023 : f32 to vector<1x1xf32>
    %1025 = arith.cmpf oge, %1024, %736 : vector<1x1xf32>
    %1026 = arith.select %1025, %1015, %1011 : vector<1x1xi1>, vector<1x1xf32>
    %1027 = arith.select %1025, %1012, %1015 : vector<1x1xi1>, vector<1x1xf32>
    %c19_i32 = arith.constant 19 : i32
    %1028 = arith.addf %1026, %1027 : vector<1x1xf32>
    %cst_192 = arith.constant 5.000000e-01 : f32
    %1029 = vector.broadcast %cst_192 : f32 to vector<1x1xf32>
    %1030 = arith.mulf %1029, %1028 : vector<1x1xf32>
    %1031 = vector.broadcast %1030 : vector<1x1xf32> to vector<2x128xf32>
    %1032 = arith.cmpf ogt, %732, %1031 : vector<2x128xf32>
    %1033 = arith.extui %1032 : vector<2x128xi1> to vector<2x128xi32>
    %1034 = arith.sitofp %1033 : vector<2x128xi32> to vector<2x128xf32>
    %1035 = vector.shape_cast %1034 : vector<2x128xf32> to vector<1x2x128xf32>
    %cst_193 = arith.constant dense<0.000000e+00> : vector<1xf32>
    %1036 = vector.multi_reduction <add>, %1035, %cst_193 [1, 2] : vector<1x2x128xf32> to vector<1xf32>
    %1037 = vector.shape_cast %1036 : vector<1xf32> to vector<1x1x1xf32>
    %1038 = vector.extract %1037[0, 0, 0] : f32 from vector<1x1x1xf32>
    %1039 = vector.broadcast %1038 : f32 to vector<1x1xf32>
    %1040 = arith.cmpf oge, %1039, %736 : vector<1x1xf32>
    %1041 = arith.select %1040, %1030, %1026 : vector<1x1xi1>, vector<1x1xf32>
    %1042 = arith.select %1040, %1027, %1030 : vector<1x1xi1>, vector<1x1xf32>
    %c20_i32 = arith.constant 20 : i32
    %1043 = arith.addf %1041, %1042 : vector<1x1xf32>
    %cst_194 = arith.constant 5.000000e-01 : f32
    %1044 = vector.broadcast %cst_194 : f32 to vector<1x1xf32>
    %1045 = arith.mulf %1044, %1043 : vector<1x1xf32>
    %1046 = vector.broadcast %1045 : vector<1x1xf32> to vector<2x128xf32>
    %1047 = arith.cmpf ogt, %732, %1046 : vector<2x128xf32>
    %1048 = arith.extui %1047 : vector<2x128xi1> to vector<2x128xi32>
    %1049 = arith.sitofp %1048 : vector<2x128xi32> to vector<2x128xf32>
    %1050 = vector.shape_cast %1049 : vector<2x128xf32> to vector<1x2x128xf32>
    %cst_195 = arith.constant dense<0.000000e+00> : vector<1xf32>
    %1051 = vector.multi_reduction <add>, %1050, %cst_195 [1, 2] : vector<1x2x128xf32> to vector<1xf32>
    %1052 = vector.shape_cast %1051 : vector<1xf32> to vector<1x1x1xf32>
    %1053 = vector.extract %1052[0, 0, 0] : f32 from vector<1x1x1xf32>
    %1054 = vector.broadcast %1053 : f32 to vector<1x1xf32>
    %1055 = arith.cmpf oge, %1054, %736 : vector<1x1xf32>
    %1056 = arith.select %1055, %1045, %1041 : vector<1x1xi1>, vector<1x1xf32>
    %1057 = arith.select %1055, %1042, %1045 : vector<1x1xi1>, vector<1x1xf32>
    %c21_i32 = arith.constant 21 : i32
    %1058 = arith.addf %1056, %1057 : vector<1x1xf32>
    %cst_196 = arith.constant 5.000000e-01 : f32
    %1059 = vector.broadcast %cst_196 : f32 to vector<1x1xf32>
    %1060 = arith.mulf %1059, %1058 : vector<1x1xf32>
    %1061 = vector.broadcast %1060 : vector<1x1xf32> to vector<2x128xf32>
    %1062 = arith.cmpf ogt, %732, %1061 : vector<2x128xf32>
    %1063 = arith.extui %1062 : vector<2x128xi1> to vector<2x128xi32>
    %1064 = arith.sitofp %1063 : vector<2x128xi32> to vector<2x128xf32>
    %1065 = vector.shape_cast %1064 : vector<2x128xf32> to vector<1x2x128xf32>
    %cst_197 = arith.constant dense<0.000000e+00> : vector<1xf32>
    %1066 = vector.multi_reduction <add>, %1065, %cst_197 [1, 2] : vector<1x2x128xf32> to vector<1xf32>
    %1067 = vector.shape_cast %1066 : vector<1xf32> to vector<1x1x1xf32>
    %1068 = vector.extract %1067[0, 0, 0] : f32 from vector<1x1x1xf32>
    %1069 = vector.broadcast %1068 : f32 to vector<1x1xf32>
    %1070 = arith.cmpf oge, %1069, %736 : vector<1x1xf32>
    %1071 = arith.select %1070, %1060, %1056 : vector<1x1xi1>, vector<1x1xf32>
    %1072 = arith.select %1070, %1057, %1060 : vector<1x1xi1>, vector<1x1xf32>
    %c22_i32 = arith.constant 22 : i32
    %1073 = arith.addf %1071, %1072 : vector<1x1xf32>
    %cst_198 = arith.constant 5.000000e-01 : f32
    %1074 = vector.broadcast %cst_198 : f32 to vector<1x1xf32>
    %1075 = arith.mulf %1074, %1073 : vector<1x1xf32>
    %1076 = vector.broadcast %1075 : vector<1x1xf32> to vector<2x128xf32>
    %1077 = arith.cmpf ogt, %732, %1076 : vector<2x128xf32>
    %1078 = arith.extui %1077 : vector<2x128xi1> to vector<2x128xi32>
    %1079 = arith.sitofp %1078 : vector<2x128xi32> to vector<2x128xf32>
    %1080 = vector.shape_cast %1079 : vector<2x128xf32> to vector<1x2x128xf32>
    %cst_199 = arith.constant dense<0.000000e+00> : vector<1xf32>
    %1081 = vector.multi_reduction <add>, %1080, %cst_199 [1, 2] : vector<1x2x128xf32> to vector<1xf32>
    %1082 = vector.shape_cast %1081 : vector<1xf32> to vector<1x1x1xf32>
    %1083 = vector.extract %1082[0, 0, 0] : f32 from vector<1x1x1xf32>
    %1084 = vector.broadcast %1083 : f32 to vector<1x1xf32>
    %1085 = arith.cmpf oge, %1084, %736 : vector<1x1xf32>
    %1086 = arith.select %1085, %1075, %1071 : vector<1x1xi1>, vector<1x1xf32>
    %1087 = arith.select %1085, %1072, %1075 : vector<1x1xi1>, vector<1x1xf32>
    %c23_i32 = arith.constant 23 : i32
    %1088 = arith.addf %1086, %1087 : vector<1x1xf32>
    %cst_200 = arith.constant 5.000000e-01 : f32
    %1089 = vector.broadcast %cst_200 : f32 to vector<1x1xf32>
    %1090 = arith.mulf %1089, %1088 : vector<1x1xf32>
    %1091 = vector.broadcast %1090 : vector<1x1xf32> to vector<2x128xf32>
    %1092 = arith.cmpf ogt, %732, %1091 : vector<2x128xf32>
    %1093 = arith.extui %1092 : vector<2x128xi1> to vector<2x128xi32>
    %1094 = arith.sitofp %1093 : vector<2x128xi32> to vector<2x128xf32>
    %1095 = vector.shape_cast %1094 : vector<2x128xf32> to vector<1x2x128xf32>
    %cst_201 = arith.constant dense<0.000000e+00> : vector<1xf32>
    %1096 = vector.multi_reduction <add>, %1095, %cst_201 [1, 2] : vector<1x2x128xf32> to vector<1xf32>
    %1097 = vector.shape_cast %1096 : vector<1xf32> to vector<1x1x1xf32>
    %1098 = vector.extract %1097[0, 0, 0] : f32 from vector<1x1x1xf32>
    %1099 = vector.broadcast %1098 : f32 to vector<1x1xf32>
    %1100 = arith.cmpf oge, %1099, %736 : vector<1x1xf32>
    %1101 = arith.select %1100, %1090, %1086 : vector<1x1xi1>, vector<1x1xf32>
    %1102 = arith.select %1100, %1087, %1090 : vector<1x1xi1>, vector<1x1xf32>
    %c24_i32 = arith.constant 24 : i32
    %1103 = arith.addf %1101, %1102 : vector<1x1xf32>
    %cst_202 = arith.constant 5.000000e-01 : f32
    %1104 = vector.broadcast %cst_202 : f32 to vector<1x1xf32>
    %1105 = arith.mulf %1104, %1103 : vector<1x1xf32>
    %1106 = vector.broadcast %1105 : vector<1x1xf32> to vector<2x128xf32>
    %1107 = arith.cmpf ogt, %732, %1106 : vector<2x128xf32>
    %1108 = arith.extui %1107 : vector<2x128xi1> to vector<2x128xi32>
    %1109 = arith.sitofp %1108 : vector<2x128xi32> to vector<2x128xf32>
    %1110 = vector.shape_cast %1109 : vector<2x128xf32> to vector<1x2x128xf32>
    %cst_203 = arith.constant dense<0.000000e+00> : vector<1xf32>
    %1111 = vector.multi_reduction <add>, %1110, %cst_203 [1, 2] : vector<1x2x128xf32> to vector<1xf32>
    %1112 = vector.shape_cast %1111 : vector<1xf32> to vector<1x1x1xf32>
    %1113 = vector.extract %1112[0, 0, 0] : f32 from vector<1x1x1xf32>
    %1114 = vector.broadcast %1113 : f32 to vector<1x1xf32>
    %1115 = arith.cmpf oge, %1114, %736 : vector<1x1xf32>
    %1116 = arith.select %1115, %1105, %1101 : vector<1x1xi1>, vector<1x1xf32>
    %1117 = arith.select %1115, %1102, %1105 : vector<1x1xi1>, vector<1x1xf32>
    %c25_i32 = arith.constant 25 : i32
    %1118 = arith.addf %1116, %1117 : vector<1x1xf32>
    %cst_204 = arith.constant 5.000000e-01 : f32
    %1119 = vector.broadcast %cst_204 : f32 to vector<1x1xf32>
    %1120 = arith.mulf %1119, %1118 : vector<1x1xf32>
    %1121 = vector.broadcast %1120 : vector<1x1xf32> to vector<2x128xf32>
    %1122 = arith.cmpf ogt, %732, %1121 : vector<2x128xf32>
    %1123 = arith.extui %1122 : vector<2x128xi1> to vector<2x128xi32>
    %1124 = arith.sitofp %1123 : vector<2x128xi32> to vector<2x128xf32>
    %1125 = vector.shape_cast %1124 : vector<2x128xf32> to vector<1x2x128xf32>
    %cst_205 = arith.constant dense<0.000000e+00> : vector<1xf32>
    %1126 = vector.multi_reduction <add>, %1125, %cst_205 [1, 2] : vector<1x2x128xf32> to vector<1xf32>
    %1127 = vector.shape_cast %1126 : vector<1xf32> to vector<1x1x1xf32>
    %1128 = vector.extract %1127[0, 0, 0] : f32 from vector<1x1x1xf32>
    %1129 = vector.broadcast %1128 : f32 to vector<1x1xf32>
    %1130 = arith.cmpf oge, %1129, %736 : vector<1x1xf32>
    %1131 = arith.select %1130, %1120, %1116 : vector<1x1xi1>, vector<1x1xf32>
    %1132 = arith.select %1130, %1117, %1120 : vector<1x1xi1>, vector<1x1xf32>
    %c26_i32 = arith.constant 26 : i32
    %1133 = arith.addf %1131, %1132 : vector<1x1xf32>
    %cst_206 = arith.constant 5.000000e-01 : f32
    %1134 = vector.broadcast %cst_206 : f32 to vector<1x1xf32>
    %1135 = arith.mulf %1134, %1133 : vector<1x1xf32>
    %1136 = vector.broadcast %1135 : vector<1x1xf32> to vector<2x128xf32>
    %1137 = arith.cmpf ogt, %732, %1136 : vector<2x128xf32>
    %1138 = arith.extui %1137 : vector<2x128xi1> to vector<2x128xi32>
    %1139 = arith.sitofp %1138 : vector<2x128xi32> to vector<2x128xf32>
    %1140 = vector.shape_cast %1139 : vector<2x128xf32> to vector<1x2x128xf32>
    %cst_207 = arith.constant dense<0.000000e+00> : vector<1xf32>
    %1141 = vector.multi_reduction <add>, %1140, %cst_207 [1, 2] : vector<1x2x128xf32> to vector<1xf32>
    %1142 = vector.shape_cast %1141 : vector<1xf32> to vector<1x1x1xf32>
    %1143 = vector.extract %1142[0, 0, 0] : f32 from vector<1x1x1xf32>
    %1144 = vector.broadcast %1143 : f32 to vector<1x1xf32>
    %1145 = arith.cmpf oge, %1144, %736 : vector<1x1xf32>
    %1146 = arith.select %1145, %1135, %1131 : vector<1x1xi1>, vector<1x1xf32>
    %1147 = arith.select %1145, %1132, %1135 : vector<1x1xi1>, vector<1x1xf32>
    %c27_i32 = arith.constant 27 : i32
    %1148 = arith.addf %1146, %1147 : vector<1x1xf32>
    %cst_208 = arith.constant 5.000000e-01 : f32
    %1149 = vector.broadcast %cst_208 : f32 to vector<1x1xf32>
    %1150 = arith.mulf %1149, %1148 : vector<1x1xf32>
    %1151 = vector.broadcast %1150 : vector<1x1xf32> to vector<2x128xf32>
    %1152 = arith.cmpf ogt, %732, %1151 : vector<2x128xf32>
    %1153 = arith.extui %1152 : vector<2x128xi1> to vector<2x128xi32>
    %1154 = arith.sitofp %1153 : vector<2x128xi32> to vector<2x128xf32>
    %1155 = vector.shape_cast %1154 : vector<2x128xf32> to vector<1x2x128xf32>
    %cst_209 = arith.constant dense<0.000000e+00> : vector<1xf32>
    %1156 = vector.multi_reduction <add>, %1155, %cst_209 [1, 2] : vector<1x2x128xf32> to vector<1xf32>
    %1157 = vector.shape_cast %1156 : vector<1xf32> to vector<1x1x1xf32>
    %1158 = vector.extract %1157[0, 0, 0] : f32 from vector<1x1x1xf32>
    %1159 = vector.broadcast %1158 : f32 to vector<1x1xf32>
    %1160 = arith.cmpf oge, %1159, %736 : vector<1x1xf32>
    %1161 = arith.select %1160, %1150, %1146 : vector<1x1xi1>, vector<1x1xf32>
    %1162 = arith.select %1160, %1147, %1150 : vector<1x1xi1>, vector<1x1xf32>
    %c28_i32 = arith.constant 28 : i32
    %1163 = arith.addf %1161, %1162 : vector<1x1xf32>
    %cst_210 = arith.constant 5.000000e-01 : f32
    %1164 = vector.broadcast %cst_210 : f32 to vector<1x1xf32>
    %1165 = arith.mulf %1164, %1163 : vector<1x1xf32>
    %1166 = vector.broadcast %1165 : vector<1x1xf32> to vector<2x128xf32>
    %1167 = arith.cmpf ogt, %732, %1166 : vector<2x128xf32>
    %1168 = arith.extui %1167 : vector<2x128xi1> to vector<2x128xi32>
    %1169 = arith.sitofp %1168 : vector<2x128xi32> to vector<2x128xf32>
    %1170 = vector.shape_cast %1169 : vector<2x128xf32> to vector<1x2x128xf32>
    %cst_211 = arith.constant dense<0.000000e+00> : vector<1xf32>
    %1171 = vector.multi_reduction <add>, %1170, %cst_211 [1, 2] : vector<1x2x128xf32> to vector<1xf32>
    %1172 = vector.shape_cast %1171 : vector<1xf32> to vector<1x1x1xf32>
    %1173 = vector.extract %1172[0, 0, 0] : f32 from vector<1x1x1xf32>
    %1174 = vector.broadcast %1173 : f32 to vector<1x1xf32>
    %1175 = arith.cmpf oge, %1174, %736 : vector<1x1xf32>
    %1176 = arith.select %1175, %1165, %1161 : vector<1x1xi1>, vector<1x1xf32>
    %1177 = arith.select %1175, %1162, %1165 : vector<1x1xi1>, vector<1x1xf32>
    %c29_i32 = arith.constant 29 : i32
    %1178 = arith.addf %1176, %1177 : vector<1x1xf32>
    %cst_212 = arith.constant 5.000000e-01 : f32
    %1179 = vector.broadcast %cst_212 : f32 to vector<1x1xf32>
    %1180 = arith.mulf %1179, %1178 : vector<1x1xf32>
    %1181 = vector.broadcast %1180 : vector<1x1xf32> to vector<2x128xf32>
    %1182 = arith.cmpf ogt, %732, %1181 : vector<2x128xf32>
    %1183 = arith.extui %1182 : vector<2x128xi1> to vector<2x128xi32>
    %1184 = arith.sitofp %1183 : vector<2x128xi32> to vector<2x128xf32>
    %1185 = vector.shape_cast %1184 : vector<2x128xf32> to vector<1x2x128xf32>
    %cst_213 = arith.constant dense<0.000000e+00> : vector<1xf32>
    %1186 = vector.multi_reduction <add>, %1185, %cst_213 [1, 2] : vector<1x2x128xf32> to vector<1xf32>
    %1187 = vector.shape_cast %1186 : vector<1xf32> to vector<1x1x1xf32>
    %1188 = vector.extract %1187[0, 0, 0] : f32 from vector<1x1x1xf32>
    %1189 = vector.broadcast %1188 : f32 to vector<1x1xf32>
    %1190 = arith.cmpf oge, %1189, %736 : vector<1x1xf32>
    %1191 = arith.select %1190, %1180, %1176 : vector<1x1xi1>, vector<1x1xf32>
    %1192 = arith.select %1190, %1177, %1180 : vector<1x1xi1>, vector<1x1xf32>
    %c30_i32 = arith.constant 30 : i32
    %1193 = arith.addf %1191, %1192 : vector<1x1xf32>
    %cst_214 = arith.constant 5.000000e-01 : f32
    %1194 = vector.broadcast %cst_214 : f32 to vector<1x1xf32>
    %1195 = arith.mulf %1194, %1193 : vector<1x1xf32>
    %1196 = vector.broadcast %1195 : vector<1x1xf32> to vector<2x128xf32>
    %1197 = arith.cmpf ogt, %732, %1196 : vector<2x128xf32>
    %1198 = arith.extui %1197 : vector<2x128xi1> to vector<2x128xi32>
    %1199 = arith.sitofp %1198 : vector<2x128xi32> to vector<2x128xf32>
    %1200 = vector.shape_cast %1199 : vector<2x128xf32> to vector<1x2x128xf32>
    %cst_215 = arith.constant dense<0.000000e+00> : vector<1xf32>
    %1201 = vector.multi_reduction <add>, %1200, %cst_215 [1, 2] : vector<1x2x128xf32> to vector<1xf32>
    %1202 = vector.shape_cast %1201 : vector<1xf32> to vector<1x1x1xf32>
    %1203 = vector.extract %1202[0, 0, 0] : f32 from vector<1x1x1xf32>
    %1204 = vector.broadcast %1203 : f32 to vector<1x1xf32>
    %1205 = arith.cmpf oge, %1204, %736 : vector<1x1xf32>
    %1206 = arith.select %1205, %1195, %1191 : vector<1x1xi1>, vector<1x1xf32>
    %1207 = arith.select %1205, %1192, %1195 : vector<1x1xi1>, vector<1x1xf32>
    %c31_i32 = arith.constant 31 : i32
    %1208 = arith.addf %1206, %1207 : vector<1x1xf32>
    %cst_216 = arith.constant 5.000000e-01 : f32
    %1209 = vector.broadcast %cst_216 : f32 to vector<1x1xf32>
    %1210 = arith.mulf %1209, %1208 : vector<1x1xf32>
    %1211 = vector.broadcast %1210 : vector<1x1xf32> to vector<2x128xf32>
    %1212 = arith.cmpf ogt, %732, %1211 : vector<2x128xf32>
    %1213 = arith.extui %1212 : vector<2x128xi1> to vector<2x128xi32>
    %1214 = arith.sitofp %1213 : vector<2x128xi32> to vector<2x128xf32>
    %1215 = vector.shape_cast %1214 : vector<2x128xf32> to vector<1x2x128xf32>
    %cst_217 = arith.constant dense<0.000000e+00> : vector<1xf32>
    %1216 = vector.multi_reduction <add>, %1215, %cst_217 [1, 2] : vector<1x2x128xf32> to vector<1xf32>
    %1217 = vector.shape_cast %1216 : vector<1xf32> to vector<1x1x1xf32>
    %1218 = vector.extract %1217[0, 0, 0] : f32 from vector<1x1x1xf32>
    %1219 = vector.broadcast %1218 : f32 to vector<1x1xf32>
    %1220 = arith.cmpf oge, %1219, %736 : vector<1x1xf32>
    %1221 = arith.select %1220, %1210, %1206 : vector<1x1xi1>, vector<1x1xf32>
    %1222 = arith.select %1220, %1207, %1210 : vector<1x1xi1>, vector<1x1xf32>
    %1223 = vector.broadcast %1221 : vector<1x1xf32> to vector<2x128xf32>
    %1224 = arith.cmpf ogt, %732, %1223 : vector<2x128xf32>
    %1225 = arith.extui %1224 : vector<2x128xi1> to vector<2x128xi32>
    %1226 = arith.sitofp %1225 : vector<2x128xi32> to vector<2x128xf32>
    %1227 = vector.shape_cast %1226 : vector<2x128xf32> to vector<1x2x128xf32>
    %cst_218 = arith.constant dense<0.000000e+00> : vector<1xf32>
    %1228 = vector.multi_reduction <add>, %1227, %cst_218 [1, 2] : vector<1x2x128xf32> to vector<1xf32>
    %1229 = vector.shape_cast %1228 : vector<1xf32> to vector<1x1x1xf32>
    %1230 = vector.extract %1229[0, 0, 0] : f32 from vector<1x1x1xf32>
    %1231 = vector.broadcast %1230 : f32 to vector<1x1xf32>
    %1232 = arith.mulf %732, %1226 : vector<2x128xf32>
    %1233 = vector.shape_cast %1232 : vector<2x128xf32> to vector<1x2x128xf32>
    %cst_219 = arith.constant dense<0.000000e+00> : vector<1xf32>
    %1234 = vector.multi_reduction <add>, %1233, %cst_219 [1, 2] : vector<1x2x128xf32> to vector<1xf32>
    %1235 = vector.shape_cast %1234 : vector<1xf32> to vector<1x1x1xf32>
    %1236 = vector.extract %1235[0, 0, 0] : f32 from vector<1x1x1xf32>
    %1237 = vector.broadcast %1236 : f32 to vector<1x1xf32>
    %1238 = arith.subf %736, %1231 : vector<1x1xf32>
    %1239 = arith.mulf %1238, %1221 : vector<1x1xf32>
    %1240 = arith.addf %1237, %1239 : vector<1x1xf32>
    %1241 = tpu.iota {dimensions = array<i32: 1>} : vector<1x128xi32>
    %c0_i32_220 = arith.constant 0 : i32
    %1242 = vector.broadcast %c0_i32_220 : i32 to vector<1x128xi32>
    %1243 = arith.cmpi eq, %1241, %1242 : vector<1x128xi32>
    %cst_221 = arith.constant 0.000000e+00 : f32
    %1244 = vector.shape_cast %684 : vector<1x1xf32> to vector<1x1xf32>
    %1245 = vector.broadcast %1244 : vector<1x1xf32> to vector<1x128xf32>
    %1246 = vector.broadcast %cst_221 : f32 to vector<1x128xf32>
    %1247 = arith.select %1243, %1245, %1246 : vector<1x128xi1>, vector<1x128xf32>
    %c1_i32_222 = arith.constant 1 : i32
    %1248 = vector.broadcast %c1_i32_222 : i32 to vector<1x128xi32>
    %1249 = arith.cmpi eq, %1241, %1248 : vector<1x128xi32>
    %cst_223 = arith.constant 0.000000e+00 : f32
    %1250 = vector.shape_cast %627 : vector<1x1xf32> to vector<1x1xf32>
    %1251 = vector.broadcast %1250 : vector<1x1xf32> to vector<1x128xf32>
    %1252 = vector.broadcast %cst_223 : f32 to vector<1x128xf32>
    %1253 = arith.select %1249, %1251, %1252 : vector<1x128xi1>, vector<1x128xf32>
    %1254 = arith.addf %1247, %1253 : vector<1x128xf32>
    %c2_i32_224 = arith.constant 2 : i32
    %1255 = vector.broadcast %c2_i32_224 : i32 to vector<1x128xi32>
    %1256 = arith.cmpi eq, %1241, %1255 : vector<1x128xi32>
    %cst_225 = arith.constant 0.000000e+00 : f32
    %1257 = vector.shape_cast %730 : vector<1x1xf32> to vector<1x1xf32>
    %1258 = vector.broadcast %1257 : vector<1x1xf32> to vector<1x128xf32>
    %1259 = vector.broadcast %cst_225 : f32 to vector<1x128xf32>
    %1260 = arith.select %1256, %1258, %1259 : vector<1x128xi1>, vector<1x128xf32>
    %1261 = arith.addf %1254, %1260 : vector<1x128xf32>
    %c3_i32_226 = arith.constant 3 : i32
    %1262 = vector.broadcast %c3_i32_226 : i32 to vector<1x128xi32>
    %1263 = arith.cmpi eq, %1241, %1262 : vector<1x128xi32>
    %cst_227 = arith.constant 0.000000e+00 : f32
    %1264 = vector.shape_cast %1240 : vector<1x1xf32> to vector<1x1xf32>
    %1265 = vector.broadcast %1264 : vector<1x1xf32> to vector<1x128xf32>
    %1266 = vector.broadcast %cst_227 : f32 to vector<1x128xf32>
    %1267 = arith.select %1263, %1265, %1266 : vector<1x128xi1>, vector<1x128xf32>
    %1268 = arith.addf %1261, %1267 : vector<1x128xf32>
    %1269 = vector.shape_cast %1268 : vector<1x128xf32> to vector<1x1x128xf32>
    %c0_228 = arith.constant 0 : index
    %c0_229 = arith.constant 0 : index
    %c0_230 = arith.constant 0 : index
    %1270 = vector.load %arg6[%c0_228, %c0_229, %c0_230] : memref<1x1x128xf32, #tpu.memory_space<vmem>>, vector<1x1x128xf32>
    tpu.vector_store %arg6[%c0_228, %c0_229, %c0_230], %1269 {strides = array<i32>} : memref<1x1x128xf32, #tpu.memory_space<vmem>>, vector<1x1x128xf32>,
    return
  }
  func.func @transform_0(%arg0: i32) -> i32 {
    %c0_i32 = arith.constant 0 : i32
    %c0_i32_0 = arith.constant 0 : i32
    return %c0_i32 : i32
  }
  func.func @transform_1(%arg0: i32) -> (i32, i32) {
    %c0_i32 = arith.constant 0 : i32
    %c0_i32_0 = arith.constant 0 : i32
    %c0_i32_1 = arith.constant 0 : i32
    return %c0_i32, %c0_i32_0 : i32, i32
  }
  func.func @transform_2(%arg0: i32) -> (i32, i32) {
    %c0_i32 = arith.constant 0 : i32
    %c0_i32_0 = arith.constant 0 : i32
    %c0_i32_1 = arith.constant 0 : i32
    return %c0_i32, %c0_i32_0 : i32, i32
  }
  func.func @transform_3(%arg0: i32) -> (i32, i32) {
    %c0_i32 = arith.constant 0 : i32
    %c0_i32_0 = arith.constant 0 : i32
    %c0_i32_1 = arith.constant 0 : i32
    return %c0_i32, %c0_i32_0 : i32, i32
  }
  func.func @transform_4(%arg0: i32) -> (i32, i32, i32) {
    %c0_i32 = arith.constant 0 : i32
    %c0_i32_0 = arith.constant 0 : i32
    %c0_i32_1 = arith.constant 0 : i32
    return %arg0, %c0_i32, %c0_i32_0 : i32, i32, i32
  }
  func.func @transform_5(%arg0: i32) -> (i32, i32, i32) {
    %c0_i32 = arith.constant 0 : i32
    %c0_i32_0 = arith.constant 0 : i32
    %c0_i32_1 = arith.constant 0 : i32
    return %arg0, %c0_i32, %c0_i32_0 : i32, i32, i32
  }
}

</mosaic_0001>

<bundles_post_ra>
// kernel: tpu_custom_call.1
= control target key start
LH: loop header
LB: loop body
LE: loop exit
PB: predicated region body
PF: predicated region fallthrough
CT: control target
= control target key end

     0   :  { %s3512_s0 = inlined_call_operand.hbm [shape: s32[2], index: 0, kind: input, shape index: {}]   ;;  %s3513_s1 = inlined_call_operand.vmem [shape: s32[2,8], index: 1, kind: input, shape index: {}]   ;;  %s3514_s2 = inlined_call_operand.hbm [shape: f32[2,32], index: 2, kind: input, shape index: {}]   ;;  %s3515_s3 = inlined_call_operand.vmem [shape: f32[8,128], index: 3, kind: input, shape index: {}]   ;;  %s3516_s4 = inlined_call_operand.hbm [shape: f32[2,16,128], index: 4, kind: input, shape index: {}]   ;;  %s3517_s5 = inlined_call_operand.hbm [shape: f32[2,1,128], index: 5, kind: output, shape index: {}]  }
   0x1   :  { %3560 = sst [smem:[#allocation45_spill]] %s3512_s0 }
   0x2   :  { %3561 = sst [smem:[#allocation46_spill]] %s3513_s1 }
   0x3   :  { %3562 = sst [smem:[#allocation47_spill]] %s3514_s2 }
   0x4   :  { %3563 = sst [smem:[#allocation48_spill]] %s3516_s4 }
   0x5   :  { %3564 = sst [smem:[#allocation49_spill]] %s3517_s5 }
   0x6   :  { %10 = vsyncpa [#allocation5], 0 }
   0x7   :  { %11 = vsyncpa [#allocation6], 0 }
   0x8   :  { %12 = vsyncpa [#allocation9], 0 }
   0x9   :  { %13 = vsyncpa [#allocation3], 0 }
   0xa   :  { %15 = vsyncpa [#allocation3 + $0x1], 0 }
   0xb   :  { %16 = vsyncpa [#allocation4], 0 }
   0xc   :  { %18 = vsyncpa [#allocation4 + $0x1], 0  ;;  %s2360_s18 = smov 0   ;;  %s2362_s19 = smov 0  }
   0xd   :  { %s2364_s20 = smov 0   ;;  %s2366_s21 = smov 0  }
   0xe LB: > { %3565 = sst [smem:[#allocation17_spill]] %s2307_s18  ;;  %s2381_s22 = sadd.s32 4294967295, %s2319_s21   ;;  %s2319_s21 = sphi %s2366_s21, %s3674_s21   ;;  %s2315_s20 = sphi %s2364_s20, %s3677_s20   ;;  %s2311_s19 = sphi %s2362_s19, %s3676_s19   ;;  %s2307_s18 = sphi %s2360_s18, %s3675_s18  }
   0xf   : > { %3566 = sst [smem:[#allocation18_spill]] %s2311_s19  ;;  %s1890_s23 = sadd.s32 4294967294, %s2319_s21  }
  0x10   : > { %3567 = sst [smem:[#allocation19_spill]] %s2315_s20  ;;  %p128_p0 = scmp.ne.s32.totalorder %s2311_s19, %s2307_s18 }
  0x11   : > { %3568 = sst [smem:[#allocation20_spill]] %s2319_s21  ;;  %p3518_p1 = scmp.eq.s32.totalorder %s2381_s22, 0 }
  0x12   : > { %3569 = sst [smem:[#allocation21_spill]] %s2381_s22  ;;  %p158_p3 = scmp.eq.s32.totalorder %s1890_s23, 1 }
  0x13   : > { %p2390_p4 = por %p3518_p1, %p128_p0  ;;  %p1891_p5 = scmp.ge.s32.totalorder %s2319_s21, 1 }
  0x14   : > { %p2395_p6 = por %p158_p3, %p128_p0  ;;  %p165_p7 = scmp.lt.s32.totalorder %s2319_s21, 3 }
  0x15   : > { %s3570_s24 = scalar_select %p2390_p4, 1, 0 }
  0x16   : > { %s3571_s25 = scalar_select %p2395_p6, 1, 0 }
  0x17   : > { %p2400_p8 = pnand %p1891_p5, %p165_p7  ;;  %s3574_s1 = sld [smem:[#allocation46_spill]] }
  0x18   : > { %3572 = sst [smem:[#allocation22_spill]] %s3571_s25  ;;  %s2417_s6 = sadd.s32 1, %s2319_s21  }
  0x19   : > { %p2067_p10 = pneg %p2400_p8  ;;  %3576 = sst [smem:[#allocation23_spill]] %s2417_s6 }
  0x1a   : > { %s115_s7 = sadd.s32 1, %s2315_s20  ;;  %s112_s8 = ssub.s32 %s2319_s21, %s2417_s6 }
  0x1b   : > { %p2412_p11 = pnand %p2067_p10, %p3518_p1  ;;  %s3577_s0 = sld [smem:[#allocation45_spill]] }
  0x1d   : > { %s187_s29 = sshll.u32 %s3574_s1, 4  ;;  %p2172_p13 = pneg %p2412_p11  ;;  %s188_s29 = int_to_ptr.vmem [resolvable:$true] %s187_s29 }
  0x21   : > { %s2170_s11 = scalar_lea.hbm %s3577_s0, 16 }
  0x22   : > { %p2171_p12 = scmp.ne.s32.totalorder %s3577_s0, %s2170_s11  ;;  %p2177_p5 = scmp.lt.u32.totalorder %s2170_s11, %s3577_s0 }
  0x24   : > { %p2173_p0 = pnand %p2172_p13, %p2171_p12 }
  0x26   : > { %p2174_p3 = pneg %p2173_p0 }
  0x28   : > { %p2179_p7 = pnand %p2177_p5, %p2174_p3 }
  0x2a   : > { %2182 = shalt.err (!%p2179_p7)
}
  0x2b   : > { %s2321_s16 = smov [#allocation2]   ;;  %s2183_s27 = scalar_lea.vmem %s188_s29, 32 }
  0x2c   : > { %2070 = dma.hbm_to_smem (!%p2412_p11), %s3577_s0, 16, %s2321_s16, [#allocation5]  }
  0x2d   : > { %p2184_p10 = scmp.ne.s32.totalorder %s188_s29, %s2183_s27  ;;  %p2191_p9 = scmp.lt.s32.totalorder %s188_s29, %s188_s29 }
  0x2e   : > { %p2192_p1 = scmp.lt.s32.totalorder %s2183_s27, %s2183_s27 }
  0x2f   : > { %p2186_p12 = pnand %p2184_p10, %p2172_p13 }
  0x30   : > { %p2193_p2 = por %p2192_p1, %p2191_p9 }
  0x31   : > { %p2187_p0 = pneg %p2186_p12 }
  0x33   : > { %p2194_p6 = pnand %p2193_p2, %p2187_p0 }
  0x35   : > { %2197 = shalt.err (!%p2194_p6)
}
  0x36   : > { %s2322_s28 = smov [#allocation7]   ;;  %s3578_s2 = sld [smem:[#allocation47_spill]] }
  0x37   : > { %2073 = dma.vmem_to_smem (!%p2412_p11), %s188_s29, 32, %s2322_s28, [#allocation6]  }
  0x3c   : > { %s2198_s11 = scalar_lea.hbm %s3578_s2, 32 }
  0x3d   : > { %p2199_p3 = scmp.ne.s32.totalorder %s3578_s2, %s2198_s11  ;;  %p2205_p1 = scmp.lt.u32.totalorder %s2198_s11, %s3578_s2 }
  0x3f   : > { %p2201_p5 = pnand %p2199_p3, %p2172_p13 }
  0x41   : > { %p2202_p7 = pneg %p2201_p5 }
  0x43   : > { %p2207_p2 = pnand %p2205_p1, %p2202_p7 }
  0x45   : > { %2210 = shalt.err (!%p2207_p2)
}
  0x46   : > { %s2323_s16 = smov [#allocation8]   ;;  %p113_p6 = scmp.eq.s32.totalorder %s112_s8, 0 }
  0x47   : > { %2076 = dma.hbm_to_smem (!%p2412_p11), %s3578_s2, 32, %s2323_s16, [#allocation9]  }
  0x48   : > { %p122_p9 = scmp.ne.s32.totalorder %s2315_s20, %s2311_s19  ;;  %p123_p13 = scmp.eq.s32.totalorder %s2319_s21, 0 }
  0x49   : > { %p2088_p10 = scmp.lt.s32.totalorder %s2319_s21, 2  ;;  %p3580_p0 = scmp.eq.s32.totalorder %s2381_s22, 1 }
  0x4a   : > { %s2473_s30 = scalar_select %p113_p6, %s2315_s20, %s115_s7  }
  0x4b   : > { %p124_p12 = por %p123_p13, %p122_p9  ;;  %p2477_p3 = por %p3580_p0, %p122_p9 }
  0x4c   : > { %3579 = sst [smem:[#allocation24_spill]] %s2473_s30  ;;  %s210_s27 = sand.u32 1, %s2315_s20  }
  0x4d   : > { %s3581_s23 = scalar_select %p2477_p3, 1, 0 }
  0x4e   : > { %s1942_s28 = sshll.u32 %s2319_s21, 8  ;;  %s1896_s9 = sshll.u32 %s210_s27, 4 }
  0x4f   : > { %3582 = sst [smem:[#allocation25_spill]] %s3581_s23  ;;  %s3583_s4 = sld [smem:[#allocation48_spill]] }
  0x50   : > { %s214_s7 = scalar_lea.vmem [#allocation10], %s1896_s9  ;;  %p2488_p11 = pnand %p2088_p10, %p124_p12 }
  0x51   : > { %s221_s8 = sshll.u32 %s214_s7, 4  ;;  %s2494_s14 = scalar_lea.sflag [#allocation3], %s210_s27  ;;  %s2492_s8 = int_to_ptr.vmem [resolvable:$true] %s221_s8 }
  0x52   : > { %p2213_p7 = pneg %p2488_p11 }
  0x55   : > { %s2486_s12 = scalar_lea.hbm %s3583_s4, %s1942_s28  ;;  %s2216_s17 = scalar_lea.hbm %s3583_s4, 512 }
  0x56   : > { %s2211_s15 = scalar_lea.hbm %s2486_s12, 256  ;;  %p2217_p6 = scmp.lt.u32.totalorder %s2486_s12, %s3583_s4 }
  0x57   : > { %p2212_p5 = scmp.ne.s32.totalorder %s2486_s12, %s2211_s15  ;;  %p2218_p9 = scmp.lt.u32.totalorder %s2216_s17, %s2211_s15 }
  0x58   : > { %p2220_p10 = scmp.lt.u32.totalorder %s2211_s15, %s2486_s12 }
  0x59   : > { %p2214_p1 = pnand %p2213_p7, %p2212_p5  ;;  %p2219_p13 = por %p2218_p9, %p2217_p6 }
  0x5b   : > { %p2215_p2 = pneg %p2214_p1  ;;  %p2221_p12 = por %p2220_p10, %p2219_p13 }
  0x5d   : > { %p2222_p0 = pnand %p2221_p12, %p2215_p2 }
  0x5f   : > { %2225 = shalt.err (!%p2222_p0)
}
  0x60   : > { %s2226_s27 = scalar_lea.vmem %s2492_s8, 256  ;;  %s2324_s10 = smov [#allocation10]  }
  0x61   : > { %p2227_p5 = scmp.ne.s32.totalorder %s2492_s8, %s2226_s27  ;;  %s2231_s11 = sshll.u32 %s2324_s10, 4  ;;  %s2232_s11 = int_to_ptr.vmem [resolvable:$false] %s2231_s11 }
  0x62   : > { %s2233_s7 = scalar_lea.vmem %s2232_s11, 512  ;;  %p2234_p4 = scmp.lt.s32.totalorder %s2492_s8, %s2232_s11 }
  0x63   : > { %p2229_p1 = pnand %p2227_p5, %p2213_p7  ;;  %p2235_p6 = scmp.lt.s32.totalorder %s2233_s7, %s2226_s27 }
  0x65   : > { %p2230_p3 = pneg %p2229_p1  ;;  %p2236_p9 = por %p2235_p6, %p2234_p4 }
  0x67   : > { %p2237_p13 = pnand %p2236_p9, %p2230_p3 }
  0x69   : > { %2240 = shalt.err (!%p2237_p13)
}
  0x6a   : > { %s2325_s15 = smov 128   ;;  %s2326_s16 = smov 8  }
  0x6b   : > { %2080 = dma.hbm_to_vmem [thread:$0]  (!%p2488_p11), %s2486_s12, 256, %s2492_s8, %s2494_s14, %s2325_s15, %s2325_s15, %s2326_s16  }
  0x6c   : > { %233 = sbr.rel (%p2400_p8) target bundleno = 10594 (0x2962), region = 40 }
  0x73   : > { %p3585_p7 = scmp.eq.s32.totalorder %s2381_s22, 0 }
  0x75   : > { %2286 = dma.done.wait (%p3585_p7), [#allocation5], 16   ;;  %p3586_p2 = pmov %p3585_p7 }
  0x77   : > { %2288 = vsyncadd (%p3586_p2), [#allocation5], 4294967280  ;;  %p3587_p4 = pmov %p3586_p2 }
  0x78   : > { %p3588_p3 = pmov %p3586_p2 }
  0x79   : > { %2290 = dma.done.wait (%p3587_p4), [#allocation6], 32  }
  0x7a   : > { %2292 = vsyncadd (%p3588_p3), [#allocation6], 4294967264  ;;  %p3589_p10 = pmov %p3586_p2 }
  0x7b   : > { %p3590_p11 = pmov %p3586_p2 }
  0x7c   : > { %2294 = dma.done.wait (%p3589_p10), [#allocation9], 32  }
  0x7d   : > { %2296 = vsyncadd (%p3590_p11), [#allocation9], 4294967264  ;;  %s2537_s26 = sand.u32 1, %s2311_s19   ;;  %p3593_p8 = scmp.ne.s32.totalorder %s3570_s24, 0 }
  0x7e   : > { %3591 = sst [smem:[#allocation26_spill]] %s2537_s26  ;;  %s1903_s12 = sshll.u32 %s2537_s26, 4 }
  0x7f   : > { %s248_s8 = scalar_lea.sflag [#allocation3], %s2537_s26  ;;  %s2541_s13 = scalar_lea.vmem [#allocation10], %s1903_s12 }
  0x80   : > { %3592 = sst [smem:[#allocation27_spill]] %s2541_s13 }
  0x81   : > { %2298 = dma.done.wait (%p3593_p8), %s248_s8, 256  }
  0x82   : > { %2300 = vsyncadd (%p3593_p8), %s248_s8, 4294967040 }
  0x83   : > { %256 = sfence }
  0x84   : > { %v281_v0 = vld [vmem:[%s3515_s3 + $0x4] sm:$0x3]  ;;  %v282_v1 = vld [vmem:[%s3515_s3 + $0x6] sm:$0x3]  ;;  %s2554_s9 = sshll.u32 %s2381_s22, 7  ;;  %vm332_vm0 = vcmask 1041408   ;;  %v290_v37 = vlaneseq }
  0x85   : > { %v283_v2 = vmul.f32 0.5, %v281_v0  ;;  %v279_v3 = vld [vmem:[%s3515_s3] sm:$0x3]  ;;  %v285_v4 = vmul.f32 0.5, %v282_v1  ;;  %s2560_s24 = sld [smem:[#allocation8 + %s2554_s9]]  ;;  %s3527_s11 = sadd.s32 1, %s2554_s9  ;;  %v2605_v17 = vmul.f32 %v282_v1, %v281_v0 }
  0x86   : > { %v280_v5 = vld [vmem:[%s3515_s3 + $0x2] sm:$0x3]  ;;  %s2568_s16 = sld [smem:[#allocation8 + %s3527_s11]]  ;;  %s3522_s12 = sadd.s32 2, %s2554_s9  ;;  %v291_v38 = vshrl.u32 %v290_v37, 7  ;;  %v2615_v39 = vand.u32 127, %v290_v37 }
  0x87   : > { %s2573_s8 = sld [smem:[#allocation8 + %s3522_s12]]  ;;  %s3521_s14 = sadd.s32 3, %s2554_s9  ;;  %v2576_v6 = vsub.f32 %v279_v3, %v283_v2  ;;  %v2582_v7 = vsub.f32 %v280_v5, %v285_v4  ;;  %v2584_v8 = vadd.f32 %v283_v2, %v279_v3  ;;  %v2586_v9 = vadd.f32 %v285_v4, %v280_v5 }
  0x88   : > { %s2580_s29 = sld [smem:[#allocation8 + %s3521_s14]]  ;;  %v294_v40 = vmul.u32 128, %v291_v38  ;;  %s3526_s7 = sadd.s32 4, %s2554_s9 }
  0x89   : > { %s3525_s15 = sadd.s32 5, %s2554_s9  ;;  %s459_s11 = sadd.s32 10, %s2554_s9 }
  0x8a   : > { %v2618_v41 = vadd.s32 %v294_v40, %v2615_v39  ;;  %s461_s0 = sadd.s32 11, %s2554_s9  ;;  %s2676_s1 = sld [smem:[#allocation8 + %s459_s11]] }
  0x8b   : > { %v304_v10 = vstv %s2560_s24  ;;  %s2678_s2 = sld [smem:[#allocation8 + %s461_s0]]  ;;  %s537_s30 = sadd.s32 13, %s2554_s9 }
  0x8c   : > { %v305_v11 = vmax.f32 %v2576_v6, %v304_v10  ;;  %v306_v12 = vstv %s2568_s16  ;;  %s541_s19 = sadd.s32 15, %s2554_s9  ;;  %s621_s25 = sadd.s32 19, %s2554_s9 }
  0x8d   : > { %v307_v13 = vmax.f32 %v2582_v7, %v306_v12  ;;  %v308_v14 = vstv %s2573_s8  ;;  %s317_s17 = ssub.f32 %s2573_s8, %s2560_s24  ;;  %s2730_s21 = sld [smem:[#allocation8 + %s541_s19]] }
  0x8e   : > { %v309_v15 = vmin.f32 %v2584_v8, %v308_v14  ;;  %v310_v16 = vstv %s2580_s29  ;;  %s318_s28 = ssub.f32 %s2580_s29, %s2568_s16  ;;  %s2809_s5 = sld [smem:[#allocation8 + %s621_s25]] }
  0x8f   : > { %v311_v18 = vmin.f32 %v2586_v9, %v310_v16  ;;  %s701_s26 = sadd.s32 23, %s2554_s9 }
  0x90   : > { %v312_v19 = vsub.f32 %v309_v15, %v305_v11  ;;  %s319_s27 = smul.f32 %s318_s28, %s317_s17  ;;  %s3524_s17 = sadd.s32 6, %s2554_s9  ;;  %v467_v38 = vstv %s2676_s1 }
  0x91   : > { %v314_v20 = vsub.f32 %v311_v18, %v307_v13  ;;  %s3523_s28 = sadd.s32 7, %s2554_s9  ;;  %s2637_s14 = sld [smem:[#allocation8 + %s3524_s17]]  ;;  %v469_v40 = vstv %s2678_s2 }
  0x92   : > { %v313_v21 = vmax.f32 %v312_v19, 0.0  ;;  %v320_v22 = vstv %s319_s27  ;;  %s2629_s27 = sld [smem:[#allocation8 + %s3526_s7]] }
  0x93   : > { %v315_v23 = vmax.f32 %v314_v20, 0.0  ;;  %v321_v24 = vadd.f32 %v320_v22, %v2605_v17  ;;  %s2641_s12 = sld [smem:[#allocation8 + %s3523_s28]] }
  0x94   : > { %3594 = sst [smem:[#allocation28_spill]] %s2730_s21 }
  0x95   : > { %v316_v25 = vmul.f32 %v315_v23, %v313_v21  ;;  %3606 = sst [smem:[#allocation32_spill]] %s2809_s5 }
  0x97   : > { %v322_v26 = vsub.f32 %v321_v24, %v316_v25  ;;  %v387_v49 = vstv %s2637_s14 }
  0x98   : > { %v383_v47 = vstv %s2629_s27  ;;  %v388_v53 = vmin.f32 %v2584_v8, %v387_v49  ;;  %s396_s28 = ssub.f32 %s2637_s14, %s2629_s27 }
  0x99   : > { %2132 = vrcp.f32 %v322_v26  ;;  %v389_v50 = vstv %s2641_s12  ;;  %v384_v51 = vmax.f32 %v2576_v6, %v383_v47 }
  0x9a   : > { %v390_v54 = vmin.f32 %v2586_v9, %v389_v50 }
  0x9b   : > { %v391_v55 = vsub.f32 %v388_v53, %v384_v51 }
  0x9d   : > { %v392_v57 = vmax.f32 %v391_v55, 0.0 }
  0xa3   : > { %v2133_v27 = vpop.eup %2132 }
  0xa4   : > { %v2611_v28 = vmul.f32 %v2133_v27, %v316_v25 }
  0xa6   : > { %v333_v29 = vsel %vm332_vm0, %v2611_v28, -inf  ;;  %vm326_vm11 = vcmp.gt.f32.partialorder %v2611_v28, -1.0 }
  0xa7   : > { %334 = vmax.xlane.f32.xlu0 %v333_v29 }
 0x134   : > { %v335_v30 = vpop.xlane.xlu0 %334 }
 0x135   : > { %v336_v31 = vrot.slane %v335_v30, 4 }
 0x137   : > { %v337_v32 = vmax.f32 %v335_v30, %v336_v31 }
 0x139   : > { %v338_v33 = vrot.slane %v337_v32, 2 }
 0x13b   : > { %v339_v34 = vmax.f32 %v337_v32, %v338_v33 }
 0x13d   : > { %v340_v35 = vrot.slane %v339_v34, 1 }
 0x13f   : > { %v341_v36 = vmax.f32 %v339_v34, %v340_v35 }
 0x141   : > { %1943 = vpush %v341_v36 }
 0x172   : > { %s1944_s10 = spop %1943 }
 0x173   : > { %v343_v42 = vstv %s1944_s10  ;;  %s2633_s10 = sld [smem:[#allocation8 + %s3525_s15]] }
 0x174   : > { %vm344_vm1 = vcmp.ge.f32.partialorder %v2611_v28, %v343_v42 }
 0x175   : > { %v345_v43 = vsel %vm344_vm1, %v2618_v41, 256 }
 0x176   : > { %v346_v44 = vsel %vm332_vm0, %v345_v43, 2147483647  ;;  %v468_v43 = vmin.f32 %v2584_v8, %v467_v38 }
 0x177   : > { %v348_v45 = vshra.s32 %v346_v44, 16  ;;  %v347_v63 = vand.u32 65535, %v346_v44  ;;  %v470_v44 = vmin.f32 %v2586_v9, %v469_v40 }
 0x179   : > { %v350_v46 = vcvt.s32.f32 %v348_v45  ;;  %v385_v48 = vstv %s2633_s10  ;;  %s397_s17 = ssub.f32 %s2641_s12, %s2633_s10  ;;  %v349_v2 = vcvt.s32.f32 %v347_v63 }
 0x17a   : > { %v386_v52 = vmax.f32 %v2582_v7, %v385_v48 }
 0x17b   : > { %351 = vmin.xlane.f32.xlu0 %v350_v46  ;;  %s398_s15 = smul.f32 %s397_s17, %s396_s28  ;;  %s457_s17 = sadd.s32 9, %s2554_s9 }
 0x17c   : > { %v393_v56 = vsub.f32 %v390_v54, %v386_v52  ;;  %s2672_s7 = sld [smem:[#allocation8 + %s457_s17]] }
 0x17d   : > { %v399_v59 = vstv %s398_s15  ;;  %s455_s15 = sadd.s32 8, %s2554_s9 }
 0x17e   : > { %v394_v58 = vmax.f32 %v393_v56, 0.0  ;;  %v400_v61 = vadd.f32 %v399_v59, %v2605_v17  ;;  %s2670_s28 = sld [smem:[#allocation8 + %s455_s15]] }
 0x180   : > { %v395_v60 = vmul.f32 %v394_v58, %v392_v57 }
 0x182   : > { %v401_v62 = vsub.f32 %v400_v61, %v395_v60  ;;  %v465_v35 = vstv %s2672_s7  ;;  %s477_s0 = ssub.f32 %s2678_s2, %s2672_s7 }
 0x183   : > { %v466_v37 = vmax.f32 %v2582_v7, %v465_v35 }
 0x184   : > { %2134 = vrcp.f32 %v401_v62  ;;  %v463_v34 = vstv %s2670_s28  ;;  %s476_s17 = ssub.f32 %s2676_s1, %s2670_s28 }
 0x185   : > { %v464_v36 = vmax.f32 %v2576_v6, %v463_v34  ;;  %v473_v51 = vsub.f32 %v470_v44, %v466_v37 }
 0x186   : > { %s478_s4 = smul.f32 %s477_s0, %s476_s17  ;;  %s535_s0 = sadd.s32 12, %s2554_s9 }
 0x187   : > { %v474_v55 = vmax.f32 %v473_v51, 0.0  ;;  %s2722_s20 = sld [smem:[#allocation8 + %s535_s0]] }
 0x188   : > { %v479_v56 = vstv %s478_s4  ;;  %s2711_s4 = sld [smem:[#allocation2 + %s2381_s22]] }
 0x189   : > { %v480_v57 = vadd.f32 %v479_v56, %v2605_v17  ;;  %v549_v56 = vstv %s2730_s21 }
 0x18d   : > { %v543_v44 = vstv %s2722_s20 }
 0x18e   : > { %v2135_v0 = vpop.eup %2134  ;;  %p325_p12 = scmp.gt.s32.totalorder %s2711_s4, 0  ;;  %p404_p0 = scmp.gt.s32.totalorder %s2711_s4, 1  ;;  %v544_v51 = vmax.f32 %v2576_v6, %v543_v44 }
 0x18f   : > { %v2664_v3 = vmul.f32 %v2135_v0, %v395_v60  ;;  %p484_p5 = scmp.gt.s32.totalorder %s2711_s4, 2  ;;  %p564_p1 = scmp.gt.s32.totalorder %s2711_s4, 3 }
 0x190   : > { %s406_s17 = scalar_select %p404_p0, 1, 0 }
 0x191   : > { %v412_v5 = vsel %vm332_vm0, %v2664_v3, -inf  ;;  %s486_s0 = scalar_select %p484_p5, 1, 0 }
 0x192   : > { %p644_p6 = scmp.gt.s32.totalorder %s2711_s4, 4  ;;  %p724_p9 = scmp.gt.s32.totalorder %s2711_s4, 5 }
 0x193   : > { %p804_p13 = scmp.gt.s32.totalorder %s2711_s4, 6  ;;  %p884_p7 = scmp.gt.s32.totalorder %s2711_s4, 7 }
 0x194   : > { %s3139_s4 = sld [smem:[#allocation7 + %s2554_s9]] }
 0x208   : > { %v352_v1 = vpop.xlane.xlu0 %351 }
 0x209   : > { %vm353_vm2 = vcmp.eq.f32.partialorder %v350_v46, %v352_v1  ;;  %v358_v11 = vcvt.f32.s32 %v352_v1  ;;  %v471_v46 = vsub.f32 %v468_v43, %v464_v36  ;;  %v407_v43 = vstv %s406_s17 }
 0x20a   : > { %v354_v4 = vsel %vm353_vm2, %v349_v2, inf  ;;  %vm2733_vm2 = vcmp.eq.s32.totalorder %v407_v43, 1 }
 0x20b   : > { %355 = vmin.xlane.f32.xlu1 %v354_v4  ;;  %v359_v15 = vshll.u32 %v358_v11, 16  ;;  %v472_v54 = vmax.f32 %v471_v46, 0.0 }
 0x20d   : > { %v475_v59 = vmul.f32 %v474_v55, %v472_v54 }
 0x20f   : > { %413 = vmax.xlane.f32.xlu1 %v412_v5  ;;  %v481_v60 = vsub.f32 %v480_v57, %v475_v59 }
 0x211   : > { %2136 = vrcp.f32 %v481_v60  ;;  %v2327_v60 = vmov 0  }
 0x21b   : > { %v2137_v61 = vpop.eup %2136 }
 0x21c   : > { %v2706_v62 = vmul.f32 %v2137_v61, %v475_v59  ;;  %v550_v59 = vmin.f32 %v2586_v9, %v549_v56 }
 0x21e   : > { %v492_v63 = vsel %vm332_vm0, %v2706_v62, -inf }
 0x298   : > { %v356_v13 = vpop.xlane.xlu1 %355 }
 0x299   : > { %v357_v18 = vcvt.f32.s32 %v356_v13 }
 0x29b   : > { %v360_v19 = vadd.s32 %v359_v15, %v357_v18 }
 0x29c   : > { %v414_v20 = vpop.xlane.xlu1 %413 }
 0x29d   : > { %v361_v21 = vrot.slane %v360_v19, 4  ;;  %v415_v22 = vrot.slane %v414_v20, 4 }
 0x29f   : > { %vm362_vm3 = vcmp.lt.s32.totalorder %v360_v19, %v361_v21  ;;  %v416_v23 = vmax.f32 %v414_v20, %v415_v22 }
 0x2a0   : > { %v363_v24 = vsel %vm362_vm3, %v360_v19, %v361_v21 }
 0x2a1   : > { %v417_v25 = vrot.slane %v416_v23, 2  ;;  %v364_v26 = vrot.slane %v363_v24, 2 }
 0x2a3   : > { %vm365_vm4 = vcmp.lt.s32.totalorder %v363_v24, %v364_v26  ;;  %v418_v27 = vmax.f32 %v416_v23, %v417_v25 }
 0x2a4   : > { %v366_v29 = vsel %vm365_vm4, %v363_v24, %v364_v26 }
 0x2a5   : > { %v367_v30 = vrot.slane %v366_v29, 1  ;;  %v419_v31 = vrot.slane %v418_v27, 1 }
 0x2a7   : > { %vm368_vm5 = vcmp.lt.s32.totalorder %v366_v29, %v367_v30  ;;  %v420_v32 = vmax.f32 %v418_v27, %v419_v31 }
 0x2a8   : > { %v369_v33 = vsel %vm368_vm5, %v366_v29, %v367_v30 }
 0x2a9   : > { %1945 = vpush %v369_v33 }
 0x2aa   : > { %1947 = vpush %v420_v32 }
 0x2da   : > { %s2682_s15 = spop %1945 }
 0x2db   : > { %s1948_s11 = spop %1947  ;;  %v371_v36 = vstv %s2682_s15  ;;  %s539_s15 = sadd.s32 14, %s2554_s9 }
 0x2dc   : > { %v422_v42 = vstv %s1948_s11  ;;  %s327_s11 = scalar_select %p325_p12, 1, 0  ;;  %vm372_vm14 = vcmp.eq.s32.totalorder %v2618_v41, %v371_v36 }
 0x2dd   : > { %vm423_vm6 = vcmp.ge.f32.partialorder %v2664_v3, %v422_v42  ;;  %s2728_s6 = sld [smem:[#allocation8 + %s539_s15]] }
 0x2de   : > { %v424_v45 = vsel %vm423_vm6, %v2618_v41, 256  ;;  %v328_v33 = vstv %s327_s11  ;;  %s2724_s11 = sld [smem:[#allocation8 + %s537_s30]] }
 0x2df   : > { %v425_v52 = vsel %vm332_vm0, %v424_v45, 2147483647  ;;  %vm329_vm12 = vcmp.eq.s32.totalorder %v328_v33, 1 }
 0x2e0   : > { %v427_v53 = vshra.s32 %v425_v52, 16  ;;  %v426_v0 = vand.u32 65535, %v425_v52  ;;  %vm330_vm13 = vmand %vm329_vm12, %vm326_vm11  ;;  %v487_v52 = vstv %s486_s0 }
 0x2e1   : > { %v331_v37 = vsel %vm330_vm13, %v2611_v28, -1.0  ;;  %vm373_vm15 = vmand %vm329_vm12, %vm372_vm14 }
 0x2e2   : > { %v429_v58 = vcvt.s32.f32 %v427_v53  ;;  %v428_v2 = vcvt.s32.f32 %v426_v0  ;;  %v374_v42 = vsel %vm373_vm15, 1.0, %v331_v37 }
 0x2e3   : > { %vm405_vm1 = vcmp.gt.f32.partialorder %v2664_v3, %v374_v42  ;;  %v547_v55 = vstv %s2728_s6  ;;  %s556_s17 = ssub.f32 %s2728_s6, %s2722_s20 }
 0x2e4   : > { %430 = vmin.xlane.f32.xlu0 %v429_v58  ;;  %v545_v45 = vstv %s2724_s11  ;;  %vm2741_vm3 = vmand %vm2733_vm2, %vm405_vm1  ;;  %s557_s15 = ssub.f32 %s2730_s21, %s2724_s11 }
 0x2e5   : > { %v546_v54 = vmax.f32 %v2582_v7, %v545_v45  ;;  %v410_v61 = vsel %vm2741_vm3, 1, %v2327_v60 }
 0x2e6   : > { %s558_s0 = smul.f32 %s557_s15, %s556_s17 }
 0x2e8   : > { %493 = vmax.xlane.f32.xlu0 %v492_v63  ;;  %v411_v63 = vsel %vm2741_vm3, %v2664_v3, %v374_v42 }
 0x371   : > { %v431_v1 = vpop.xlane.xlu0 %430 }
 0x372   : > { %vm432_vm7 = vcmp.eq.f32.partialorder %v429_v58, %v431_v1  ;;  %v437_v13 = vcvt.f32.s32 %v431_v1  ;;  %v548_v58 = vmin.f32 %v2584_v8, %v547_v55 }
 0x373   : > { %v433_v4 = vsel %vm432_vm7, %v428_v2, inf  ;;  %vm2772_vm7 = vcmp.eq.s32.totalorder %v487_v52, 1 }
 0x374   : > { %434 = vmin.xlane.f32.xlu1 %v433_v4  ;;  %v438_v19 = vshll.u32 %v437_v13, 16 }
 0x375   : > { %v494_v5 = vpop.xlane.xlu0 %493 }
 0x376   : > { %v495_v11 = vrot.slane %v494_v5, 4 }
 0x378   : > { %v496_v15 = vmax.f32 %v494_v5, %v495_v11  ;;  %v551_v5 = vsub.f32 %v548_v58, %v544_v51  ;;  %v553_v11 = vsub.f32 %v550_v59, %v546_v54 }
 0x37a   : > { %v497_v22 = vrot.slane %v496_v15, 2 }
 0x37c   : > { %v498_v25 = vmax.f32 %v496_v15, %v497_v22  ;;  %v552_v15 = vmax.f32 %v551_v5, 0.0 }
 0x37e   : > { %v499_v29 = vrot.slane %v498_v25, 1 }
 0x380   : > { %v500_v32 = vmax.f32 %v498_v25, %v499_v29 }
 0x401   : > { %v435_v18 = vpop.xlane.xlu1 %434 }
 0x402   : > { %v436_v20 = vcvt.f32.s32 %v435_v18  ;;  %v559_v18 = vstv %s558_s0  ;;  %s619_s0 = sadd.s32 18, %s2554_s9 }
 0x403   : > { %s2807_s18 = sld [smem:[#allocation8 + %s619_s0]] }
 0x404   : > { %v439_v21 = vadd.s32 %v438_v19, %v436_v20  ;;  %v554_v20 = vmax.f32 %v553_v11, 0.0 }
 0x406   : > { %v440_v23 = vrot.slane %v439_v21, 4 }
 0x408   : > { %vm441_vm8 = vcmp.lt.s32.totalorder %v439_v21, %v440_v23 }
 0x409   : > { %v442_v24 = vsel %vm441_vm8, %v439_v21, %v440_v23  ;;  %v560_v21 = vadd.f32 %v559_v18, %v2605_v17  ;;  %3605 = sst [smem:[#allocation31_spill]] %s2807_s18 }
 0x40a   : > { %v443_v26 = vrot.slane %v442_v24, 2 }
 0x40c   : > { %vm444_vm9 = vcmp.lt.s32.totalorder %v442_v24, %v443_v26 }
 0x40d   : > { %v445_v27 = vsel %vm444_vm9, %v442_v24, %v443_v26  ;;  %v555_v24 = vmul.f32 %v554_v20, %v552_v15 }
 0x40e   : > { %v446_v30 = vrot.slane %v445_v27, 1 }
 0x40f   : > { %v561_v25 = vsub.f32 %v560_v21, %v555_v24  ;;  %v627_v21 = vstv %s2807_s18 }
 0x410   : > { %vm447_vm10 = vcmp.lt.s32.totalorder %v445_v27, %v446_v30 }
 0x411   : > { %v448_v31 = vsel %vm447_vm10, %v445_v27, %v446_v30  ;;  %2138 = vrcp.f32 %v561_v25  ;;  %v628_v25 = vmin.f32 %v2584_v8, %v627_v21 }
 0x412   : > { %1949 = vpush %v448_v31 }
 0x413   : > { %1951 = vpush %v500_v32 }
 0x41b   : > { %v2139_v26 = vpop.eup %2138 }
 0x41c   : > { %v2794_v27 = vmul.f32 %v2139_v26, %v555_v24 }
 0x41e   : > { %v572_v29 = vsel %vm332_vm0, %v2794_v27, -inf }
 0x443   : > { %s1950_s19 = spop %1949 }
 0x444   : > { %v450_v53 = vstv %s1950_s19  ;;  %s1952_s30 = spop %1951  ;;  %s615_s19 = sadd.s32 16, %s2554_s9 }
 0x445   : > { %vm451_vm4 = vcmp.eq.s32.totalorder %v2618_v41, %v450_v53  ;;  %v502_v57 = vstv %s1952_s30  ;;  %s617_s30 = sadd.s32 17, %s2554_s9  ;;  %s2801_s17 = sld [smem:[#allocation8 + %s615_s19]] }
 0x446   : > { %vm452_vm5 = vmand %vm2733_vm2, %vm451_vm4  ;;  %vm503_vm6 = vcmp.ge.f32.partialorder %v2706_v62, %v502_v57  ;;  %s2803_s15 = sld [smem:[#allocation8 + %s617_s30]] }
 0x447   : > { %v2776_v1 = vsel %vm452_vm5, 1, %v410_v61  ;;  %v2778_v2 = vsel %vm452_vm5, 1.0, %v411_v63  ;;  %v504_v4 = vsel %vm503_vm6, %v2618_v41, 256  ;;  %s566_s19 = scalar_select %p564_p1, 1, 0 }
 0x448   : > { %vm485_vm8 = vcmp.gt.f32.partialorder %v2706_v62, %v2778_v2  ;;  %v505_v3 = vsel %vm332_vm0, %v504_v4, 2147483647 }
 0x449   : > { %v507_v13 = vshra.s32 %v505_v3, 16  ;;  %vm2786_vm9 = vmand %vm2772_vm7, %vm485_vm8  ;;  %v506_v30 = vand.u32 65535, %v505_v3  ;;  %v567_v15 = vstv %s566_s19 }
 0x44a   : > { %v490_v22 = vsel %vm2786_vm9, 2, %v2776_v1  ;;  %vm2839_vm2 = vcmp.eq.s32.totalorder %v567_v15, 1 }
 0x44b   : > { %v509_v23 = vcvt.s32.f32 %v507_v13  ;;  %v508_v32 = vcvt.s32.f32 %v506_v30  ;;  %3603 = sst [smem:[#allocation29_spill]] %s2801_s17  ;;  %v623_v3 = vstv %s2801_s17 }
 0x44c   : > { %3604 = sst [smem:[#allocation30_spill]] %s2803_s15  ;;  %v625_v11 = vstv %s2803_s15  ;;  %v624_v13 = vmax.f32 %v2576_v6, %v623_v3 }
 0x44d   : > { %510 = vmin.xlane.f32.xlu1 %v509_v23  ;;  %v626_v20 = vmax.f32 %v2582_v7, %v625_v11  ;;  %s636_s25 = ssub.f32 %s2807_s18, %s2801_s17  ;;  %s3645_s17 = sadd.s32 7, %s2554_s9 }
 0x44e   : > { %s637_s23 = ssub.f32 %s2809_s5, %s2803_s15  ;;  %s3644_s15 = sadd.s32 6, %s2554_s9 }
 0x450   : > { %s638_s19 = smul.f32 %s637_s23, %s636_s25  ;;  %s695_s23 = sadd.s32 20, %s2554_s9 }
 0x451   : > { %573 = vmax.xlane.f32.xlu1 %v572_v29  ;;  %v491_v29 = vsel %vm2786_vm9, %v2706_v62, %v2778_v2  ;;  %v631_v62 = vsub.f32 %v628_v25, %v624_v13 }
 0x4da   : > { %v511_v31 = vpop.xlane.xlu1 %510 }
 0x4db   : > { %vm512_vm10 = vcmp.eq.f32.partialorder %v509_v23, %v511_v31  ;;  %v517_v42 = vcvt.f32.s32 %v511_v31  ;;  %v629_v23 = vstv %s2809_s5  ;;  %s2880_s5 = sld [smem:[#allocation8 + %s701_s26]] }
 0x4dc   : > { %v513_v33 = vsel %vm512_vm10, %v508_v32, inf  ;;  %v630_v26 = vmin.f32 %v2586_v9, %v629_v23 }
 0x4dd   : > { %514 = vmin.xlane.f32.xlu0 %v513_v33  ;;  %v518_v46 = vshll.u32 %v517_v42, 16  ;;  %v639_v42 = vstv %s638_s19  ;;  %s699_s19 = sadd.s32 22, %s2554_s9 }
 0x4de   : > { %v574_v36 = vpop.xlane.xlu1 %573  ;;  %v633_v2 = vsub.f32 %v630_v26, %v626_v20  ;;  %s2878_s22 = sld [smem:[#allocation8 + %s699_s19]] }
 0x4df   : > { %v575_v37 = vrot.slane %v574_v36, 4 }
 0x4e0   : > { %v634_v19 = vmax.f32 %v633_v2, 0.0 }
 0x4e1   : > { %v576_v43 = vmax.f32 %v574_v36, %v575_v37  ;;  %v632_v37 = vmax.f32 %v631_v62, 0.0  ;;  %3614 = sst [smem:[#allocation36_spill]] %s2880_s5 }
 0x4e3   : > { %v577_v53 = vrot.slane %v576_v43, 2 }
 0x4e4   : > { %3613 = sst [smem:[#allocation35_spill]] %s2878_s22 }
 0x4e5   : > { %v578_v58 = vmax.f32 %v576_v43, %v577_v53 }
 0x4e7   : > { %v579_v61 = vrot.slane %v578_v58, 1 }
 0x4e9   : > { %v580_v5 = vmax.f32 %v578_v58, %v579_v61 }
 0x56a   : > { %v515_v28 = vpop.xlane.xlu0 %514 }
 0x56b   : > { %v516_v51 = vcvt.f32.s32 %v515_v28 }
 0x56d   : > { %v519_v52 = vadd.s32 %v518_v46, %v516_v51  ;;  %v635_v46 = vmul.f32 %v634_v19, %v632_v37 }
 0x56f   : > { %v520_v54 = vrot.slane %v519_v52, 4 }
 0x571   : > { %vm521_vm11 = vcmp.lt.s32.totalorder %v519_v52, %v520_v54 }
 0x572   : > { %v522_v57 = vsel %vm521_vm11, %v519_v52, %v520_v54 }
 0x573   : > { %v523_v59 = vrot.slane %v522_v57, 2 }
 0x575   : > { %vm524_vm12 = vcmp.lt.s32.totalorder %v522_v57, %v523_v59 }
 0x576   : > { %v525_v60 = vsel %vm524_vm12, %v522_v57, %v523_v59 }
 0x577   : > { %v526_v63 = vrot.slane %v525_v60, 1 }
 0x579   : > { %vm527_vm13 = vcmp.lt.s32.totalorder %v525_v60, %v526_v63 }
 0x57a   : > { %v528_v4 = vsel %vm527_vm13, %v525_v60, %v526_v63 }
 0x57b   : > { %1953 = vpush %v528_v4 }
 0x57c   : > { %1955 = vpush %v580_v5 }
 0x5ac   : > { %s1954_s30 = spop %1953 }
 0x5ad   : > { %v530_v18 = vstv %s1954_s30  ;;  %s1956_s0 = spop %1955  ;;  %s697_s30 = sadd.s32 21, %s2554_s9 }
 0x5ae   : > { %vm531_vm14 = vcmp.eq.s32.totalorder %v2618_v41, %v530_v18  ;;  %v582_v24 = vstv %s1956_s0  ;;  %s2872_s0 = sld [smem:[#allocation8 + %s695_s23]] }
 0x5af   : > { %vm532_vm15 = vmand %vm2772_vm7, %vm531_vm14  ;;  %vm583_vm1 = vcmp.ge.f32.partialorder %v2794_v27, %v582_v24  ;;  %s2874_s25 = sld [smem:[#allocation8 + %s697_s30]] }
 0x5b0   : > { %v2847_v31 = vsel %vm532_vm15, 2, %v490_v22  ;;  %v2849_v32 = vsel %vm532_vm15, 1.0, %v491_v29  ;;  %v584_v33 = vsel %vm583_vm1, %v2618_v41, 256  ;;  %v640_v22 = vadd.f32 %v639_v42, %v2605_v17  ;;  %s646_s23 = scalar_select %p644_p6, 1, 0 }
 0x5b1   : > { %vm565_vm3 = vcmp.gt.f32.partialorder %v2794_v27, %v2849_v32  ;;  %v585_v0 = vsel %vm332_vm0, %v584_v33, 2147483647 }
 0x5b2   : > { %v587_v36 = vshra.s32 %v585_v0, 16  ;;  %vm2857_vm4 = vmand %vm2839_vm2, %vm565_vm3  ;;  %v641_v51 = vsub.f32 %v640_v22, %v635_v46  ;;  %v586_v57 = vand.u32 65535, %v585_v0 }
 0x5b3   : > { %v570_v43 = vsel %vm2857_vm4, 3, %v2847_v31 }
 0x5b4   : > { %v589_v28 = vcvt.s32.f32 %v587_v36  ;;  %2140 = vrcp.f32 %v641_v51  ;;  %v588_v59 = vcvt.s32.f32 %v586_v57  ;;  %3611 = sst [smem:[#allocation33_spill]] %s2872_s0  ;;  %v703_v42 = vstv %s2872_s0 }
 0x5b5   : > { %3612 = sst [smem:[#allocation34_spill]] %s2874_s25  ;;  %v705_v19 = vstv %s2874_s25  ;;  %v704_v22 = vmax.f32 %v2576_v6, %v703_v42 }
 0x5b6   : > { %590 = vmin.xlane.f32.xlu0 %v589_v28  ;;  %v706_v51 = vmax.f32 %v2582_v7, %v705_v19  ;;  %s716_s26 = ssub.f32 %s2878_s22, %s2872_s0 }
 0x5b7   : > { %s717_s18 = ssub.f32 %s2880_s5, %s2874_s25 }
 0x5be   : > { %v2141_v52 = vpop.eup %2140 }
 0x5bf   : > { %v2865_v53 = vmul.f32 %v2141_v52, %v635_v46  ;;  %v707_v52 = vstv %s2878_s22 }
 0x5c1   : > { %v652_v54 = vsel %vm332_vm0, %v2865_v53, -inf }
 0x5c2   : > { %653 = vmax.xlane.f32.xlu0 %v652_v54  ;;  %v709_v54 = vstv %s2880_s5  ;;  %s781_s5 = sadd.s32 27, %s2554_s9 }
 0x5c3   : > { %s2951_s25 = sld [smem:[#allocation8 + %s781_s5]] }
 0x5c9   : > { %3622 = sst [smem:[#allocation40_spill]] %s2951_s25 }
 0x643   : > { %v591_v58 = vpop.xlane.xlu0 %590 }
 0x644   : > { %vm592_vm5 = vcmp.eq.f32.partialorder %v589_v28, %v591_v58  ;;  %v597_v4 = vcvt.f32.s32 %v591_v58  ;;  %v647_v28 = vstv %s646_s23  ;;  %v708_v58 = vmin.f32 %v2584_v8, %v707_v52  ;;  %s718_s23 = smul.f32 %s717_s18, %s716_s26  ;;  %s775_s18 = sadd.s32 24, %s2554_s9 }
 0x645   : > { %v593_v60 = vsel %vm592_vm5, %v588_v59, inf  ;;  %v710_v59 = vmin.f32 %v2586_v9, %v709_v54  ;;  %vm2910_vm12 = vcmp.eq.s32.totalorder %v647_v28, 1 }
 0x646   : > { %594 = vmin.xlane.f32.xlu1 %v593_v60  ;;  %v598_v15 = vshll.u32 %v597_v4, 16  ;;  %v571_v60 = vsel %vm2857_vm4, %v2794_v27, %v2849_v32  ;;  %v711_v27 = vsub.f32 %v708_v58, %v704_v22 }
 0x647   : > { %v713_v32 = vsub.f32 %v710_v59, %v706_v51 }
 0x649   : > { %v714_v1 = vmax.f32 %v713_v32, 0.0 }
 0x64f   : > { %v654_v61 = vpop.xlane.xlu0 %653 }
 0x650   : > { %v655_v63 = vrot.slane %v654_v61, 4 }
 0x652   : > { %v656_v5 = vmax.f32 %v654_v61, %v655_v63 }
 0x654   : > { %v657_v24 = vrot.slane %v656_v5, 2 }
 0x656   : > { %v658_v29 = vmax.f32 %v656_v5, %v657_v24 }
 0x658   : > { %v659_v0 = vrot.slane %v658_v29, 1 }
 0x65a   : > { %v660_v37 = vmax.f32 %v658_v29, %v659_v0 }
 0x6d3   : > { %v595_v13 = vpop.xlane.xlu1 %594 }
 0x6d4   : > { %v596_v18 = vcvt.f32.s32 %v595_v13 }
 0x6d6   : > { %v599_v20 = vadd.s32 %v598_v15, %v596_v18  ;;  %v712_v15 = vmax.f32 %v711_v27, 0.0  ;;  %v719_v18 = vstv %s718_s23  ;;  %s779_s23 = sadd.s32 26, %s2554_s9 }
 0x6d7   : > { %s2949_s22 = sld [smem:[#allocation8 + %s779_s23]] }
 0x6d8   : > { %v600_v25 = vrot.slane %v599_v20, 4 }
 0x6da   : > { %vm601_vm6 = vcmp.lt.s32.totalorder %v599_v20, %v600_v25 }
 0x6db   : > { %v602_v26 = vsel %vm601_vm6, %v599_v20, %v600_v25  ;;  %v715_v25 = vmul.f32 %v714_v1, %v712_v15 }
 0x6dc   : > { %v603_v33 = vrot.slane %v602_v26, 2 }
 0x6dd   : > { %3621 = sst [smem:[#allocation39_spill]] %s2949_s22 }
 0x6de   : > { %vm604_vm7 = vcmp.lt.s32.totalorder %v602_v26, %v603_v33 }
 0x6df   : > { %v605_v62 = vsel %vm604_vm7, %v602_v26, %v603_v33 }
 0x6e0   : > { %v606_v2 = vrot.slane %v605_v62, 1 }
 0x6e2   : > { %vm607_vm8 = vcmp.lt.s32.totalorder %v605_v62, %v606_v2 }
 0x6e3   : > { %v608_v36 = vsel %vm607_vm8, %v605_v62, %v606_v2 }
 0x6e4   : > { %1957 = vpush %v608_v36 }
 0x6e5   : > { %1959 = vpush %v660_v37 }
 0x715   : > { %s1958_s30 = spop %1957 }
 0x716   : > { %v610_v46 = vstv %s1958_s30  ;;  %s1960_s19 = spop %1959  ;;  %s777_s30 = sadd.s32 25, %s2554_s9 }
 0x717   : > { %vm611_vm9 = vcmp.eq.s32.totalorder %v2618_v41, %v610_v46  ;;  %v662_v57 = vstv %s1960_s19  ;;  %s2943_s19 = sld [smem:[#allocation8 + %s775_s18]] }
 0x718   : > { %vm612_vm10 = vmand %vm2839_vm2, %vm611_vm9  ;;  %vm663_vm11 = vcmp.ge.f32.partialorder %v2865_v53, %v662_v57  ;;  %s2945_s26 = sld [smem:[#allocation8 + %s777_s30]] }
 0x719   : > { %v2918_v63 = vsel %vm612_vm10, 3, %v570_v43  ;;  %v2920_v4 = vsel %vm612_vm10, 1.0, %v571_v60  ;;  %v664_v5 = vsel %vm663_vm11, %v2618_v41, 256  ;;  %v720_v43 = vadd.f32 %v719_v18, %v2605_v17  ;;  %s726_s18 = scalar_select %p724_p9, 1, 0 }
 0x71a   : > { %vm645_vm13 = vcmp.gt.f32.partialorder %v2865_v53, %v2920_v4  ;;  %v665_v30 = vsel %vm332_vm0, %v664_v5, 2147483647 }
 0x71b   : > { %v667_v13 = vshra.s32 %v665_v30, 16  ;;  %vm2928_vm14 = vmand %vm2910_vm12, %vm645_vm13  ;;  %v721_v26 = vsub.f32 %v720_v43, %v715_v25  ;;  %v666_v0 = vand.u32 65535, %v665_v30 }
 0x71c   : > { %v650_v20 = vsel %vm2928_vm14, 4, %v2918_v63 }
 0x71d   : > { %v669_v24 = vcvt.s32.f32 %v667_v13  ;;  %2142 = vrcp.f32 %v721_v26  ;;  %v668_v36 = vcvt.s32.f32 %v666_v0  ;;  %3619 = sst [smem:[#allocation37_spill]] %s2943_s19 }
 0x71e   : > { %3620 = sst [smem:[#allocation38_spill]] %s2945_s26  ;;  %v785_v26 = vstv %s2945_s26 }
 0x71f   : > { %670 = vmin.xlane.f32.xlu1 %v669_v24  ;;  %s796_s5 = ssub.f32 %s2949_s22, %s2943_s19 }
 0x720   : > { %s797_s0 = ssub.f32 %s2951_s25, %s2945_s26 }
 0x727   : > { %v2143_v29 = vpop.eup %2142 }
 0x728   : > { %v2936_v33 = vmul.f32 %v2143_v29, %v715_v25  ;;  %v783_v25 = vstv %s2943_s19 }
 0x729   : > { %v784_v29 = vmax.f32 %v2576_v6, %v783_v25 }
 0x72a   : > { %v732_v62 = vsel %vm332_vm0, %v2936_v33, -inf }
 0x72b   : > { %733 = vmax.xlane.f32.xlu1 %v732_v62  ;;  %v727_v62 = vstv %s726_s18  ;;  %s798_s18 = smul.f32 %s797_s0, %s796_s5  ;;  %s855_s0 = sadd.s32 28, %s2554_s9 }
 0x72c   : > { %vm2981_vm7 = vcmp.eq.s32.totalorder %v727_v62, 1 }
 0x7ac   : > { %v671_v2 = vpop.xlane.xlu1 %670 }
 0x7ad   : > { %vm672_vm15 = vcmp.eq.f32.partialorder %v669_v24, %v671_v2  ;;  %v677_v46 = vcvt.f32.s32 %v671_v2  ;;  %v786_v2 = vmax.f32 %v2582_v7, %v785_v26 }
 0x7ae   : > { %v673_v37 = vsel %vm672_vm15, %v668_v36, inf  ;;  %v787_v36 = vstv %s2949_s22 }
 0x7af   : > { %674 = vmin.xlane.f32.xlu0 %v673_v37  ;;  %v678_v58 = vshll.u32 %v677_v46, 16  ;;  %v789_v37 = vstv %s2951_s25  ;;  %s861_s25 = sadd.s32 31, %s2554_s9 }
 0x7b0   : > { %v790_v46 = vmin.f32 %v2586_v9, %v789_v37  ;;  %s3022_s26 = sld [smem:[#allocation8 + %s861_s25]] }
 0x7b6   : > { %3630 = sst [smem:[#allocation44_spill]] %s3022_s26 }
 0x7b8   : > { %v734_v22 = vpop.xlane.xlu1 %733 }
 0x7b9   : > { %v735_v28 = vrot.slane %v734_v22, 4 }
 0x7bb   : > { %v736_v51 = vmax.f32 %v734_v22, %v735_v28  ;;  %v788_v28 = vmin.f32 %v2584_v8, %v787_v36 }
 0x7bd   : > { %v737_v5 = vrot.slane %v736_v51, 2 }
 0x7bf   : > { %v738_v32 = vmax.f32 %v736_v51, %v737_v5  ;;  %v651_v51 = vsel %vm2928_vm14, %v2865_v53, %v2920_v4  ;;  %v791_v53 = vsub.f32 %v788_v28, %v784_v29  ;;  %v793_v4 = vsub.f32 %v790_v46, %v786_v2 }
 0x7c1   : > { %v739_v18 = vrot.slane %v738_v32, 1  ;;  %v794_v31 = vmax.f32 %v793_v4, 0.0 }
 0x7c3   : > { %v740_v24 = vmax.f32 %v738_v32, %v739_v18 }
 0x83c   : > { %v675_v57 = vpop.xlane.xlu0 %674 }
 0x83d   : > { %v676_v59 = vcvt.f32.s32 %v675_v57 }
 0x83f   : > { %v679_v60 = vadd.s32 %v678_v58, %v676_v59 }
 0x841   : > { %v680_v27 = vrot.slane %v679_v60, 4 }
 0x843   : > { %vm681_vm1 = vcmp.lt.s32.totalorder %v679_v60, %v680_v27 }
 0x844   : > { %v682_v30 = vsel %vm681_vm1, %v679_v60, %v680_v27  ;;  %v792_v27 = vmax.f32 %v791_v53, 0.0 }
 0x845   : > { %v683_v13 = vrot.slane %v682_v30, 2 }
 0x847   : > { %vm684_vm2 = vcmp.lt.s32.totalorder %v682_v30, %v683_v13 }
 0x848   : > { %v685_v15 = vsel %vm684_vm2, %v682_v30, %v683_v13  ;;  %v799_v30 = vstv %s798_s18  ;;  %s859_s18 = sadd.s32 30, %s2554_s9 }
 0x849   : > { %v686_v1 = vrot.slane %v685_v15, 1  ;;  %s3020_s22 = sld [smem:[#allocation8 + %s859_s18]] }
 0x84b   : > { %vm687_vm3 = vcmp.lt.s32.totalorder %v685_v15, %v686_v1 }
 0x84c   : > { %v688_v43 = vsel %vm687_vm3, %v685_v15, %v686_v1  ;;  %v795_v15 = vmul.f32 %v794_v31, %v792_v27 }
 0x84d   : > { %1961 = vpush %v688_v43 }
 0x84e   : > { %1963 = vpush %v740_v24 }
 0x84f   : > { %3629 = sst [smem:[#allocation43_spill]] %s3020_s22 }
 0x87e   : > { %s1962_s30 = spop %1961 }
 0x87f   : > { %v690_v0 = vstv %s1962_s30  ;;  %s1964_s23 = spop %1963  ;;  %s857_s30 = sadd.s32 29, %s2554_s9 }
 0x880   : > { %vm691_vm4 = vcmp.eq.s32.totalorder %v2618_v41, %v690_v0  ;;  %v742_v22 = vstv %s1964_s23  ;;  %s3014_s23 = sld [smem:[#allocation8 + %s855_s0]] }
 0x881   : > { %vm692_vm5 = vmand %vm2910_vm12, %vm691_vm4  ;;  %vm743_vm6 = vcmp.ge.f32.partialorder %v2936_v33, %v742_v22  ;;  %s3016_s5 = sld [smem:[#allocation8 + %s857_s30]] }
 0x882   : > { %v2989_v58 = vsel %vm692_vm5, 4, %v650_v20  ;;  %v2991_v59 = vsel %vm692_vm5, 1.0, %v651_v51  ;;  %v744_v60 = vsel %vm743_vm6, %v2618_v41, 256  ;;  %v800_v20 = vadd.f32 %v799_v30, %v2605_v17  ;;  %s806_s0 = scalar_select %p804_p13, 1, 0 }
 0x883   : > { %vm725_vm8 = vcmp.gt.f32.partialorder %v2936_v33, %v2991_v59  ;;  %v745_v61 = vsel %vm332_vm0, %v744_v60, 2147483647 }
 0x884   : > { %v747_v5 = vshra.s32 %v745_v61, 16  ;;  %vm2999_vm9 = vmand %vm2981_vm7, %vm725_vm8  ;;  %v801_v18 = vsub.f32 %v800_v20, %v795_v15  ;;  %v746_v29 = vand.u32 65535, %v745_v61 }
 0x885   : > { %v730_v32 = vsel %vm2999_vm9, 5, %v2989_v58 }
 0x886   : > { %v749_v13 = vcvt.s32.f32 %v747_v5  ;;  %2144 = vrcp.f32 %v801_v18  ;;  %v748_v0 = vcvt.s32.f32 %v746_v29  ;;  %3627 = sst [smem:[#allocation41_spill]] %s3014_s23  ;;  %v863_v29 = vstv %s3014_s23 }
 0x887   : > { %3628 = sst [smem:[#allocation42_spill]] %s3016_s5 }
 0x888   : > { %750 = vmin.xlane.f32.xlu0 %v749_v13  ;;  %s876_s25 = ssub.f32 %s3020_s22, %s3014_s23 }
 0x889   : > { %s877_s19 = ssub.f32 %s3022_s26, %s3016_s5 }
 0x890   : > { %v2145_v1 = vpop.eup %2144 }
 0x891   : > { %v3007_v43 = vmul.f32 %v2145_v1, %v795_v15 }
 0x893   : > { %v812_v24 = vsel %vm332_vm0, %v3007_v43, -inf }
 0x894   : > { %813 = vmax.xlane.f32.xlu0 %v812_v24 }
 0x915   : > { %v751_v62 = vpop.xlane.xlu0 %750 }
 0x916   : > { %vm752_vm10 = vcmp.eq.f32.partialorder %v749_v13, %v751_v62  ;;  %v757_v46 = vcvt.f32.s32 %v751_v62  ;;  %v865_v62 = vstv %s3016_s5  ;;  %s3643_s5 = sadd.s32 5, %s2554_s9 }
 0x917   : > { %v753_v2 = vsel %vm752_vm10, %v748_v0, inf  ;;  %v864_v0 = vmax.f32 %v2576_v6, %v863_v29  ;;  %v731_v6 = vsel %vm2999_vm9, %v2936_v33, %v2991_v59  ;;  %s3159_s23 = sld [smem:[#allocation7 + %s3643_s5]] }
 0x918   : > { %754 = vmin.xlane.f32.xlu1 %v753_v2  ;;  %v758_v53 = vshll.u32 %v757_v46, 16  ;;  %v807_v2 = vstv %s806_s0  ;;  %v867_v46 = vstv %s3020_s22  ;;  %s878_s0 = smul.f32 %s877_s19, %s876_s25  ;;  %s3639_s25 = sadd.s32 1, %s2554_s9 }
 0x919   : > { %vm3052_vm2 = vcmp.eq.s32.totalorder %v807_v2, 1  ;;  %s886_s19 = scalar_select %p884_p7, 1, 0 }
 0x921   : > { %v814_v22 = vpop.xlane.xlu0 %813 }
 0x922   : > { %v815_v28 = vrot.slane %v814_v22, 4 }
 0x924   : > { %v816_v51 = vmax.f32 %v814_v22, %v815_v28  ;;  %v866_v28 = vmax.f32 %v2582_v7, %v865_v62 }
 0x926   : > { %v817_v27 = vrot.slane %v816_v51, 2 }
 0x928   : > { %v818_v31 = vmax.f32 %v816_v51, %v817_v27  ;;  %v869_v51 = vstv %s3022_s26  ;;  %s3642_s26 = sadd.s32 4, %s2554_s9 }
 0x929   : > { %s3155_s22 = sld [smem:[#allocation7 + %s3642_s26]] }
 0x92a   : > { %v819_v15 = vrot.slane %v818_v31, 1  ;;  %s3663_s26 = sld [smem:[#allocation27_spill]] }
 0x92c   : > { %v820_v24 = vmax.f32 %v818_v31, %v819_v15 }
 0x9a5   : > { %v755_v60 = vpop.xlane.xlu1 %754 }
 0x9a6   : > { %v756_v4 = vcvt.f32.s32 %v755_v60 }
 0x9a8   : > { %v759_v5 = vadd.s32 %v758_v53, %v756_v4  ;;  %v868_v53 = vmin.f32 %v2584_v8, %v867_v46  ;;  %v870_v4 = vmin.f32 %v2586_v9, %v869_v51 }
 0x9aa   : > { %v760_v30 = vrot.slane %v759_v5, 4  ;;  %v871_v33 = vsub.f32 %v868_v53, %v864_v0  ;;  %v873_v59 = vsub.f32 %v870_v4, %v866_v28 }
 0x9ac   : > { %vm761_vm11 = vcmp.lt.s32.totalorder %v759_v5, %v760_v30  ;;  %v874_v63 = vmax.f32 %v873_v59, 0.0 }
 0x9ad   : > { %v762_v61 = vsel %vm761_vm11, %v759_v5, %v760_v30  ;;  %v872_v30 = vmax.f32 %v871_v33, 0.0 }
 0x9ae   : > { %v763_v20 = vrot.slane %v762_v61, 2 }
 0x9b0   : > { %vm764_vm12 = vcmp.lt.s32.totalorder %v762_v61, %v763_v20 }
 0x9b1   : > { %v765_v13 = vsel %vm764_vm12, %v762_v61, %v763_v20  ;;  %v879_v61 = vstv %s878_s0  ;;  %s3143_s0 = sld [smem:[#allocation7 + %s3639_s25]] }
 0x9b2   : > { %v766_v18 = vrot.slane %v765_v13, 1  ;;  %s3163_s25 = sld [smem:[#allocation7 + %s3644_s15]] }
 0x9b4   : > { %vm767_vm13 = vcmp.lt.s32.totalorder %v765_v13, %v766_v18 }
 0x9b5   : > { %v768_v1 = vsel %vm767_vm13, %v765_v13, %v766_v18  ;;  %v875_v13 = vmul.f32 %v874_v63, %v872_v30 }
 0x9b6   : > { %1965 = vpush %v768_v1 }
 0x9b7   : > { %1967 = vpush %v820_v24 }
 0x9e7   : > { %s1966_s30 = spop %1965 }
 0x9e8   : > { %v770_v22 = vstv %s1966_s30  ;;  %s1968_s18 = spop %1967 }
 0x9e9   : > { %vm771_vm14 = vcmp.eq.s32.totalorder %v2618_v41, %v770_v22  ;;  %v822_v60 = vstv %s1968_s18 }
 0x9ea   : > { %vm772_vm15 = vmand %vm2981_vm7, %vm771_vm14  ;;  %vm823_vm1 = vcmp.ge.f32.partialorder %v3007_v43, %v822_v60 }
 0x9eb   : > { %v3060_v8 = vsel %vm772_vm15, 5, %v730_v32  ;;  %v3062_v9 = vsel %vm772_vm15, 1.0, %v731_v6  ;;  %v824_v5 = vsel %vm823_vm1, %v2618_v41, 256  ;;  %v880_v32 = vadd.f32 %v879_v61, %v2605_v17 }
 0x9ec   : > { %vm805_vm3 = vcmp.gt.f32.partialorder %v3007_v43, %v3062_v9  ;;  %v825_v57 = vsel %vm332_vm0, %v824_v5, 2147483647 }
 0x9ed   : > { %v827_v27 = vshra.s32 %v825_v57, 16  ;;  %vm3070_vm4 = vmand %vm3052_vm2, %vm805_vm3  ;;  %v881_v15 = vsub.f32 %v880_v32, %v875_v13  ;;  %v826_v0 = vand.u32 65535, %v825_v57 }
 0x9ee   : > { %v810_v31 = vsel %vm3070_vm4, 6, %v3060_v8 }
 0x9ef   : > { %v829_v20 = vcvt.s32.f32 %v827_v27  ;;  %2146 = vrcp.f32 %v881_v15  ;;  %v828_v22 = vcvt.s32.f32 %v826_v0 }
 0x9f1   : > { %830 = vmin.xlane.f32.xlu1 %v829_v20 }
 0x9f9   : > { %v2147_v18 = vpop.eup %2146 }
 0x9fa   : > { %v3078_v1 = vmul.f32 %v2147_v18, %v875_v13  ;;  %v887_v18 = vstv %s886_s19  ;;  %s3640_s19 = sadd.s32 2, %s2554_s9 }
 0x9fb   : > { %vm3091_vm12 = vcmp.eq.s32.totalorder %v887_v18, 1  ;;  %v3121_v18 = vld [vmem:[%s2541_s13 + $0xc] sm:$0x3] }
 0x9fc   : > { %v892_v24 = vsel %vm332_vm0, %v3078_v1, -inf }
 0x9fd   : > { %893 = vmax.xlane.f32.xlu1 %v892_v24 }
 0xa7e   : > { %v831_v2 = vpop.xlane.xlu1 %830 }
 0xa7f   : > { %vm832_vm5 = vcmp.eq.f32.partialorder %v829_v20, %v831_v2  ;;  %v837_v53 = vcvt.f32.s32 %v831_v2  ;;  %v811_v2 = vsel %vm3070_vm4, %v3007_v43, %v3062_v9 }
 0xa80   : > { %v833_v17 = vsel %vm832_vm5, %v828_v22, inf }
 0xa81   : > { %834 = vmin.xlane.f32.xlu0 %v833_v17  ;;  %v838_v8 = vshll.u32 %v837_v53, 16 }
 0xa8a   : > { %v894_v28 = vpop.xlane.xlu1 %893 }
 0xa8b   : > { %v895_v60 = vrot.slane %v894_v28, 4 }
 0xa8d   : > { %v896_v4 = vmax.f32 %v894_v28, %v895_v60 }
 0xa8f   : > { %v897_v59 = vrot.slane %v896_v4, 2 }
 0xa91   : > { %v898_v61 = vmax.f32 %v896_v4, %v897_v59 }
 0xa93   : > { %v899_v32 = vrot.slane %v898_v61, 1 }
 0xa95   : > { %v900_v15 = vmax.f32 %v898_v61, %v899_v32  ;;  %v3116_v32 = vld [vmem:[%s2541_s13 + $0xa] sm:$0x3] }
 0xb0e   : > { %v835_v6 = vpop.xlane.xlu0 %834 }
 0xb0f   : > { %v836_v5 = vcvt.f32.s32 %v835_v6 }
 0xb11   : > { %v839_v33 = vadd.s32 %v838_v8, %v836_v5 }
 0xb13   : > { %v840_v27 = vrot.slane %v839_v33, 4 }
 0xb15   : > { %vm841_vm6 = vcmp.lt.s32.totalorder %v839_v33, %v840_v27 }
 0xb16   : > { %v842_v30 = vsel %vm841_vm6, %v839_v33, %v840_v27 }
 0xb17   : > { %v843_v57 = vrot.slane %v842_v30, 2 }
 0xb19   : > { %vm844_vm7 = vcmp.lt.s32.totalorder %v842_v30, %v843_v57 }
 0xb1a   : > { %v845_v63 = vsel %vm844_vm7, %v842_v30, %v843_v57 }
 0xb1b   : > { %v846_v20 = vrot.slane %v845_v63, 1 }
 0xb1d   : > { %vm847_vm8 = vcmp.lt.s32.totalorder %v845_v63, %v846_v20 }
 0xb1e   : > { %v848_v13 = vsel %vm847_vm8, %v845_v63, %v846_v20  ;;  %v3113_v63 = vld [vmem:[%s2541_s13 + $0x8] sm:$0x3] }
 0xb1f   : > { %1969 = vpush %v848_v13  ;;  %v1071_v13 = vmax.f32 %v3113_v63, %v3116_v32 }
 0xb20   : > { %1971 = vpush %v900_v15 }
 0xb50   : > { %s1970_s30 = spop %1969 }
 0xb51   : > { %v850_v24 = vstv %s1970_s30  ;;  %s1972_s18 = spop %1971  ;;  %s3147_s30 = sld [smem:[#allocation7 + %s3640_s19]] }
 0xb52   : > { %vm851_vm9 = vcmp.eq.s32.totalorder %v2618_v41, %v850_v24  ;;  %v902_v0 = vstv %s1972_s18  ;;  %s3641_s18 = sadd.s32 3, %s2554_s9  ;;  %s3167_s19 = sld [smem:[#allocation7 + %s3645_s17]] }
 0xb53   : > { %vm852_vm10 = vmand %vm3052_vm2, %vm851_vm9  ;;  %vm903_vm11 = vcmp.ge.f32.partialorder %v3078_v1, %v902_v0  ;;  %v1072_v0 = vmax.f32 %v1071_v13, %v3121_v18 }
 0xb54   : > { %v3095_v17 = vsel %vm852_vm10, 6, %v810_v31  ;;  %v3097_v28 = vsel %vm852_vm10, 1.0, %v811_v2  ;;  %v904_v60 = vsel %vm903_vm11, %v2618_v41, 256 }
 0xb55   : > { %vm885_vm13 = vcmp.gt.f32.partialorder %v3078_v1, %v3097_v28  ;;  %v905_v43 = vsel %vm332_vm0, %v904_v60, 2147483647  ;;  %v3125_v60 = vld [vmem:[%s2541_s13 + $0xe] sm:$0x3]  ;;  %s3151_s13 = sld [smem:[#allocation7 + %s3641_s18]] }
 0xb56   : > { %v907_v9 = vshra.s32 %v905_v43, 16  ;;  %vm3105_vm14 = vmand %vm3091_vm12, %vm885_vm13  ;;  %v906_v53 = vand.u32 65535, %v905_v43  ;;  %v3128_v43 = vmax.f32 %v1072_v0, %v3125_v60 }
 0xb57   : > { %v890_v58 = vsel %vm3105_vm14, 7, %v3095_v17 }
 0xb58   : > { %v909_v31 = vcvt.s32.f32 %v907_v9  ;;  %v908_v6 = vcvt.s32.f32 %v906_v53  ;;  %v1074_v9 = vsub.f32 %v3113_v63, %v3128_v43 }
 0xb5a   : > { %910 = vmin.xlane.f32.xlu0 %v909_v31  ;;  %v1075_v53 = vmul.f32 1.442695, %v1074_v9  ;;  %v945_v9 = vstv %s3143_s0 }
 0xb5c   : > { %2148 = vpow2.f32 %v1075_v53  ;;  %v961_v53 = vstv %s3151_s13 }
 0xbe7   : > { %v911_v4 = vpop.xlane.xlu0 %910 }
 0xbe8   : > { %vm912_vm15 = vcmp.eq.f32.partialorder %v909_v31, %v911_v4  ;;  %v917_v5 = vcvt.f32.s32 %v911_v4  ;;  %v1080_v31 = vsub.f32 %v3116_v32, %v3128_v43 }
 0xbe9   : > { %v913_v8 = vsel %vm912_vm15, %v908_v6, inf  ;;  %v1086_v6 = vsub.f32 %v3121_v18, %v3128_v43 }
 0xbea   : > { %914 = vmin.xlane.f32.xlu1 %v913_v8  ;;  %v918_v59 = vshll.u32 %v917_v5, 16  ;;  %v1081_v4 = vmul.f32 1.442695, %v1080_v31  ;;  %v1092_v5 = vsub.f32 %v3125_v60, %v3128_v43  ;;  %v953_v31 = vstv %s3147_s30 }
 0xbeb   : > { %v1087_v8 = vmul.f32 1.442695, %v1086_v6  ;;  %v977_v6 = vstv %s3159_s23 }
 0xbec   : > { %2150 = vpow2.f32 %v1081_v4  ;;  %v969_v4 = vstv %s3155_s22 }
 0xbed   : > { %2152 = vpow2.f32 %v1087_v8  ;;  %v985_v8 = vstv %s3163_s25 }
 0xc77   : > { %v915_v33 = vpop.xlane.xlu1 %914 }
 0xc78   : > { %v916_v27 = vcvt.f32.s32 %v915_v33  ;;  %v1093_v33 = vmul.f32 1.442695, %v1092_v5  ;;  %v993_v5 = vstv %s3167_s19 }
 0xc7a   : > { %v919_v30 = vadd.s32 %v918_v59, %v916_v27  ;;  %2154 = vpow2.f32 %v1093_v33  ;;  %v2149_v59 = vpop.eup %2148  ;;  %v3197_v33 = vld [vmem:[%s3515_s3 + $0x6] sm:$0x3] }
 0xc7b   : > { %v2151_v27 = vpop.eup %2150 }
 0xc7c   : > { %v920_v61 = vrot.slane %v919_v30, 4 }
 0xc7e   : > { %vm921_vm1 = vcmp.lt.s32.totalorder %v919_v30, %v920_v61 }
 0xc7f   : > { %v922_v57 = vsel %vm921_vm1, %v919_v30, %v920_v61  ;;  %v1083_v30 = vadd.f32 %v2151_v27, %v2149_v59  ;;  %v2153_v61 = vpop.eup %2152 }
 0xc80   : > { %v923_v20 = vrot.slane %v922_v57, 2 }
 0xc82   : > { %vm924_vm2 = vcmp.lt.s32.totalorder %v922_v57, %v923_v20 }
 0xc83   : > { %v925_v15 = vsel %vm924_vm2, %v922_v57, %v923_v20  ;;  %v1089_v57 = vadd.f32 %v2153_v61, %v1083_v30 }
 0xc84   : > { %v926_v24 = vrot.slane %v925_v15, 1  ;;  %v2155_v20 = vpop.eup %2154 }
 0xc85   : > { %v1095_v13 = vadd.f32 %v2155_v20, %v1089_v57 }
 0xc86   : > { %vm927_vm3 = vcmp.lt.s32.totalorder %v925_v15, %v926_v24 }
 0xc87   : > { %v928_v2 = vsel %vm927_vm3, %v925_v15, %v926_v24  ;;  %2156 = vlog2.f32 %v1095_v13  ;;  %v891_v24 = vsel %vm3105_vm14, %v3078_v1, %v3097_v28  ;;  %v3187_v1 = vld [vmem:[%s3515_s3 + $0x4] sm:$0x3] }
 0xc88   : > { %1973 = vpush %v928_v2  ;;  %v937_v2 = vstv %s3139_s4  ;;  %2158 = vrcp.f32 %v3187_v1 }
 0xc89   : > { %2160 = vrcp.f32 %v3197_v33 }
 0xc91   : > { %v2157_v15 = vpop.eup %2156 }
 0xc92   : > { %v1099_v28 = vmul.f32 0.6931472, %v2157_v15 }
 0xcb9   : > { %s1974_s21 = spop %1973 }
 0xcba   : > { %v930_v0 = vstv %s1974_s21 }
 0xcbb   : > { %vm931_vm4 = vcmp.eq.s32.totalorder %v2618_v41, %v930_v0 }
 0xcbc   : > { %vm932_vm5 = vmand %vm3091_vm12, %vm931_vm4 }
 0xcbd   : > { %v933_v41 = vsel %vm932_vm5, 7, %v890_v58  ;;  %v934_v22 = vsel %vm932_vm5, 1.0, %v891_v24 }
 0xcbe   : > { %vm935_vm6 = vcmp.eq.s32.totalorder %v933_v41, 0  ;;  %vm943_vm7 = vcmp.eq.s32.totalorder %v933_v41, 1  ;;  %vm951_vm8 = vcmp.eq.s32.totalorder %v933_v41, 2  ;;  %vm959_vm9 = vcmp.eq.s32.totalorder %v933_v41, 3 }
 0xcbf   : > { %v938_v17 = vsel %vm935_vm6, %v937_v2, 0  ;;  %v939_v7 = vsel %vm935_vm6, %v304_v10, 0.0  ;;  %v940_v58 = vsel %vm935_vm6, %v306_v12, 0.0  ;;  %v941_v59 = vsel %vm935_vm6, %v308_v14, 0.0 }
 0xcc0   : > { %v942_v27 = vsel %vm935_vm6, %v310_v16, 0.0  ;;  %v946_v30 = vsel %vm943_vm7, %v945_v9, %v938_v17  ;;  %v947_v61 = vsel %vm943_vm7, %v383_v47, %v939_v7  ;;  %v948_v57 = vsel %vm943_vm7, %v385_v48, %v940_v58 }
 0xcc1   : > { %v949_v20 = vsel %vm943_vm7, %v387_v49, %v941_v59  ;;  %v950_v13 = vsel %vm943_vm7, %v389_v50, %v942_v27  ;;  %v954_v10 = vsel %vm951_vm8, %v953_v31, %v946_v30  ;;  %v955_v12 = vsel %vm951_vm8, %v463_v34, %v947_v61 }
 0xcc2   : > { %v956_v14 = vsel %vm951_vm8, %v465_v35, %v948_v57  ;;  %v957_v16 = vsel %vm951_vm8, %v467_v38, %v949_v20  ;;  %v958_v47 = vsel %vm951_vm8, %v469_v40, %v950_v13  ;;  %v962_v48 = vsel %vm959_vm9, %v961_v53, %v954_v10  ;;  %v1041_v13 = vld [vmem:[%s3663_s26] sm:$0x3]  ;;  %v1042_v10 = vld [vmem:[%s3663_s26 + $0x2] sm:$0x3] }
 0xcc3   : > { %v963_v49 = vsel %vm959_vm9, %v543_v44, %v955_v12  ;;  %v964_v50 = vsel %vm959_vm9, %v545_v45, %v956_v14  ;;  %v965_v34 = vsel %vm959_vm9, %v547_v55, %v957_v16  ;;  %v966_v35 = vsel %vm959_vm9, %v549_v56, %v958_v47  ;;  %v2159_v55 = vpop.eup %2158 }
 0xcc4   : > { %vm967_vm10 = vcmp.eq.s32.totalorder %v933_v41, 4  ;;  %vm975_vm11 = vcmp.eq.s32.totalorder %v933_v41, 5  ;;  %vm983_vm12 = vcmp.eq.s32.totalorder %v933_v41, 6  ;;  %vm991_vm13 = vcmp.eq.s32.totalorder %v933_v41, 7  ;;  %v2161_v2 = vpop.eup %2160 }
 0xcc5   : > { %v970_v38 = vsel %vm967_vm10, %v969_v4, %v962_v48  ;;  %v971_v40 = vsel %vm967_vm10, %v623_v3, %v963_v49  ;;  %v972_v44 = vsel %vm967_vm10, %v625_v11, %v964_v50  ;;  %v973_v45 = vsel %vm967_vm10, %v627_v21, %v965_v34  ;;  %v1043_v50 = vld [vmem:[%s3663_s26 + $0x4] sm:$0x3]  ;;  %v1044_v34 = vld [vmem:[%s3663_s26 + $0x6] sm:$0x3] }
 0xcc6   : > { %v974_v56 = vsel %vm967_vm10, %v629_v23, %v966_v35  ;;  %v978_v15 = vsel %vm975_vm11, %v977_v6, %v970_v38  ;;  %v979_v24 = vsel %vm975_vm11, %v703_v42, %v971_v40  ;;  %v980_v0 = vsel %vm975_vm11, %v705_v19, %v972_v44 }
 0xcc7   : > { %v981_v9 = vsel %vm975_vm11, %v707_v52, %v973_v45  ;;  %v982_v3 = vsel %vm975_vm11, %v709_v54, %v974_v56  ;;  %v986_v11 = vsel %vm983_vm12, %v985_v8, %v978_v15  ;;  %v987_v21 = vsel %vm983_vm12, %v783_v25, %v979_v24 }
 0xcc8   : > { %v988_v31 = vsel %vm983_vm12, %v785_v26, %v980_v0  ;;  %v989_v23 = vsel %vm983_vm12, %v787_v36, %v981_v9  ;;  %v990_v42 = vsel %vm983_vm12, %v789_v37, %v982_v3  ;;  %v994_v19 = vsel %vm991_vm13, %v993_v5, %v986_v11 }
 0xcc9   : > { %v995_v52 = vsel %vm991_vm13, %v863_v29, %v987_v21  ;;  %v996_v54 = vsel %vm991_vm13, %v865_v62, %v988_v31  ;;  %v997_v25 = vsel %vm991_vm13, %v867_v46, %v989_v23  ;;  %v998_v26 = vsel %vm991_vm13, %v869_v51, %v990_v42 }
 0xcca   : > { %vm999_vm14 = vcmp.lt.f32.partialorder %v934_v22, 0.5  ;;  %v1019_v53 = vsub.f32 %v997_v25, %v995_v52  ;;  %v1015_v36 = vadd.f32 %v997_v25, %v995_v52  ;;  %v1017_v37 = vadd.f32 %v998_v26, %v996_v54 }
 0xccb   : > { %v3284_v4 = vsel %vm999_vm14, 0, %v994_v19  ;;  %v1020_v6 = vsub.f32 %v998_v26, %v996_v54  ;;  %v1100_v29 = vadd.f32 %v1099_v28, %v3128_v43  ;;  %v2328_v46 = vmov 0.0  }
 0xccc   : > { %vm1078_vm15 = vcmp.eq.s32.totalorder %v3284_v4, 0  ;;  %vm1084_vm1 = vcmp.eq.s32.totalorder %v3284_v4, 1  ;;  %vm1001_vm2 = vcmp.ne.s32.totalorder %v3284_v4, 0  ;;  %vm1090_vm3 = vcmp.eq.s32.totalorder %v3284_v4, 2 }
 0xccd   : > { %v1079_v62 = vsel %vm1078_vm15, %v3113_v63, 0.0  ;;  %v1905_v51 = vsel %vm1001_vm2, 1.0, %v2328_v46  ;;  %vm1096_vm4 = vcmp.eq.s32.totalorder %v3284_v4, 3  ;;  %v1016_v41 = vmul.f32 0.5, %v1015_v36 }
 0xcce   : > { %v1004_v8 = vsel %vm332_vm0, %v1905_v51, 0.0  ;;  %v1085_v5 = vsel %vm1084_vm1, %v3116_v32, %v1079_v62  ;;  %vm1021_vm5 = vcmp.gt.f32.partialorder %v1019_v53, 0.0  ;;  %v1018_v22 = vmul.f32 0.5, %v1017_v37 }
 0xccf   : > { %1005 = vadd.xlane.f32.xlu0 %v1004_v8  ;;  %v1091_v43 = vsel %vm1090_vm3, %v3121_v18, %v1085_v5  ;;  %v1022_v63 = vsel %vm1021_vm5, %v1019_v53, %v3187_v1  ;;  %vm1023_vm6 = vcmp.gt.f32.partialorder %v1020_v6, 0.0  ;;  %v1028_v27 = vmul.f32 10.0, %v2159_v55  ;;  %v2168_v18 = vld [vmem:[%s3515_s3] sm:$0x3] }
 0xcd0   : > { %v1097_v28 = vsel %vm1096_vm4, %v3125_v60, %v1091_v43  ;;  %v1024_v17 = vsel %vm1023_vm6, %v1020_v6, %v3197_v33  ;;  %v1033_v7 = vmul.f32 %v2159_v55, %v1022_v63  ;;  %v1031_v32 = vmul.f32 10.0, %v2161_v2  ;;  %v2169_v60 = vld [vmem:[%s3515_s3 + $0x2] sm:$0x3] }
 0xcd1   : > { %v1101_v58 = vsub.f32 %v1100_v29, %v1097_v28  ;;  %v1037_v59 = vmul.f32 %v2161_v2, %v1024_v17  ;;  %v1027_v61 = vsub.f32 %v1016_v41, %v2168_v18  ;;  %v1030_v1 = vsub.f32 %v1018_v22, %v2169_v60 }
 0xcd2   : > { %2162 = vlog2.f32 %v1033_v7  ;;  %vm1766_vm7 = vcmp.eq.s32.totalorder %v2615_v39, 1  ;;  %vm1763_vm8 = vcmp.eq.s32.totalorder %v2615_v39, 0  ;;  %vm1769_vm9 = vcmp.eq.s32.totalorder %v2615_v39, 2 }
 0xcd3   : > { %v1102_v30 = vmul.f32 %v1905_v51, %v1101_v58  ;;  %2164 = vlog2.f32 %v1037_v59  ;;  %v1029_v57 = vmul.f32 %v1028_v27, %v1027_v61  ;;  %v1032_v20 = vmul.f32 %v1031_v32, %v1030_v1 }
 0xcd4   : > { %v3316_v11 = vsel %vm1001_vm2, 0.0, %v1101_v58 }
 0xcd5   : > { %v1103_v33 = vsel %vm332_vm0, %v1102_v30, 0.0  ;;  %v1045_v12 = vsub.f32 %v1041_v13, %v1029_v57  ;;  %v1047_v14 = vsub.f32 %v1042_v10, %v1032_v20  ;;  %v1116_v21 = vsel %vm332_vm0, %v3316_v11, -inf }
 0xcd6   : > { %1104 = vadd.xlane.f32.xlu0 %v1103_v33 }
 0xcd7   : > { %v1046_v38 = vand.u32 2147483647, %v1045_v12  ;;  %v1048_v40 = vand.u32 2147483647, %v1047_v14 }
 0xcd9   : > { %v1049_v56 = vadd.f32 %v1048_v40, %v1046_v38 }
 0xcdc   : > { %v2163_v16 = vpop.eup %2162 }
 0xcdd   : > { %v2165_v47 = vpop.eup %2164  ;;  %v1035_v48 = vmul.f32 0.6931472, %v2163_v16 }
 0xcde   : > { %v1039_v49 = vmul.f32 0.6931472, %v2165_v47 }
 0xcdf   : > { %v1036_v35 = vmul.f32 5.0, %v1035_v48 }
 0xce0   : > { %v1040_v44 = vmul.f32 5.0, %v1039_v49 }
 0xce1   : > { %v1050_v45 = vsub.f32 %v1043_v50, %v1036_v35 }
 0xce2   : > { %v1053_v55 = vsub.f32 %v1044_v34, %v1040_v44 }
 0xce3   : > { %v1051_v15 = vand.u32 2147483647, %v1050_v45 }
 0xce4   : > { %v1054_v0 = vand.u32 2147483647, %v1053_v55 }
 0xce5   : > { %v1052_v24 = vadd.f32 %v1051_v15, %v1049_v56 }
 0xce7   : > { %v1055_v2 = vadd.f32 %v1054_v0, %v1052_v24 }
 0xce9   : > { %v1056_v9 = vmul.f32 %v1905_v51, %v1055_v2 }
 0xceb   : > { %v1057_v3 = vsel %vm332_vm0, %v1056_v9, 0.0 }
 0xcec   : > { %1058 = vadd.xlane.f32.xlu1 %v1057_v3 }
 0xcf0   : > { %1117 = vmax.xlane.f32.xlu1 %v1116_v21 }
 0xd5c   : > { %v1006_v31 = vpop.xlane.xlu0 %1005 }
 0xd5d   : > { %v1007_v23 = vrot.slane %v1006_v31, 4 }
 0xd5f   : > { %v1008_v42 = vadd.f32 %v1007_v23, %v1006_v31 }
 0xd61   : > { %v1009_v19 = vrot.slane %v1008_v42, 2 }
 0xd63   : > { %v1010_v52 = vadd.f32 %v1009_v19, %v1008_v42  ;;  %v1105_v26 = vpop.xlane.xlu0 %1104 }
 0xd64   : > { %v1106_v53 = vrot.slane %v1105_v26, 4 }
 0xd65   : > { %v1011_v54 = vrot.slane %v1010_v52, 1 }
 0xd66   : > { %v1107_v36 = vadd.f32 %v1106_v53, %v1105_v26 }
 0xd67   : > { %v1012_v25 = vadd.f32 %v1011_v54, %v1010_v52 }
 0xd68   : > { %v1108_v37 = vrot.slane %v1107_v36, 2 }
 0xd69   : > { %1975 = vpush %v1012_v25 }
 0xd6a   : > { %v1109_v51 = vadd.f32 %v1108_v37, %v1107_v36 }
 0xd6c   : > { %v1110_v22 = vrot.slane %v1109_v51, 1 }
 0xd6e   : > { %v1111_v58 = vadd.f32 %v1110_v22, %v1109_v51 }
 0xd79   : > { %v1059_v4 = vpop.xlane.xlu1 %1058 }
 0xd7a   : > { %v1060_v6 = vrot.slane %v1059_v4, 4 }
 0xd7c   : > { %v1061_v29 = vadd.f32 %v1060_v6, %v1059_v4 }
 0xd7d   : > { %v1118_v62 = vpop.xlane.xlu1 %1117 }
 0xd7e   : > { %v1062_v8 = vrot.slane %v1061_v29, 2  ;;  %v1119_v5 = vrot.slane %v1118_v62, 4 }
 0xd80   : > { %v1120_v41 = vmax.f32 %v1118_v62, %v1119_v5  ;;  %v1063_v43 = vadd.f32 %v1062_v8, %v1061_v29 }
 0xd82   : > { %v1121_v63 = vrot.slane %v1120_v41, 2  ;;  %v1064_v28 = vrot.slane %v1063_v43, 1 }
 0xd84   : > { %v1065_v17 = vadd.f32 %v1064_v28, %v1063_v43  ;;  %v1122_v7 = vmax.f32 %v1120_v41, %v1121_v63 }
 0xd86   : > { %1977 = vpush %v1065_v17  ;;  %v1123_v59 = vrot.slane %v1122_v7, 1 }
 0xd87   : > { %1979 = vpush %v1111_v58 }
 0xd88   : > { %v1124_v27 = vmax.f32 %v1122_v7, %v1123_v59 }
 0xd8a   : > { %1981 = vpush %v1124_v27 }
 0xd9a   : > { %s1976_s30 = spop %1975 }
 0xd9b   : > { %v1014_v32 = vstv %s1976_s30 }
 0xd9c   : > { %v1767_v18 = vsel %vm1766_vm7, %v1014_v32, 0.0  ;;  %v1114_v35 = vmul.f32 3.0, %v1014_v32 }
 0xd9e   : > { %v3328_v38 = vmin.f32 %v1114_v35, 256.0 }
 0xdb7   : > { %s1978_s18 = spop %1977 }
 0xdb8   : > { %v1764_v30 = vstv %s1978_s18  ;;  %s1980_s25 = spop %1979 }
 0xdb9   : > { %v1765_v61 = vsel %vm1763_vm8, %v1764_v30, 0.0  ;;  %v1770_v60 = vstv %s1980_s25 }
 0xdba   : > { %v1768_v1 = vadd.f32 %v1767_v18, %v1765_v61  ;;  %v1771_v33 = vsel %vm1769_vm9, %v1770_v60, 0.0 }
 0xdbb   : > { %s1982_s19 = spop %1981 }
 0xdbc   : > { %v3323_v57 = vadd.f32 %v1771_v33, %v1768_v1  ;;  %v1126_v20 = vstv %s1982_s19 }
 0xdbd   : > { %v1128_v13 = vmul.f32 0.5, %v1126_v20 }
 0xdbf   : > { %vm1129_vm10 = vcmp.gt.f32.partialorder %v3316_v11, %v1128_v13 }
 0xdc0   : > { %v1906_v10 = vsel %vm1129_vm10, 1.0, %v2328_v46 }
 0xdc1   : > { %v1132_v12 = vsel %vm332_vm0, %v1906_v10, 0.0 }
 0xdc2   : > { %1133 = vadd.xlane.f32.xlu0 %v1132_v12 }
 0xe4f   : > { %v1134_v14 = vpop.xlane.xlu0 %1133 }
 0xe50   : > { %v1135_v16 = vrot.slane %v1134_v14, 4 }
 0xe52   : > { %v1136_v47 = vadd.f32 %v1135_v16, %v1134_v14 }
 0xe54   : > { %v1137_v48 = vrot.slane %v1136_v47, 2 }
 0xe56   : > { %v1138_v49 = vadd.f32 %v1137_v48, %v1136_v47 }
 0xe58   : > { %v1139_v50 = vrot.slane %v1138_v49, 1 }
 0xe5a   : > { %v1140_v34 = vadd.f32 %v1139_v50, %v1138_v49 }
 0xe5c   : > { %1983 = vpush %v1140_v34 }
 0xe8d   : > { %s1984_s9 = spop %1983 }
 0xe8e   : > { %v1142_v40 = vstv %s1984_s9 }
 0xe8f   : > { %vm1143_vm11 = vcmp.ge.f32.partialorder %v1142_v40, %v3328_v38 }
 0xe90   : > { %v1144_v44 = vsel %vm1143_vm11, %v1128_v13, 0.0  ;;  %v1145_v45 = vsel %vm1143_vm11, %v1126_v20, %v1128_v13 }
 0xe91   : > { %v1146_v55 = vadd.f32 %v1145_v45, %v1144_v44 }
 0xe93   : > { %v1147_v56 = vmul.f32 0.5, %v1146_v55 }
 0xe95   : > { %vm1148_vm12 = vcmp.gt.f32.partialorder %v3316_v11, %v1147_v56 }
 0xe96   : > { %v1907_v15 = vsel %vm1148_vm12, 1.0, %v2328_v46 }
 0xe97   : > { %v1151_v24 = vsel %vm332_vm0, %v1907_v15, 0.0 }
 0xe98   : > { %1152 = vadd.xlane.f32.xlu1 %v1151_v24 }
 0xf25   : > { %v1153_v0 = vpop.xlane.xlu1 %1152 }
 0xf26   : > { %v1154_v2 = vrot.slane %v1153_v0, 4 }
 0xf28   : > { %v1155_v9 = vadd.f32 %v1154_v2, %v1153_v0 }
 0xf2a   : > { %v1156_v3 = vrot.slane %v1155_v9, 2 }
 0xf2c   : > { %v1157_v21 = vadd.f32 %v1156_v3, %v1155_v9 }
 0xf2e   : > { %v1158_v31 = vrot.slane %v1157_v21, 1 }
 0xf30   : > { %v1159_v23 = vadd.f32 %v1158_v31, %v1157_v21 }
 0xf32   : > { %1985 = vpush %v1159_v23 }
 0xf63   : > { %s1986_s17 = spop %1985 }
 0xf64   : > { %v1161_v42 = vstv %s1986_s17 }
 0xf65   : > { %vm1162_vm13 = vcmp.ge.f32.partialorder %v1161_v42, %v3328_v38 }
 0xf66   : > { %v1163_v19 = vsel %vm1162_vm13, %v1147_v56, %v1144_v44  ;;  %v1164_v52 = vsel %vm1162_vm13, %v1145_v45, %v1147_v56 }
 0xf67   : > { %v1165_v54 = vadd.f32 %v1164_v52, %v1163_v19 }
 0xf69   : > { %v1166_v25 = vmul.f32 0.5, %v1165_v54 }
 0xf6b   : > { %vm1167_vm14 = vcmp.gt.f32.partialorder %v3316_v11, %v1166_v25 }
 0xf6c   : > { %v1908_v26 = vsel %vm1167_vm14, 1.0, %v2328_v46 }
 0xf6d   : > { %v1170_v53 = vsel %vm332_vm0, %v1908_v26, 0.0 }
 0xf6e   : > { %1171 = vadd.xlane.f32.xlu0 %v1170_v53 }
 0xffb   : > { %v1172_v36 = vpop.xlane.xlu0 %1171 }
 0xffc   : > { %v1173_v37 = vrot.slane %v1172_v36, 4 }
 0xffe   : > { %v1174_v4 = vadd.f32 %v1173_v37, %v1172_v36 }
0x1000   : > { %v1175_v6 = vrot.slane %v1174_v4, 2 }
0x1002   : > { %v1176_v29 = vadd.f32 %v1175_v6, %v1174_v4 }
0x1004   : > { %v1177_v62 = vrot.slane %v1176_v29, 1 }
0x1006   : > { %v1178_v51 = vadd.f32 %v1177_v62, %v1176_v29 }
0x1008   : > { %1987 = vpush %v1178_v51 }
0x1039   : > { %s1988_s21 = spop %1987 }
0x103a   : > { %v1180_v8 = vstv %s1988_s21  ;;  %s3664_s21 = sld [smem:[#allocation21_spill]] }
0x103b   : > { %vm1181_vm15 = vcmp.ge.f32.partialorder %v1180_v8, %v3328_v38 }
0x103c   : > { %v1182_v5 = vsel %vm1181_vm15, %v1166_v25, %v1163_v19  ;;  %v1183_v41 = vsel %vm1181_vm15, %v1164_v52, %v1166_v25 }
0x103d   : > { %v1184_v43 = vadd.f32 %v1183_v41, %v1182_v5 }
0x103f   : > { %v1185_v22 = vmul.f32 0.5, %v1184_v43 }
0x1041   : > { %vm1186_vm1 = vcmp.gt.f32.partialorder %v3316_v11, %v1185_v22 }
0x1042   : > { %v1909_v63 = vsel %vm1186_vm1, 1.0, %v2328_v46 }
0x1043   : > { %v1189_v28 = vsel %vm332_vm0, %v1909_v63, 0.0 }
0x1044   : > { %1190 = vadd.xlane.f32.xlu1 %v1189_v28 }
0x10d1   : > { %v1191_v17 = vpop.xlane.xlu1 %1190 }
0x10d2   : > { %v1192_v7 = vrot.slane %v1191_v17, 4 }
0x10d4   : > { %v1193_v58 = vadd.f32 %v1192_v7, %v1191_v17 }
0x10d6   : > { %v1194_v59 = vrot.slane %v1193_v58, 2 }
0x10d8   : > { %v1195_v27 = vadd.f32 %v1194_v59, %v1193_v58 }
0x10da   : > { %v1196_v32 = vrot.slane %v1195_v27, 1 }
0x10dc   : > { %v1197_v30 = vadd.f32 %v1196_v32, %v1195_v27 }
0x10de   : > { %1989 = vpush %v1197_v30 }
0x110f   : > { %s1990_s22 = spop %1989 }
0x1110   : > { %v1199_v18 = vstv %s1990_s22  ;;  %s3665_s22 = sld [smem:[#allocation26_spill]] }
0x1111   : > { %vm1200_vm2 = vcmp.ge.f32.partialorder %v1199_v18, %v3328_v38 }
0x1112   : > { %v1201_v61 = vsel %vm1200_vm2, %v1185_v22, %v1182_v5  ;;  %v1202_v60 = vsel %vm1200_vm2, %v1183_v41, %v1185_v22 }
0x1113   : > { %v1203_v1 = vadd.f32 %v1202_v60, %v1201_v61 }
0x1115   : > { %v1204_v33 = vmul.f32 0.5, %v1203_v1 }
0x1117   : > { %vm1205_vm3 = vcmp.gt.f32.partialorder %v3316_v11, %v1204_v33 }
0x1118   : > { %v1910_v20 = vsel %vm1205_vm3, 1.0, %v2328_v46 }
0x1119   : > { %v1208_v13 = vsel %vm332_vm0, %v1910_v20, 0.0 }
0x111a   : > { %1209 = vadd.xlane.f32.xlu0 %v1208_v13 }
0x11a7   : > { %v1210_v10 = vpop.xlane.xlu0 %1209 }
0x11a8   : > { %v1211_v12 = vrot.slane %v1210_v10, 4 }
0x11aa   : > { %v1212_v14 = vadd.f32 %v1211_v12, %v1210_v10 }
0x11ac   : > { %v1213_v16 = vrot.slane %v1212_v14, 2 }
0x11ae   : > { %v1214_v47 = vadd.f32 %v1213_v16, %v1212_v14 }
0x11b0   : > { %v1215_v48 = vrot.slane %v1214_v47, 1 }
0x11b2   : > { %v1216_v49 = vadd.f32 %v1215_v48, %v1214_v47 }
0x11b4   : > { %1991 = vpush %v1216_v49 }
0x11e5   : > { %s1992_s13 = spop %1991 }
0x11e6   : > { %v1218_v50 = vstv %s1992_s13 }
0x11e7   : > { %vm1219_vm4 = vcmp.ge.f32.partialorder %v1218_v50, %v3328_v38 }
0x11e8   : > { %v1220_v34 = vsel %vm1219_vm4, %v1204_v33, %v1201_v61  ;;  %v1221_v35 = vsel %vm1219_vm4, %v1202_v60, %v1204_v33 }
0x11e9   : > { %v1222_v40 = vadd.f32 %v1221_v35, %v1220_v34 }
0x11eb   : > { %v1223_v44 = vmul.f32 0.5, %v1222_v40 }
0x11ed   : > { %vm1224_vm5 = vcmp.gt.f32.partialorder %v3316_v11, %v1223_v44 }
0x11ee   : > { %v1911_v45 = vsel %vm1224_vm5, 1.0, %v2328_v46 }
0x11ef   : > { %v1227_v55 = vsel %vm332_vm0, %v1911_v45, 0.0 }
0x11f0   : > { %1228 = vadd.xlane.f32.xlu1 %v1227_v55 }
0x127d   : > { %v1229_v56 = vpop.xlane.xlu1 %1228 }
0x127e   : > { %v1230_v15 = vrot.slane %v1229_v56, 4 }
0x1280   : > { %v1231_v24 = vadd.f32 %v1230_v15, %v1229_v56 }
0x1282   : > { %v1232_v0 = vrot.slane %v1231_v24, 2 }
0x1284   : > { %v1233_v2 = vadd.f32 %v1232_v0, %v1231_v24 }
0x1286   : > { %v1234_v9 = vrot.slane %v1233_v2, 1 }
0x1288   : > { %v1235_v3 = vadd.f32 %v1234_v9, %v1233_v2 }
0x128a   : > { %1993 = vpush %v1235_v3 }
0x12bb   : > { %s1994_s24 = spop %1993 }
0x12bc   : > { %v1237_v21 = vstv %s1994_s24 }
0x12bd   : > { %vm1238_vm6 = vcmp.ge.f32.partialorder %v1237_v21, %v3328_v38 }
0x12be   : > { %v1239_v31 = vsel %vm1238_vm6, %v1223_v44, %v1220_v34  ;;  %v1240_v23 = vsel %vm1238_vm6, %v1221_v35, %v1223_v44 }
0x12bf   : > { %v1241_v42 = vadd.f32 %v1240_v23, %v1239_v31 }
0x12c1   : > { %v1242_v19 = vmul.f32 0.5, %v1241_v42 }
0x12c3   : > { %vm1243_vm7 = vcmp.gt.f32.partialorder %v3316_v11, %v1242_v19 }
0x12c4   : > { %v1912_v52 = vsel %vm1243_vm7, 1.0, %v2328_v46 }
0x12c5   : > { %v1246_v54 = vsel %vm332_vm0, %v1912_v52, 0.0 }
0x12c6   : > { %1247 = vadd.xlane.f32.xlu0 %v1246_v54 }
0x1353   : > { %v1248_v25 = vpop.xlane.xlu0 %1247 }
0x1354   : > { %v1249_v26 = vrot.slane %v1248_v25, 4 }
0x1356   : > { %v1250_v53 = vadd.f32 %v1249_v26, %v1248_v25 }
0x1358   : > { %v1251_v36 = vrot.slane %v1250_v53, 2 }
0x135a   : > { %v1252_v37 = vadd.f32 %v1251_v36, %v1250_v53 }
0x135c   : > { %v1253_v4 = vrot.slane %v1252_v37, 1 }
0x135e   : > { %v1254_v6 = vadd.f32 %v1253_v4, %v1252_v37 }
0x1360   : > { %1995 = vpush %v1254_v6 }
0x1391   : > { %s1996_s16 = spop %1995 }
0x1392   : > { %v1256_v29 = vstv %s1996_s16  ;;  %s3666_s16 = sld [smem:[#allocation25_spill]] }
0x1393   : > { %vm1257_vm8 = vcmp.ge.f32.partialorder %v1256_v29, %v3328_v38 }
0x1394   : > { %v1258_v62 = vsel %vm1257_vm8, %v1242_v19, %v1239_v31  ;;  %v1259_v51 = vsel %vm1257_vm8, %v1240_v23, %v1242_v19 }
0x1395   : > { %v1260_v8 = vadd.f32 %v1259_v51, %v1258_v62 }
0x1397   : > { %v1261_v5 = vmul.f32 0.5, %v1260_v8 }
0x1398   : > { %p3668_p4 = scmp.ne.s32.totalorder %s3666_s16, 0 }
0x1399   : > { %vm1262_vm9 = vcmp.gt.f32.partialorder %v3316_v11, %v1261_v5 }
0x139a   : > { %v1913_v41 = vsel %vm1262_vm9, 1.0, %v2328_v46 }
0x139b   : > { %v1265_v43 = vsel %vm332_vm0, %v1913_v41, 0.0 }
0x139c   : > { %1266 = vadd.xlane.f32.xlu1 %v1265_v43 }
0x1429   : > { %v1267_v22 = vpop.xlane.xlu1 %1266 }
0x142a   : > { %v1268_v63 = vrot.slane %v1267_v22, 4 }
0x142c   : > { %v1269_v28 = vadd.f32 %v1268_v63, %v1267_v22 }
0x142e   : > { %v1270_v17 = vrot.slane %v1269_v28, 2 }
0x1430   : > { %v1271_v7 = vadd.f32 %v1270_v17, %v1269_v28 }
0x1432   : > { %v1272_v58 = vrot.slane %v1271_v7, 1 }
0x1434   : > { %v1273_v59 = vadd.f32 %v1272_v58, %v1271_v7 }
0x1436   : > { %1997 = vpush %v1273_v59 }
0x1467   : > { %s1998_s8 = spop %1997 }
0x1468   : > { %v1275_v27 = vstv %s1998_s8  ;;  %s1939_s8 = sshll.u32 %s3664_s21, 4 }
0x1469   : > { %vm1276_vm10 = vcmp.ge.f32.partialorder %v1275_v27, %v3328_v38 }
0x146a   : > { %v1277_v32 = vsel %vm1276_vm10, %v1261_v5, %v1258_v62  ;;  %v1278_v30 = vsel %vm1276_vm10, %v1259_v51, %v1261_v5 }
0x146b   : > { %v1279_v18 = vadd.f32 %v1278_v30, %v1277_v32 }
0x146d   : > { %v1280_v61 = vmul.f32 0.5, %v1279_v18 }
0x146f   : > { %vm1281_vm11 = vcmp.gt.f32.partialorder %v3316_v11, %v1280_v61 }
0x1470   : > { %v1914_v60 = vsel %vm1281_vm11, 1.0, %v2328_v46 }
0x1471   : > { %v1284_v1 = vsel %vm332_vm0, %v1914_v60, 0.0 }
0x1472   : > { %1285 = vadd.xlane.f32.xlu0 %v1284_v1 }
0x14ff   : > { %v1286_v33 = vpop.xlane.xlu0 %1285 }
0x1500   : > { %v1287_v20 = vrot.slane %v1286_v33, 4 }
0x1502   : > { %v1288_v13 = vadd.f32 %v1287_v20, %v1286_v33 }
0x1504   : > { %v1289_v10 = vrot.slane %v1288_v13, 2 }
0x1506   : > { %v1290_v12 = vadd.f32 %v1289_v10, %v1288_v13 }
0x1508   : > { %v1291_v14 = vrot.slane %v1290_v12, 1 }
0x150a   : > { %v1292_v16 = vadd.f32 %v1291_v14, %v1290_v12 }
0x150c   : > { %1999 = vpush %v1292_v16 }
0x153d   : > { %s2000_s14 = spop %1999 }
0x153e   : > { %v1294_v47 = vstv %s2000_s14  ;;  %s277_s14 = scalar_lea.vmem [#allocation11], %s3665_s22 }
0x153f   : > { %vm1295_vm12 = vcmp.ge.f32.partialorder %v1294_v47, %v3328_v38 }
0x1540   : > { %v1296_v48 = vsel %vm1295_vm12, %v1280_v61, %v1277_v32  ;;  %v1297_v49 = vsel %vm1295_vm12, %v1278_v30, %v1280_v61 }
0x1541   : > { %v1298_v50 = vadd.f32 %v1297_v49, %v1296_v48 }
0x1543   : > { %v1299_v34 = vmul.f32 0.5, %v1298_v50 }
0x1545   : > { %vm1300_vm13 = vcmp.gt.f32.partialorder %v3316_v11, %v1299_v34 }
0x1546   : > { %v1915_v35 = vsel %vm1300_vm13, 1.0, %v2328_v46 }
0x1547   : > { %v1303_v40 = vsel %vm332_vm0, %v1915_v35, 0.0 }
0x1548   : > { %1304 = vadd.xlane.f32.xlu1 %v1303_v40 }
0x15d5   : > { %v1305_v44 = vpop.xlane.xlu1 %1304 }
0x15d6   : > { %v1306_v45 = vrot.slane %v1305_v44, 4 }
0x15d8   : > { %v1307_v55 = vadd.f32 %v1306_v45, %v1305_v44 }
0x15da   : > { %v1308_v56 = vrot.slane %v1307_v55, 2 }
0x15dc   : > { %v1309_v15 = vadd.f32 %v1308_v56, %v1307_v55 }
0x15de   : > { %v1310_v24 = vrot.slane %v1309_v15, 1 }
0x15e0   : > { %v1311_v0 = vadd.f32 %v1310_v24, %v1309_v15 }
0x15e2   : > { %2001 = vpush %v1311_v0 }
0x1613   : > { %s2002_s12 = spop %2001 }
0x1614   : > { %v1313_v2 = vstv %s2002_s12  ;;  %s1790_s12 = sshll.u32 %s277_s14, 4  ;;  %s3470_s12 = int_to_ptr.vmem [resolvable:$true] %s1790_s12 }
0x1615   : > { %vm1314_vm14 = vcmp.ge.f32.partialorder %v1313_v2, %v3328_v38 }
0x1616   : > { %v1315_v9 = vsel %vm1314_vm14, %v1299_v34, %v1296_v48  ;;  %v1316_v3 = vsel %vm1314_vm14, %v1297_v49, %v1299_v34 }
0x1617   : > { %v1317_v21 = vadd.f32 %v1316_v3, %v1315_v9 }
0x1619   : > { %v1318_v31 = vmul.f32 0.5, %v1317_v21 }
0x161b   : > { %vm1319_vm15 = vcmp.gt.f32.partialorder %v3316_v11, %v1318_v31 }
0x161c   : > { %v1916_v23 = vsel %vm1319_vm15, 1.0, %v2328_v46 }
0x161d   : > { %v1322_v42 = vsel %vm332_vm0, %v1916_v23, 0.0 }
0x161e   : > { %1323 = vadd.xlane.f32.xlu0 %v1322_v42 }
0x16ab   : > { %v1324_v19 = vpop.xlane.xlu0 %1323 }
0x16ac   : > { %v1325_v52 = vrot.slane %v1324_v19, 4 }
0x16ae   : > { %v1326_v54 = vadd.f32 %v1325_v52, %v1324_v19 }
0x16b0   : > { %v1327_v25 = vrot.slane %v1326_v54, 2 }
0x16b2   : > { %v1328_v26 = vadd.f32 %v1327_v25, %v1326_v54 }
0x16b4   : > { %v1329_v53 = vrot.slane %v1328_v26, 1 }
0x16b6   : > { %v1330_v36 = vadd.f32 %v1329_v53, %v1328_v26 }
0x16b8   : > { %2003 = vpush %v1330_v36 }
0x16e9   : > { %s2004_s29 = spop %2003 }
0x16ea   : > { %v1332_v37 = vstv %s2004_s29 }
0x16eb   : > { %vm1333_vm1 = vcmp.ge.f32.partialorder %v1332_v37, %v3328_v38 }
0x16ec   : > { %v1334_v4 = vsel %vm1333_vm1, %v1318_v31, %v1315_v9  ;;  %v1335_v6 = vsel %vm1333_vm1, %v1316_v3, %v1318_v31 }
0x16ed   : > { %v1336_v29 = vadd.f32 %v1335_v6, %v1334_v4 }
0x16ef   : > { %v1337_v62 = vmul.f32 0.5, %v1336_v29 }
0x16f1   : > { %vm1338_vm2 = vcmp.gt.f32.partialorder %v3316_v11, %v1337_v62 }
0x16f2   : > { %v1917_v51 = vsel %vm1338_vm2, 1.0, %v2328_v46 }
0x16f3   : > { %v1341_v8 = vsel %vm332_vm0, %v1917_v51, 0.0 }
0x16f4   : > { %1342 = vadd.xlane.f32.xlu1 %v1341_v8 }
0x1781   : > { %v1343_v5 = vpop.xlane.xlu1 %1342 }
0x1782   : > { %v1344_v41 = vrot.slane %v1343_v5, 4 }
0x1784   : > { %v1345_v43 = vadd.f32 %v1344_v41, %v1343_v5 }
0x1786   : > { %v1346_v22 = vrot.slane %v1345_v43, 2 }
0x1788   : > { %v1347_v63 = vadd.f32 %v1346_v22, %v1345_v43 }
0x178a   : > { %v1348_v28 = vrot.slane %v1347_v63, 1 }
0x178c   : > { %v1349_v17 = vadd.f32 %v1348_v28, %v1347_v63 }
0x178e   : > { %2005 = vpush %v1349_v17 }
0x17bf   : > { %s2006_s1 = spop %2005 }
0x17c0   : > { %v1351_v7 = vstv %s2006_s1 }
0x17c1   : > { %vm1352_vm3 = vcmp.ge.f32.partialorder %v1351_v7, %v3328_v38 }
0x17c2   : > { %v1353_v58 = vsel %vm1352_vm3, %v1337_v62, %v1334_v4  ;;  %v1354_v59 = vsel %vm1352_vm3, %v1335_v6, %v1337_v62 }
0x17c3   : > { %v1355_v27 = vadd.f32 %v1354_v59, %v1353_v58 }
0x17c5   : > { %v1356_v32 = vmul.f32 0.5, %v1355_v27 }
0x17c7   : > { %vm1357_vm4 = vcmp.gt.f32.partialorder %v3316_v11, %v1356_v32 }
0x17c8   : > { %v1918_v30 = vsel %vm1357_vm4, 1.0, %v2328_v46 }
0x17c9   : > { %v1360_v18 = vsel %vm332_vm0, %v1918_v30, 0.0 }
0x17ca   : > { %1361 = vadd.xlane.f32.xlu0 %v1360_v18 }
0x1857   : > { %v1362_v61 = vpop.xlane.xlu0 %1361 }
0x1858   : > { %v1363_v60 = vrot.slane %v1362_v61, 4 }
0x185a   : > { %v1364_v1 = vadd.f32 %v1363_v60, %v1362_v61 }
0x185c   : > { %v1365_v33 = vrot.slane %v1364_v1, 2 }
0x185e   : > { %v1366_v20 = vadd.f32 %v1365_v33, %v1364_v1 }
0x1860   : > { %v1367_v13 = vrot.slane %v1366_v20, 1 }
0x1862   : > { %v1368_v10 = vadd.f32 %v1367_v13, %v1366_v20 }
0x1864   : > { %2007 = vpush %v1368_v10 }
0x1895   : > { %s2008_s2 = spop %2007 }
0x1896   : > { %v1370_v12 = vstv %s2008_s2  ;;  %s3667_s2 = sld [smem:[#allocation49_spill]] }
0x1897   : > { %vm1371_vm5 = vcmp.ge.f32.partialorder %v1370_v12, %v3328_v38 }
0x1898   : > { %v1372_v14 = vsel %vm1371_vm5, %v1356_v32, %v1353_v58  ;;  %v1373_v16 = vsel %vm1371_vm5, %v1354_v59, %v1356_v32 }
0x1899   : > { %v1374_v47 = vadd.f32 %v1373_v16, %v1372_v14 }
0x189b   : > { %v1375_v48 = vmul.f32 0.5, %v1374_v47 }
0x189d   : > { %vm1376_vm6 = vcmp.gt.f32.partialorder %v3316_v11, %v1375_v48 }
0x189e   : > { %v1919_v49 = vsel %vm1376_vm6, 1.0, %v2328_v46 }
0x189f   : > { %v1379_v50 = vsel %vm332_vm0, %v1919_v49, 0.0 }
0x18a0   : > { %1380 = vadd.xlane.f32.xlu1 %v1379_v50 }
0x192d   : > { %v1381_v34 = vpop.xlane.xlu1 %1380 }
0x192e   : > { %v1382_v35 = vrot.slane %v1381_v34, 4 }
0x1930   : > { %v1383_v40 = vadd.f32 %v1382_v35, %v1381_v34 }
0x1932   : > { %v1384_v44 = vrot.slane %v1383_v40, 2 }
0x1934   : > { %v1385_v45 = vadd.f32 %v1384_v44, %v1383_v40 }
0x1936   : > { %v1386_v55 = vrot.slane %v1385_v45, 1 }
0x1938   : > { %v1387_v56 = vadd.f32 %v1386_v55, %v1385_v45 }
0x193a   : > { %2009 = vpush %v1387_v56 }
0x196b   : > { %s2010_s7 = spop %2009 }
0x196c   : > { %v1389_v15 = vstv %s2010_s7  ;;  %s3468_s7 = scalar_lea.hbm %s3667_s2, %s1939_s8 }
0x196d   : > { %vm1390_vm7 = vcmp.ge.f32.partialorder %v1389_v15, %v3328_v38 }
0x196e   : > { %v1391_v24 = vsel %vm1390_vm7, %v1375_v48, %v1372_v14  ;;  %v1392_v0 = vsel %vm1390_vm7, %v1373_v16, %v1375_v48 }
0x196f   : > { %v1393_v2 = vadd.f32 %v1392_v0, %v1391_v24 }
0x1971   : > { %v1394_v9 = vmul.f32 0.5, %v1393_v2 }
0x1973   : > { %vm1395_vm8 = vcmp.gt.f32.partialorder %v3316_v11, %v1394_v9 }
0x1974   : > { %v1920_v3 = vsel %vm1395_vm8, 1.0, %v2328_v46 }
0x1975   : > { %v1398_v21 = vsel %vm332_vm0, %v1920_v3, 0.0 }
0x1976   : > { %1399 = vadd.xlane.f32.xlu0 %v1398_v21 }
0x1a03   : > { %v1400_v31 = vpop.xlane.xlu0 %1399 }
0x1a04   : > { %v1401_v23 = vrot.slane %v1400_v31, 4 }
0x1a06   : > { %v1402_v42 = vadd.f32 %v1401_v23, %v1400_v31 }
0x1a08   : > { %v1403_v19 = vrot.slane %v1402_v42, 2 }
0x1a0a   : > { %v1404_v52 = vadd.f32 %v1403_v19, %v1402_v42 }
0x1a0c   : > { %v1405_v54 = vrot.slane %v1404_v52, 1 }
0x1a0e   : > { %v1406_v25 = vadd.f32 %v1405_v54, %v1404_v52 }
0x1a10   : > { %2011 = vpush %v1406_v25 }
0x1a41   : > { %s2012_s20 = spop %2011 }
0x1a42   : > { %v1408_v26 = vstv %s2012_s20  ;;  %s1778_s20 = scalar_lea.sflag [#allocation4], %s3665_s22 }
0x1a43   : > { %vm1409_vm9 = vcmp.ge.f32.partialorder %v1408_v26, %v3328_v38 }
0x1a44   : > { %v1410_v53 = vsel %vm1409_vm9, %v1394_v9, %v1391_v24  ;;  %v1411_v36 = vsel %vm1409_vm9, %v1392_v0, %v1394_v9 }
0x1a45   : > { %v1412_v37 = vadd.f32 %v1411_v36, %v1410_v53 }
0x1a47   : > { %v1413_v4 = vmul.f32 0.5, %v1412_v37 }
0x1a49   : > { %vm1414_vm10 = vcmp.gt.f32.partialorder %v3316_v11, %v1413_v4 }
0x1a4a   : > { %v1921_v6 = vsel %vm1414_vm10, 1.0, %v2328_v46 }
0x1a4b   : > { %v1417_v29 = vsel %vm332_vm0, %v1921_v6, 0.0 }
0x1a4c   : > { %1418 = vadd.xlane.f32.xlu1 %v1417_v29 }
0x1ad9   : > { %v1419_v62 = vpop.xlane.xlu1 %1418 }
0x1ada   : > { %v1420_v51 = vrot.slane %v1419_v62, 4 }
0x1adc   : > { %v1421_v8 = vadd.f32 %v1420_v51, %v1419_v62 }
0x1ade   : > { %v1422_v5 = vrot.slane %v1421_v8, 2 }
0x1ae0   : > { %v1423_v41 = vadd.f32 %v1422_v5, %v1421_v8 }
0x1ae2   : > { %v1424_v43 = vrot.slane %v1423_v41, 1 }
0x1ae4   : > { %v1425_v22 = vadd.f32 %v1424_v43, %v1423_v41 }
0x1ae6   : > { %2013 = vpush %v1425_v22 }
0x1b17   : > { %s2014_s27 = spop %2013 }
0x1b18   : > { %v1427_v63 = vstv %s2014_s27  ;;  %s2241_s27 = scalar_lea.vmem %s3470_s12, 16 }
0x1b19   : > { %vm1428_vm11 = vcmp.ge.f32.partialorder %v1427_v63, %v3328_v38  ;;  %p2242_p2 = scmp.ne.s32.totalorder %s3470_s12, %s2241_s27 }
0x1b1a   : > { %v1429_v28 = vsel %vm1428_vm11, %v1413_v4, %v1410_v53  ;;  %v1430_v17 = vsel %vm1428_vm11, %v1411_v36, %v1413_v4 }
0x1b1b   : > { %v1431_v7 = vadd.f32 %v1430_v17, %v1429_v28  ;;  %p2243_p3 = pnand %p2242_p2, %p3668_p4 }
0x1b1d   : > { %v1432_v58 = vmul.f32 0.5, %v1431_v7  ;;  %p2244_p10 = pneg %p2243_p3 }
0x1b1f   : > { %vm1433_vm12 = vcmp.gt.f32.partialorder %v3316_v11, %v1432_v58 }
0x1b20   : > { %v1922_v59 = vsel %vm1433_vm12, 1.0, %v2328_v46 }
0x1b21   : > { %v1436_v27 = vsel %vm332_vm0, %v1922_v59, 0.0 }
0x1b22   : > { %1437 = vadd.xlane.f32.xlu0 %v1436_v27 }
0x1baf   : > { %v1438_v32 = vpop.xlane.xlu0 %1437 }
0x1bb0   : > { %v1439_v30 = vrot.slane %v1438_v32, 4 }
0x1bb2   : > { %v1440_v18 = vadd.f32 %v1439_v30, %v1438_v32 }
0x1bb4   : > { %v1441_v61 = vrot.slane %v1440_v18, 2 }
0x1bb6   : > { %v1442_v60 = vadd.f32 %v1441_v61, %v1440_v18 }
0x1bb8   : > { %v1443_v1 = vrot.slane %v1442_v60, 1 }
0x1bba   : > { %v1444_v33 = vadd.f32 %v1443_v1, %v1442_v60 }
0x1bbc   : > { %2015 = vpush %v1444_v33 }
0x1bed   : > { %s2016_s10 = spop %2015 }
0x1bee   : > { %v1446_v20 = vstv %s2016_s10  ;;  %s2329_s10 = smov [#allocation11]  }
0x1bef   : > { %vm1447_vm13 = vcmp.ge.f32.partialorder %v1446_v20, %v3328_v38 }
0x1bf0   : > { %v1448_v13 = vsel %vm1447_vm13, %v1432_v58, %v1429_v28  ;;  %v1449_v10 = vsel %vm1447_vm13, %v1430_v17, %v1432_v58 }
0x1bf1   : > { %v1450_v12 = vadd.f32 %v1449_v10, %v1448_v13 }
0x1bf3   : > { %v1451_v14 = vmul.f32 0.5, %v1450_v12 }
0x1bf5   : > { %vm1452_vm14 = vcmp.gt.f32.partialorder %v3316_v11, %v1451_v14 }
0x1bf6   : > { %v1923_v16 = vsel %vm1452_vm14, 1.0, %v2328_v46 }
0x1bf7   : > { %v1455_v47 = vsel %vm332_vm0, %v1923_v16, 0.0 }
0x1bf8   : > { %1456 = vadd.xlane.f32.xlu1 %v1455_v47 }
0x1c85   : > { %v1457_v48 = vpop.xlane.xlu1 %1456 }
0x1c86   : > { %v1458_v49 = vrot.slane %v1457_v48, 4 }
0x1c88   : > { %v1459_v50 = vadd.f32 %v1458_v49, %v1457_v48 }
0x1c8a   : > { %v1460_v34 = vrot.slane %v1459_v50, 2 }
0x1c8c   : > { %v1461_v35 = vadd.f32 %v1460_v34, %v1459_v50 }
0x1c8e   : > { %v1462_v40 = vrot.slane %v1461_v35, 1 }
0x1c90   : > { %v1463_v44 = vadd.f32 %v1462_v40, %v1461_v35 }
0x1c92   : > { %2017 = vpush %v1463_v44 }
0x1cc3   : > { %s2018_s6 = spop %2017 }
0x1cc4   : > { %v1465_v45 = vstv %s2018_s6  ;;  %s2245_s6 = sshll.u32 %s2329_s10, 4  ;;  %s2246_s6 = int_to_ptr.vmem [resolvable:$false] %s2245_s6 }
0x1cc5   : > { %vm1466_vm15 = vcmp.ge.f32.partialorder %v1465_v45, %v3328_v38  ;;  %p2248_p11 = scmp.lt.s32.totalorder %s3470_s12, %s2246_s6 }
0x1cc6   : > { %v1467_v55 = vsel %vm1466_vm15, %v1451_v14, %v1448_v13  ;;  %v1468_v56 = vsel %vm1466_vm15, %v1449_v10, %v1451_v14 }
0x1cc7   : > { %v1469_v15 = vadd.f32 %v1468_v56, %v1467_v55 }
0x1cc9   : > { %v1470_v24 = vmul.f32 0.5, %v1469_v15 }
0x1ccb   : > { %vm1471_vm1 = vcmp.gt.f32.partialorder %v3316_v11, %v1470_v24 }
0x1ccc   : > { %v1924_v0 = vsel %vm1471_vm1, 1.0, %v2328_v46 }
0x1ccd   : > { %v1474_v2 = vsel %vm332_vm0, %v1924_v0, 0.0 }
0x1cce   : > { %1475 = vadd.xlane.f32.xlu0 %v1474_v2 }
0x1d5b   : > { %v1476_v9 = vpop.xlane.xlu0 %1475 }
0x1d5c   : > { %v1477_v3 = vrot.slane %v1476_v9, 4 }
0x1d5e   : > { %v1478_v21 = vadd.f32 %v1477_v3, %v1476_v9 }
0x1d60   : > { %v1479_v31 = vrot.slane %v1478_v21, 2 }
0x1d62   : > { %v1480_v23 = vadd.f32 %v1479_v31, %v1478_v21 }
0x1d64   : > { %v1481_v42 = vrot.slane %v1480_v23, 1 }
0x1d66   : > { %v1482_v19 = vadd.f32 %v1481_v42, %v1480_v23 }
0x1d68   : > { %2019 = vpush %v1482_v19 }
0x1d99   : > { %s2020_s28 = spop %2019 }
0x1d9a   : > { %v1484_v52 = vstv %s2020_s28  ;;  %s2247_s28 = scalar_lea.vmem %s2246_s6, 32 }
0x1d9b   : > { %vm1485_vm2 = vcmp.ge.f32.partialorder %v1484_v52, %v3328_v38  ;;  %p2249_p8 = scmp.lt.s32.totalorder %s2247_s28, %s2241_s27 }
0x1d9c   : > { %v1486_v54 = vsel %vm1485_vm2, %v1470_v24, %v1467_v55  ;;  %v1487_v25 = vsel %vm1485_vm2, %v1468_v56, %v1470_v24 }
0x1d9d   : > { %v1488_v26 = vadd.f32 %v1487_v25, %v1486_v54  ;;  %p2250_p12 = por %p2249_p8, %p2248_p11 }
0x1d9f   : > { %v1489_v53 = vmul.f32 0.5, %v1488_v26  ;;  %p2251_p0 = pnand %p2250_p12, %p2244_p10 }
0x1da1   : > { %vm1490_vm3 = vcmp.gt.f32.partialorder %v3316_v11, %v1489_v53 }
0x1da2   : > { %v1925_v36 = vsel %vm1490_vm3, 1.0, %v2328_v46 }
0x1da3   : > { %v1493_v37 = vsel %vm332_vm0, %v1925_v36, 0.0 }
0x1da4   : > { %1494 = vadd.xlane.f32.xlu1 %v1493_v37 }
0x1e31   : > { %v1495_v4 = vpop.xlane.xlu1 %1494 }
0x1e32   : > { %v1496_v6 = vrot.slane %v1495_v4, 4 }
0x1e34   : > { %v1497_v29 = vadd.f32 %v1496_v6, %v1495_v4 }
0x1e36   : > { %v1498_v62 = vrot.slane %v1497_v29, 2 }
0x1e38   : > { %v1499_v51 = vadd.f32 %v1498_v62, %v1497_v29 }
0x1e3a   : > { %v1500_v8 = vrot.slane %v1499_v51, 1 }
0x1e3c   : > { %v1501_v5 = vadd.f32 %v1500_v8, %v1499_v51 }
0x1e3e   : > { %2021 = vpush %v1501_v5 }
0x1e6f   : > { %s2022_s11 = spop %2021 }
0x1e70   : > { %v1503_v41 = vstv %s2022_s11 }
0x1e71   : > { %vm1504_vm4 = vcmp.ge.f32.partialorder %v1503_v41, %v3328_v38 }
0x1e72   : > { %v1505_v43 = vsel %vm1504_vm4, %v1489_v53, %v1486_v54  ;;  %v1506_v22 = vsel %vm1504_vm4, %v1487_v25, %v1489_v53 }
0x1e73   : > { %v1507_v63 = vadd.f32 %v1506_v22, %v1505_v43 }
0x1e75   : > { %v1508_v28 = vmul.f32 0.5, %v1507_v63 }
0x1e77   : > { %vm1509_vm5 = vcmp.gt.f32.partialorder %v3316_v11, %v1508_v28 }
0x1e78   : > { %v1926_v17 = vsel %vm1509_vm5, 1.0, %v2328_v46 }
0x1e79   : > { %v1512_v7 = vsel %vm332_vm0, %v1926_v17, 0.0 }
0x1e7a   : > { %1513 = vadd.xlane.f32.xlu0 %v1512_v7 }
0x1f07   : > { %v1514_v58 = vpop.xlane.xlu0 %1513 }
0x1f08   : > { %v1515_v59 = vrot.slane %v1514_v58, 4 }
0x1f0a   : > { %v1516_v27 = vadd.f32 %v1515_v59, %v1514_v58 }
0x1f0c   : > { %v1517_v32 = vrot.slane %v1516_v27, 2 }
0x1f0e   : > { %v1518_v30 = vadd.f32 %v1517_v32, %v1516_v27 }
0x1f10   : > { %v1519_v18 = vrot.slane %v1518_v30, 1 }
0x1f12   : > { %v1520_v61 = vadd.f32 %v1519_v18, %v1518_v30 }
0x1f14   : > { %2023 = vpush %v1520_v61 }
0x1f45   : > { %s2024_s15 = spop %2023 }
0x1f46   : > { %v1522_v60 = vstv %s2024_s15 }
0x1f47   : > { %vm1523_vm6 = vcmp.ge.f32.partialorder %v1522_v60, %v3328_v38 }
0x1f48   : > { %v1524_v1 = vsel %vm1523_vm6, %v1508_v28, %v1505_v43  ;;  %v1525_v33 = vsel %vm1523_vm6, %v1506_v22, %v1508_v28 }
0x1f49   : > { %v1526_v20 = vadd.f32 %v1525_v33, %v1524_v1 }
0x1f4b   : > { %v1527_v13 = vmul.f32 0.5, %v1526_v20 }
0x1f4d   : > { %vm1528_vm7 = vcmp.gt.f32.partialorder %v3316_v11, %v1527_v13 }
0x1f4e   : > { %v1927_v10 = vsel %vm1528_vm7, 1.0, %v2328_v46 }
0x1f4f   : > { %v1531_v12 = vsel %vm332_vm0, %v1927_v10, 0.0 }
0x1f50   : > { %1532 = vadd.xlane.f32.xlu1 %v1531_v12 }
0x1fdd   : > { %v1533_v14 = vpop.xlane.xlu1 %1532 }
0x1fde   : > { %v1534_v16 = vrot.slane %v1533_v14, 4 }
0x1fe0   : > { %v1535_v47 = vadd.f32 %v1534_v16, %v1533_v14 }
0x1fe2   : > { %v1536_v48 = vrot.slane %v1535_v47, 2 }
0x1fe4   : > { %v1537_v49 = vadd.f32 %v1536_v48, %v1535_v47 }
0x1fe6   : > { %v1538_v50 = vrot.slane %v1537_v49, 1 }
0x1fe8   : > { %v1539_v34 = vadd.f32 %v1538_v50, %v1537_v49 }
0x1fea   : > { %2025 = vpush %v1539_v34 }
0x201b   : > { %s2026_s26 = spop %2025 }
0x201c   : > { %v1541_v35 = vstv %s2026_s26 }
0x201d   : > { %vm1542_vm8 = vcmp.ge.f32.partialorder %v1541_v35, %v3328_v38 }
0x201e   : > { %v1543_v40 = vsel %vm1542_vm8, %v1527_v13, %v1524_v1  ;;  %v1544_v44 = vsel %vm1542_vm8, %v1525_v33, %v1527_v13 }
0x201f   : > { %v1545_v45 = vadd.f32 %v1544_v44, %v1543_v40 }
0x2021   : > { %v1546_v55 = vmul.f32 0.5, %v1545_v45 }
0x2023   : > { %vm1547_vm9 = vcmp.gt.f32.partialorder %v3316_v11, %v1546_v55 }
0x2024   : > { %v1928_v56 = vsel %vm1547_vm9, 1.0, %v2328_v46 }
0x2025   : > { %v1550_v15 = vsel %vm332_vm0, %v1928_v56, 0.0 }
0x2026   : > { %1551 = vadd.xlane.f32.xlu0 %v1550_v15 }
0x20b3   : > { %v1552_v24 = vpop.xlane.xlu0 %1551 }
0x20b4   : > { %v1553_v0 = vrot.slane %v1552_v24, 4 }
0x20b6   : > { %v1554_v2 = vadd.f32 %v1553_v0, %v1552_v24 }
0x20b8   : > { %v1555_v9 = vrot.slane %v1554_v2, 2 }
0x20ba   : > { %v1556_v3 = vadd.f32 %v1555_v9, %v1554_v2 }
0x20bc   : > { %v1557_v21 = vrot.slane %v1556_v3, 1 }
0x20be   : > { %v1558_v31 = vadd.f32 %v1557_v21, %v1556_v3 }
0x20c0   : > { %2027 = vpush %v1558_v31 }
0x20f1   : > { %s2028_s23 = spop %2027 }
0x20f2   : > { %v1560_v23 = vstv %s2028_s23 }
0x20f3   : > { %vm1561_vm10 = vcmp.ge.f32.partialorder %v1560_v23, %v3328_v38 }
0x20f4   : > { %v1562_v42 = vsel %vm1561_vm10, %v1546_v55, %v1543_v40  ;;  %v1563_v19 = vsel %vm1561_vm10, %v1544_v44, %v1546_v55 }
0x20f5   : > { %v1564_v52 = vadd.f32 %v1563_v19, %v1562_v42 }
0x20f7   : > { %v1565_v54 = vmul.f32 0.5, %v1564_v52 }
0x20f9   : > { %vm1566_vm11 = vcmp.gt.f32.partialorder %v3316_v11, %v1565_v54 }
0x20fa   : > { %v1929_v25 = vsel %vm1566_vm11, 1.0, %v2328_v46 }
0x20fb   : > { %v1569_v26 = vsel %vm332_vm0, %v1929_v25, 0.0 }
0x20fc   : > { %1570 = vadd.xlane.f32.xlu1 %v1569_v26 }
0x2189   : > { %v1571_v53 = vpop.xlane.xlu1 %1570 }
0x218a   : > { %v1572_v36 = vrot.slane %v1571_v53, 4 }
0x218c   : > { %v1573_v37 = vadd.f32 %v1572_v36, %v1571_v53 }
0x218e   : > { %v1574_v4 = vrot.slane %v1573_v37, 2 }
0x2190   : > { %v1575_v6 = vadd.f32 %v1574_v4, %v1573_v37 }
0x2192   : > { %v1576_v29 = vrot.slane %v1575_v6, 1 }
0x2194   : > { %v1577_v62 = vadd.f32 %v1576_v29, %v1575_v6 }
0x2196   : > { %2029 = vpush %v1577_v62 }
0x21c7   : > { %s2030_s5 = spop %2029 }
0x21c8   : > { %v1579_v51 = vstv %s2030_s5 }
0x21c9   : > { %vm1580_vm12 = vcmp.ge.f32.partialorder %v1579_v51, %v3328_v38 }
0x21ca   : > { %v1581_v8 = vsel %vm1580_vm12, %v1565_v54, %v1562_v42  ;;  %v1582_v5 = vsel %vm1580_vm12, %v1563_v19, %v1565_v54 }
0x21cb   : > { %v1583_v41 = vadd.f32 %v1582_v5, %v1581_v8 }
0x21cd   : > { %v1584_v43 = vmul.f32 0.5, %v1583_v41 }
0x21cf   : > { %vm1585_vm13 = vcmp.gt.f32.partialorder %v3316_v11, %v1584_v43 }
0x21d0   : > { %v1930_v22 = vsel %vm1585_vm13, 1.0, %v2328_v46 }
0x21d1   : > { %v1588_v63 = vsel %vm332_vm0, %v1930_v22, 0.0 }
0x21d2   : > { %1589 = vadd.xlane.f32.xlu0 %v1588_v63 }
0x225f   : > { %v1590_v28 = vpop.xlane.xlu0 %1589 }
0x2260   : > { %v1591_v17 = vrot.slane %v1590_v28, 4 }
0x2262   : > { %v1592_v7 = vadd.f32 %v1591_v17, %v1590_v28 }
0x2264   : > { %v1593_v58 = vrot.slane %v1592_v7, 2 }
0x2266   : > { %v1594_v59 = vadd.f32 %v1593_v58, %v1592_v7 }
0x2268   : > { %v1595_v27 = vrot.slane %v1594_v59, 1 }
0x226a   : > { %v1596_v32 = vadd.f32 %v1595_v27, %v1594_v59 }
0x226c   : > { %2031 = vpush %v1596_v32 }
0x229d   : > { %s2032_s4 = spop %2031 }
0x229e   : > { %v1598_v30 = vstv %s2032_s4 }
0x229f   : > { %vm1599_vm14 = vcmp.ge.f32.partialorder %v1598_v30, %v3328_v38 }
0x22a0   : > { %v1600_v18 = vsel %vm1599_vm14, %v1584_v43, %v1581_v8  ;;  %v1601_v61 = vsel %vm1599_vm14, %v1582_v5, %v1584_v43 }
0x22a1   : > { %v1602_v60 = vadd.f32 %v1601_v61, %v1600_v18 }
0x22a3   : > { %v1603_v1 = vmul.f32 0.5, %v1602_v60 }
0x22a5   : > { %vm1604_vm15 = vcmp.gt.f32.partialorder %v3316_v11, %v1603_v1 }
0x22a6   : > { %v1931_v33 = vsel %vm1604_vm15, 1.0, %v2328_v46 }
0x22a7   : > { %v1607_v20 = vsel %vm332_vm0, %v1931_v33, 0.0 }
0x22a8   : > { %1608 = vadd.xlane.f32.xlu1 %v1607_v20 }
0x2335   : > { %v1609_v13 = vpop.xlane.xlu1 %1608 }
0x2336   : > { %v1610_v10 = vrot.slane %v1609_v13, 4 }
0x2338   : > { %v1611_v12 = vadd.f32 %v1610_v10, %v1609_v13 }
0x233a   : > { %v1612_v14 = vrot.slane %v1611_v12, 2 }
0x233c   : > { %v1613_v16 = vadd.f32 %v1612_v14, %v1611_v12 }
0x233e   : > { %v1614_v47 = vrot.slane %v1613_v16, 1 }
0x2340   : > { %v1615_v48 = vadd.f32 %v1614_v47, %v1613_v16 }
0x2342   : > { %2033 = vpush %v1615_v48 }
0x2373   : > { %s2034_s0 = spop %2033 }
0x2374   : > { %v1617_v49 = vstv %s2034_s0 }
0x2375   : > { %vm1618_vm1 = vcmp.ge.f32.partialorder %v1617_v49, %v3328_v38 }
0x2376   : > { %v1619_v50 = vsel %vm1618_vm1, %v1603_v1, %v1600_v18  ;;  %v1620_v34 = vsel %vm1618_vm1, %v1601_v61, %v1603_v1 }
0x2377   : > { %v1621_v35 = vadd.f32 %v1620_v34, %v1619_v50 }
0x2379   : > { %v1622_v40 = vmul.f32 0.5, %v1621_v35 }
0x237b   : > { %vm1623_vm2 = vcmp.gt.f32.partialorder %v3316_v11, %v1622_v40 }
0x237c   : > { %v1932_v44 = vsel %vm1623_vm2, 1.0, %v2328_v46 }
0x237d   : > { %v1626_v45 = vsel %vm332_vm0, %v1932_v44, 0.0 }
0x237e   : > { %1627 = vadd.xlane.f32.xlu0 %v1626_v45 }
0x240b   : > { %v1628_v55 = vpop.xlane.xlu0 %1627 }
0x240c   : > { %v1629_v56 = vrot.slane %v1628_v55, 4 }
0x240e   : > { %v1630_v15 = vadd.f32 %v1629_v56, %v1628_v55 }
0x2410   : > { %v1631_v24 = vrot.slane %v1630_v15, 2 }
0x2412   : > { %v1632_v0 = vadd.f32 %v1631_v24, %v1630_v15 }
0x2414   : > { %v1633_v2 = vrot.slane %v1632_v0, 1 }
0x2416   : > { %v1634_v9 = vadd.f32 %v1633_v2, %v1632_v0 }
0x2418   : > { %2035 = vpush %v1634_v9 }
0x2449   : > { %s2036_s30 = spop %2035 }
0x244a   : > { %v1636_v3 = vstv %s2036_s30 }
0x244b   : > { %vm1637_vm3 = vcmp.ge.f32.partialorder %v1636_v3, %v3328_v38 }
0x244c   : > { %v1638_v21 = vsel %vm1637_vm3, %v1622_v40, %v1619_v50  ;;  %v1639_v31 = vsel %vm1637_vm3, %v1620_v34, %v1622_v40 }
0x244d   : > { %v1640_v23 = vadd.f32 %v1639_v31, %v1638_v21 }
0x244f   : > { %v1641_v42 = vmul.f32 0.5, %v1640_v23 }
0x2451   : > { %vm1642_vm4 = vcmp.gt.f32.partialorder %v3316_v11, %v1641_v42 }
0x2452   : > { %v1933_v19 = vsel %vm1642_vm4, 1.0, %v2328_v46 }
0x2453   : > { %v1645_v52 = vsel %vm332_vm0, %v1933_v19, 0.0 }
0x2454   : > { %1646 = vadd.xlane.f32.xlu1 %v1645_v52 }
0x24e1   : > { %v1647_v54 = vpop.xlane.xlu1 %1646 }
0x24e2   : > { %v1648_v25 = vrot.slane %v1647_v54, 4 }
0x24e4   : > { %v1649_v26 = vadd.f32 %v1648_v25, %v1647_v54 }
0x24e6   : > { %v1650_v53 = vrot.slane %v1649_v26, 2 }
0x24e8   : > { %v1651_v36 = vadd.f32 %v1650_v53, %v1649_v26 }
0x24ea   : > { %v1652_v37 = vrot.slane %v1651_v36, 1 }
0x24ec   : > { %v1653_v4 = vadd.f32 %v1652_v37, %v1651_v36 }
0x24ee   : > { %2037 = vpush %v1653_v4 }
0x251f   : > { %s2038_s18 = spop %2037 }
0x2520   : > { %v1655_v6 = vstv %s2038_s18 }
0x2521   : > { %vm1656_vm5 = vcmp.ge.f32.partialorder %v1655_v6, %v3328_v38 }
0x2522   : > { %v1657_v29 = vsel %vm1656_vm5, %v1641_v42, %v1638_v21  ;;  %v1658_v62 = vsel %vm1656_vm5, %v1639_v31, %v1641_v42 }
0x2523   : > { %v1659_v51 = vadd.f32 %v1658_v62, %v1657_v29 }
0x2525   : > { %v1660_v8 = vmul.f32 0.5, %v1659_v51 }
0x2527   : > { %vm1661_vm6 = vcmp.gt.f32.partialorder %v3316_v11, %v1660_v8 }
0x2528   : > { %v1934_v5 = vsel %vm1661_vm6, 1.0, %v2328_v46 }
0x2529   : > { %v1664_v41 = vsel %vm332_vm0, %v1934_v5, 0.0 }
0x252a   : > { %1665 = vadd.xlane.f32.xlu0 %v1664_v41 }
0x25b7   : > { %v1666_v43 = vpop.xlane.xlu0 %1665 }
0x25b8   : > { %v1667_v22 = vrot.slane %v1666_v43, 4 }
0x25ba   : > { %v1668_v63 = vadd.f32 %v1667_v22, %v1666_v43 }
0x25bc   : > { %v1669_v28 = vrot.slane %v1668_v63, 2 }
0x25be   : > { %v1670_v17 = vadd.f32 %v1669_v28, %v1668_v63 }
0x25c0   : > { %v1671_v7 = vrot.slane %v1670_v17, 1 }
0x25c2   : > { %v1672_v58 = vadd.f32 %v1671_v7, %v1670_v17 }
0x25c4   : > { %2039 = vpush %v1672_v58 }
0x25f5   : > { %s2040_s25 = spop %2039 }
0x25f6   : > { %v1674_v59 = vstv %s2040_s25 }
0x25f7   : > { %vm1675_vm7 = vcmp.ge.f32.partialorder %v1674_v59, %v3328_v38 }
0x25f8   : > { %v1676_v27 = vsel %vm1675_vm7, %v1660_v8, %v1657_v29  ;;  %v1677_v32 = vsel %vm1675_vm7, %v1658_v62, %v1660_v8 }
0x25f9   : > { %v1678_v30 = vadd.f32 %v1677_v32, %v1676_v27 }
0x25fb   : > { %v1679_v18 = vmul.f32 0.5, %v1678_v30 }
0x25fd   : > { %vm1680_vm8 = vcmp.gt.f32.partialorder %v3316_v11, %v1679_v18 }
0x25fe   : > { %v1935_v61 = vsel %vm1680_vm8, 1.0, %v2328_v46 }
0x25ff   : > { %v1683_v60 = vsel %vm332_vm0, %v1935_v61, 0.0 }
0x2600   : > { %1684 = vadd.xlane.f32.xlu1 %v1683_v60 }
0x268d   : > { %v1685_v1 = vpop.xlane.xlu1 %1684 }
0x268e   : > { %v1686_v33 = vrot.slane %v1685_v1, 4 }
0x2690   : > { %v1687_v20 = vadd.f32 %v1686_v33, %v1685_v1 }
0x2692   : > { %v1688_v13 = vrot.slane %v1687_v20, 2 }
0x2694   : > { %v1689_v10 = vadd.f32 %v1688_v13, %v1687_v20 }
0x2696   : > { %v1690_v12 = vrot.slane %v1689_v10, 1 }
0x2698   : > { %v1691_v14 = vadd.f32 %v1690_v12, %v1689_v10 }
0x269a   : > { %2041 = vpush %v1691_v14 }
0x26cb   : > { %s2042_s19 = spop %2041 }
0x26cc   : > { %v1693_v16 = vstv %s2042_s19 }
0x26cd   : > { %vm1694_vm9 = vcmp.ge.f32.partialorder %v1693_v16, %v3328_v38 }
0x26ce   : > { %v1695_v47 = vsel %vm1694_vm9, %v1679_v18, %v1676_v27  ;;  %v1696_v48 = vsel %vm1694_vm9, %v1677_v32, %v1679_v18 }
0x26cf   : > { %v1697_v49 = vadd.f32 %v1696_v48, %v1695_v47 }
0x26d1   : > { %v1698_v50 = vmul.f32 0.5, %v1697_v49 }
0x26d3   : > { %vm1699_vm10 = vcmp.gt.f32.partialorder %v3316_v11, %v1698_v50 }
0x26d4   : > { %v1936_v34 = vsel %vm1699_vm10, 1.0, %v2328_v46 }
0x26d5   : > { %v1702_v35 = vsel %vm332_vm0, %v1936_v34, 0.0 }
0x26d6   : > { %1703 = vadd.xlane.f32.xlu0 %v1702_v35 }
0x2763   : > { %v1704_v40 = vpop.xlane.xlu0 %1703 }
0x2764   : > { %v1705_v44 = vrot.slane %v1704_v40, 4 }
0x2766   : > { %v1706_v45 = vadd.f32 %v1705_v44, %v1704_v40 }
0x2768   : > { %v1707_v55 = vrot.slane %v1706_v45, 2 }
0x276a   : > { %v1708_v56 = vadd.f32 %v1707_v55, %v1706_v45 }
0x276c   : > { %v1709_v15 = vrot.slane %v1708_v56, 1 }
0x276e   : > { %v1710_v24 = vadd.f32 %v1709_v15, %v1708_v56 }
0x2770   : > { %2043 = vpush %v1710_v24 }
0x27a1   : > { %s2044_s9 = spop %2043 }
0x27a2   : > { %v1712_v0 = vstv %s2044_s9 }
0x27a3   : > { %vm1713_vm11 = vcmp.ge.f32.partialorder %v1712_v0, %v3328_v38 }
0x27a4   : > { %v1714_v2 = vsel %vm1713_vm11, %v1698_v50, %v1695_v47  ;;  %v1715_v9 = vsel %vm1713_vm11, %v1696_v48, %v1698_v50 }
0x27a5   : > { %v1716_v3 = vadd.f32 %v1715_v9, %v1714_v2 }
0x27a7   : > { %v1717_v21 = vmul.f32 0.5, %v1716_v3 }
0x27a9   : > { %vm1718_vm12 = vcmp.gt.f32.partialorder %v3316_v11, %v1717_v21 }
0x27aa   : > { %v1937_v31 = vsel %vm1718_vm12, 1.0, %v2328_v46 }
0x27ab   : > { %v1721_v23 = vsel %vm332_vm0, %v1937_v31, 0.0 }
0x27ac   : > { %1722 = vadd.xlane.f32.xlu1 %v1721_v23 }
0x2839   : > { %v1723_v42 = vpop.xlane.xlu1 %1722 }
0x283a   : > { %v1724_v19 = vrot.slane %v1723_v42, 4 }
0x283c   : > { %v1725_v52 = vadd.f32 %v1724_v19, %v1723_v42 }
0x283e   : > { %v1726_v54 = vrot.slane %v1725_v52, 2 }
0x2840   : > { %v1727_v25 = vadd.f32 %v1726_v54, %v1725_v52 }
0x2842   : > { %v1728_v26 = vrot.slane %v1727_v25, 1 }
0x2844   : > { %v1729_v53 = vadd.f32 %v1728_v26, %v1727_v25 }
0x2846   : > { %2045 = vpush %v1729_v53 }
0x2877   : > { %s2046_s17 = spop %2045 }
0x2878   : > { %v1731_v36 = vstv %s2046_s17 }
0x2879   : > { %vm1732_vm13 = vcmp.ge.f32.partialorder %v1731_v36, %v3328_v38 }
0x287a   : > { %v1733_v37 = vsel %vm1732_vm13, %v1717_v21, %v1714_v2 }
0x287b   : > { %vm1734_vm14 = vcmp.gt.f32.partialorder %v3316_v11, %v1733_v37 }
0x287c   : > { %v1938_v4 = vsel %vm1734_vm14, 1.0, %v2328_v46 }
0x287d   : > { %v1737_v6 = vsel %vm332_vm0, %v1938_v4, 0.0  ;;  %v1748_v29 = vmul.f32 %v1938_v4, %v3316_v11 }
0x287e   : > { %1738 = vadd.xlane.f32.xlu0 %v1737_v6 }
0x287f   : > { %v1749_v62 = vsel %vm332_vm0, %v1748_v29, 0.0  ;;  %vm1773_vm0 = vcmp.eq.s32.totalorder %v2615_v39, 3 }
0x2880   : > { %1750 = vadd.xlane.f32.xlu1 %v1749_v62 }
0x290b   : > { %v1739_v51 = vpop.xlane.xlu0 %1738 }
0x290c   : > { %v1740_v8 = vrot.slane %v1739_v51, 4 }
0x290d   : > { %v1751_v5 = vpop.xlane.xlu1 %1750 }
0x290e   : > { %v1741_v41 = vadd.f32 %v1740_v8, %v1739_v51  ;;  %v1752_v43 = vrot.slane %v1751_v5, 4 }
0x2910   : > { %v1742_v22 = vrot.slane %v1741_v41, 2  ;;  %v1753_v63 = vadd.f32 %v1752_v43, %v1751_v5 }
0x2912   : > { %v1743_v28 = vadd.f32 %v1742_v22, %v1741_v41  ;;  %v1754_v17 = vrot.slane %v1753_v63, 2 }
0x2914   : > { %v1755_v7 = vadd.f32 %v1754_v17, %v1753_v63  ;;  %v1744_v46 = vrot.slane %v1743_v28, 1 }
0x2916   : > { %v1745_v58 = vadd.f32 %v1744_v46, %v1743_v28  ;;  %v1756_v59 = vrot.slane %v1755_v7, 1 }
0x2918   : > { %2047 = vpush %v1745_v58  ;;  %v1757_v11 = vadd.f32 %v1756_v59, %v1755_v7 }
0x291a   : > { %2049 = vpush %v1757_v11 }
0x2949   : > { %s2048_s13 = spop %2047 }
0x294a   : > { %v1747_v27 = vstv %s2048_s13 }
0x294b   : > { %v1760_v32 = vsub.f32 %v3328_v38, %v1747_v27  ;;  %s2050_s24 = spop %2049 }
0x294c   : > { %v1759_v18 = vstv %s2050_s24 }
0x294d   : > { %v1761_v30 = vmul.f32 %v1760_v32, %v1733_v37 }
0x294f   : > { %v1762_v61 = vadd.f32 %v1761_v30, %v1759_v18 }
0x2951   : > { %v1774_v60 = vsel %vm1773_vm0, %v1762_v61, 0.0 }
0x2952   : > { %v1775_v1 = vadd.f32 %v1774_v60, %v3323_v57 }
0x2954   : > { %1776 = vst [vmem:[%s277_s14] sm:$0x1] %v1775_v1 }
0x2955   : > { %2254 = shalt.err (!%p2251_p0)
}
0x2956   : > { %s2255_s11 = scalar_lea.hbm %s3468_s7, 16  ;;  %s2259_s23 = scalar_lea.hbm %s3667_s2, 32 }
0x2957   : > { %p2256_p5 = scmp.ne.s32.totalorder %s3468_s7, %s2255_s11  ;;  %p2260_p9 = scmp.lt.u32.totalorder %s3468_s7, %s3667_s2 }
0x2958   : > { %p2261_p13 = scmp.lt.u32.totalorder %s2259_s23, %s2255_s11  ;;  %p2263_p2 = scmp.lt.u32.totalorder %s2255_s11, %s3468_s7 }
0x2959   : > { %p2257_p1 = pnand %p2256_p5, %p3668_p4 }
0x295a   : > { %p2262_p7 = por %p2261_p13, %p2260_p9 }
0x295b   : > { %p2258_p6 = pneg %p2257_p1 }
0x295c   : > { %p2264_p3 = por %p2263_p2, %p2262_p7 }
0x295e   : > { %p2265_p10 = pnand %p2264_p3, %p2258_p6 }
0x2960   : > { %2268 = shalt.err (!%p2265_p10)
}
0x2961   : > { %2065 = dma.vmem_to_hbm [thread:$0]  (%p3668_p4), %s3470_s12, 16, %s3468_s7, %s1778_s20  }
0x2962 PF: > { %s3669_s0 = sld [smem:[#allocation17_spill]]  ;;  %s3670_s30 = sld [smem:[#allocation22_spill]] }
0x2963   : > { %s3671_s18 = sld [smem:[#allocation20_spill]] }
0x2968   : > { %s1802_s25 = sand.u32 1, %s3669_s0   ;;  %p3672_p11 = scmp.ne.s32.totalorder %s3670_s30, 0 }
0x2969   : > { %p3673_p8 = scmp.ge.s32.totalorder %s3671_s18, 2  ;;  %s1803_s19 = scalar_lea.sflag [#allocation4], %s1802_s25 }
0x296b   : > { %p2082_p12 = pnand %p3673_p8, %p3672_p11 }
0x296d   : > { %2302 = dma.done.wait (!%p2082_p12), %s1803_s19, 16  }
0x296e   : > { %2304 = vsyncadd (!%p2082_p12), %s1803_s19, 4294967280  ;;  %s3674_s21 = sld [smem:[#allocation23_spill]]  ;;  %s3675_s18 = sld [smem:[#allocation18_spill]] }
0x296f   : > { %s3676_s19 = sld [smem:[#allocation19_spill]]  ;;  %s3677_s20 = sld [smem:[#allocation24_spill]] }
0x2974   : > { %p21_p0 = scmp.ge.s32.totalorder %s3674_s21, 4  }
0x2976   :  { %23 = sbr.rel (!%p21_p0) target bundleno = 14 (0xe), region = 99 }
0x297d   :  { %1807 = vsyncpa [#allocation3], 1 }
0x297e   :  { %1809 = vsyncpa [#allocation3 + $0x1], 1 }
0x297f   :  { %1810 = vsyncpa [#allocation4], 1 }
0x2980   :  { %1812 = vsyncpa [#allocation4 + $0x1], 1 }
0x2981   :  { %1813 = vsyncpa [#allocation5], 1 }
0x2982   :  { %1815 = vsyncpa [#allocation5 + $0x1], 1 }
0x2983   :  { %1816 = vsyncpa [#allocation9], 1 }
0x2984   :  { %1817 = vsyncpa [#allocation6], 1 }
0x2985   :  { %1819 = vsyncpa [#allocation6 + $0x1], 1 }

</bundles_post_ra>
